<compile_context>
chip_gen: v5e
topology: v5e:2x2
jax: 0.10.0
libtpu: 0.0.40
codegen_flags: <defaults>
</compile_context>

<pallas_src>
import functools
import math

import jax
import jax.numpy as jnp
from jax import lax
from jax.experimental import pallas as pl
from jax.experimental.pallas import tpu as pltpu


# ----------------------------------------------------------------------------
# In-kernel math helpers (f32 accumulation, bf16 MXU operands)
# ----------------------------------------------------------------------------

def _layernorm(x, g, b, eps):
    mean = jnp.mean(x, axis=-1, keepdims=True)
    var = jnp.mean((x - mean) ** 2, axis=-1, keepdims=True)
    return (x - mean) * lax.rsqrt(var + eps) * g + b


def _mm(a_f32, w_bf16, b_f32):
    """(f32 activation) @ (bf16 weight) with f32 accumulation, + f32 bias."""
    y = jnp.dot(a_f32.astype(jnp.bfloat16), w_bf16,
                preferred_element_type=jnp.float32)
    return y + b_f32


def _dot_t(a, b):
    """a @ b.T with bf16 operands / f32 accumulation (no transpose materialized)."""
    return lax.dot_general(a.astype(jnp.bfloat16), b.astype(jnp.bfloat16),
                           (((1,), (1,)), ((), ())),
                           preferred_element_type=jnp.float32)


# ----------------------------------------------------------------------------
# Pallas kernels
# ----------------------------------------------------------------------------

def _embed_kernel(p_ref, w_ref, add_ref, o_ref):
    """Patch embedding + pos + CLS, one batch element per grid step.

    p_ref:   (N, Cpp) patches, row 0 is all-zero (CLS slot).
    add_ref: (N, H) additive term; row 0 = cls + pos[0], rows 1: = patch_b + pos[1:].
    """
    y = jnp.dot(p_ref[...].astype(jnp.bfloat16), w_ref[...],
                preferred_element_type=jnp.float32)
    o_ref[...] = (y + add_ref[...].astype(jnp.float32)).astype(o_ref.dtype)


def _encoder_stack_kernel(x_ref,
                          ln1_g_ref, ln1_b_ref,
                          q_w_ref, q_b_ref, k_w_ref, k_b_ref, v_w_ref, v_b_ref,
                          out_w_ref, out_b_ref,
                          ln2_g_ref, ln2_b_ref,
                          fc1_w_ref, fc1_b_ref, fc2_w_ref, fc2_b_ref,
                          o_ref, *, nh, hd, eps):
    """One transformer layer per grid step; grid = (batch, layer).

    The residual stream lives in the resident output block: it is initialized
    from x_ref at layer 0 and read-modified-written every layer step.
    """
    layer = pl.program_id(1)

    @pl.when(layer == 0)
    def _():
        o_ref[...] = x_ref[...]

    x = o_ref[...].astype(jnp.float32)                      # (N, H)
    scale = 1.0 / math.sqrt(hd)

    # ---- attention block ----
    h1 = _layernorm(x, ln1_g_ref[...].astype(jnp.float32),
                    ln1_b_ref[...].astype(jnp.float32), eps)
    q = _mm(h1, q_w_ref[...], q_b_ref[...].astype(jnp.float32))
    k = _mm(h1, k_w_ref[...], k_b_ref[...].astype(jnp.float32))
    v = _mm(h1, v_w_ref[...], v_b_ref[...].astype(jnp.float32))
    ow = out_w_ref[...]                                      # (H, H) bf16

    attn = jnp.zeros_like(x)                                 # (N, H)
    for h in range(nh):                                      # static, small
        sl = slice(h * hd, (h + 1) * hd)
        s = _dot_t(q[:, sl], k[:, sl]) * scale               # (N, N)
        s = s - jnp.max(s, axis=-1, keepdims=True)
        e = jnp.exp(s)
        p = e * pl.reciprocal(jnp.sum(e, axis=-1, keepdims=True), approx=True)
        ctx_h = jnp.dot(p.astype(jnp.bfloat16),
                        v[:, sl].astype(jnp.bfloat16),
                        preferred_element_type=jnp.float32)  # (N, hd)
        # Per-head slice of the output projection rows -> no concat needed.
        attn = attn + jnp.dot(ctx_h.astype(jnp.bfloat16), ow[sl, :],
                              preferred_element_type=jnp.float32)
    x = x + attn + out_b_ref[...].astype(jnp.float32)

    # ---- MLP block ----
    h2 = _layernorm(x, ln2_g_ref[...].astype(jnp.float32),
                    ln2_b_ref[...].astype(jnp.float32), eps)
    m = _mm(h2, fc1_w_ref[...], fc1_b_ref[...].astype(jnp.float32))
    # TODO(synk): PyTorch F.gelu default is exact (erf); tanh approximation
    # used here for robust Mosaic lowering.
    m = jax.nn.gelu(m, approximate=True)
    m = _mm(m, fc2_w_ref[...], fc2_b_ref[...].astype(jnp.float32))
    x = x + m

    o_ref[...] = x.astype(o_ref.dtype)


def _cls_score_kernel(x_ref, q_w_ref, q_b_ref, k_w_ref, k_b_ref, o_ref, *, nh, hd):
    """Head-averaged CLS-query attention probabilities, one batch per grid step.

    Only the CLS row of q is projected; output is (1, N) per batch element.
    """
    x = x_ref[...].astype(jnp.float32)                       # (N, H)
    n = x.shape[0]
    scale = 1.0 / math.sqrt(hd)
    q = _mm(x[0:1, :], q_w_ref[...], q_b_ref[...].astype(jnp.float32))   # (1, H)
    k = _mm(x, k_w_ref[...], k_b_ref[...].astype(jnp.float32))           # (N, H)
    acc = jnp.zeros((1, n), jnp.float32)
    for h in range(nh):
        sl = slice(h * hd, (h + 1) * hd)
        s = _dot_t(q[:, sl], k[:, sl]) * scale               # (1, N)
        s = s - jnp.max(s, axis=-1, keepdims=True)
        e = jnp.exp(s)
        acc = acc + e * pl.reciprocal(jnp.sum(e, axis=-1, keepdims=True),
                                      approx=True)
    o_ref[...] = (acc * (1.0 / nh)).astype(o_ref.dtype)


# ----------------------------------------------------------------------------
# Pallas wrappers
# ----------------------------------------------------------------------------

_VMEM_LIMIT = 48 * 1024 * 1024   # explicit; safe on v5e/v6e (128 MiB) and v7x (64 MiB)


def vit_embeddings(sp, pixel_values, cfg):
    B, C, Hi, Wi = pixel_values.shape
    p, H = cfg["patch"], cfg["hidden"]
    nH, nW = Hi // p, Wi // p
    nP, Cpp = nH * nW, C * p * p
    N = nP + 1
    # NCHW -> patches ordered (C, ph, pw), matching Conv2d(kernel=stride=patch).
    patches = (pixel_values.reshape(B, C, nH, p, nW, p)
               .transpose(0, 2, 4, 1, 3, 5)
               .reshape(B, nP, Cpp))
    # Row 0 (CLS slot) is a zero patch; its embedding comes entirely from `add`.
    patches_aug = jnp.concatenate(
        [jnp.zeros((B, 1, Cpp), patches.dtype), patches], axis=1)        # (B, N, Cpp)
    add = jnp.concatenate(
        [sp["cls"] + sp["pos"][0:1], sp["pos"][1:] + sp["patch_b"]], axis=0)  # (N, H)

    cost = pl.CostEstimate(
        flops=int(2 * B * N * Cpp * H),
        transcendentals=0,
        bytes_accessed=int(B * N * Cpp * 4 + Cpp * H * 2 + N * H * 4 + B * N * H * 4))

    return pl.pallas_call(
        _embed_kernel,
        out_shape=jax.ShapeDtypeStruct((B, N, H), jnp.float32),
        grid=(B,),
        in_specs=[
            pl.BlockSpec((None, N, Cpp), lambda b: (b, 0, 0)),
            pl.BlockSpec((Cpp, H), lambda b: (0, 0)),
            pl.BlockSpec((N, H), lambda b: (0, 0)),
        ],
        out_specs=pl.BlockSpec((None, N, H), lambda b: (b, 0, 0)),
        compiler_params=pltpu.CompilerParams(
            dimension_semantics=("parallel",),
            vmem_limit_bytes=_VMEM_LIMIT),
        cost_estimate=cost,
    )(patches_aug, sp["patch_w"], add)


def run_encoder_stack(sp, x, lo, hi, cfg):
    """Run transformer layers [lo, hi); grid = (batch 'parallel', layer 'arbitrary')."""
    if lo >= hi:
        return x
    B, N, H = x.shape
    M, nh, hd = cfg["mlp"], cfg["heads"], cfg["head_dim"]
    nl = hi - lo

    def act_map(b, l):
        return (b, 0, 0)

    def w_map(b, l):
        return (l + lo, 0, 0)

    def wspec(shape):
        return pl.BlockSpec((None,) + shape, w_map)

    in_specs = [
        pl.BlockSpec((None, N, H), act_map),      # x (read only at layer 0)
        wspec((1, H)), wspec((1, H)),             # ln1 g/b
        wspec((H, H)), wspec((1, H)),             # q w/b
        wspec((H, H)), wspec((1, H)),             # k w/b
        wspec((H, H)), wspec((1, H)),             # v w/b
        wspec((H, H)), wspec((1, H)),             # out w/b
        wspec((1, H)), wspec((1, H)),             # ln2 g/b
        wspec((H, M)), wspec((1, M)),             # fc1 w/b
        wspec((M, H)), wspec((1, H)),             # fc2 w/b
    ]
    out_spec = pl.BlockSpec((None, N, H), act_map)

    flops = nl * B * (2 * N * H * (4 * H + 2 * M) + 4 * N * N * H)
    transc = nl * B * (nh * N * N + N * M)
    w_bytes = nl * ((4 * H * H + 2 * H * M) * 2 + (8 * H + M) * 4)
    cost = pl.CostEstimate(flops=int(flops), transcendentals=int(transc),
                           bytes_accessed=int(2 * B * N * H * 4 + w_bytes))

    kernel = functools.partial(_encoder_stack_kernel, nh=nh, hd=hd, eps=cfg["eps"])
    return pl.pallas_call(
        kernel,
        out_shape=jax.ShapeDtypeStruct((B, N, H), x.dtype),
        grid=(B, nl),
        in_specs=in_specs,
        out_specs=out_spec,
        compiler_params=pltpu.CompilerParams(
            dimension_semantics=("parallel", "arbitrary"),
            vmem_limit_bytes=_VMEM_LIMIT),
        cost_estimate=cost,
    )(x,
      sp["ln1_g"], sp["ln1_b"],
      sp["q_w"], sp["q_b"], sp["k_w"], sp["k_b"], sp["v_w"], sp["v_b"],
      sp["out_w"], sp["out_b"],
      sp["ln2_g"], sp["ln2_b"],
      sp["fc1_w"], sp["fc1_b"], sp["fc2_w"], sp["fc2_b"])


def token_compress(sp, x, s, layer_idx, cfg):
    B, N, H = x.shape
    nh, hd = cfg["heads"], cfg["head_dim"]
    kernel = functools.partial(_cls_score_kernel, nh=nh, hd=hd)

    cost = pl.CostEstimate(
        flops=int(B * (2 * (N + 1) * H * H + nh * 4 * N * hd)),
        transcendentals=int(B * nh * N),
        bytes_accessed=int(B * N * H * 4 + 2 * H * H * 2 + B * N * 4))

    scores = pl.pallas_call(
        kernel,
        out_shape=jax.ShapeDtypeStruct((B, 1, N), jnp.float32),
        grid=(B,),
        in_specs=[
            pl.BlockSpec((None, N, H), lambda b: (b, 0, 0)),
            pl.BlockSpec((H, H), lambda b: (0, 0)),
            pl.BlockSpec((1, H), lambda b: (0, 0)),
            pl.BlockSpec((H, H), lambda b: (0, 0)),
            pl.BlockSpec((1, H), lambda b: (0, 0)),
        ],
        out_specs=pl.BlockSpec((None, 1, N), lambda b: (b, 0, 0)),
        compiler_params=pltpu.CompilerParams(
            dimension_semantics=("parallel",),
            vmem_limit_bytes=_VMEM_LIMIT),
        cost_estimate=cost,
    )(x, sp["q_w"][layer_idx], sp["q_b"][layer_idx],
      sp["k_w"][layer_idx], sp["k_b"][layer_idx])

    cls_attn = scores[:, 0, 1:]                              # (B, N-1) CLS -> patches
    n_keep = max(1, int(round((N - 1) * (1.0 - cfg["prune_ratio"]))))
    _, idx = lax.top_k(cls_attn, n_keep)                     # data-dependent selection
    idx = jnp.sort(idx, axis=-1) + 1                         # back to token indices
    keep = jnp.concatenate([jnp.zeros((B, 1), idx.dtype), idx], axis=1)   # prepend CLS
    x_new = jnp.take_along_axis(x, keep[:, :, None], axis=1)
    s_new = jnp.take_along_axis(s, keep, axis=1)
    return x_new, s_new, keep


def vit_with_token_compress(sp, pixel_values, cfg):
    x = vit_embeddings(sp, pixel_values, cfg)                # (B, 1+nP, H)
    B, N, H = x.shape
    s = jnp.ones((B, N), x.dtype)
    ca, L = cfg["compress_at_layer"], cfg["layers"]

    if 0 <= ca < L:
        x = run_encoder_stack(sp, x, 0, ca, cfg)
        # TODO(synk): TokenCompressor scores q/k(raw residual x); EViT variants
        # use post-LayerNorm qkv — exact reference semantics unknown.
        x, s, _ = token_compress(sp, x, s, ca, cfg)
        x = run_encoder_stack(sp, x, ca, L, cfg)
    else:
        x = run_encoder_stack(sp, x, 0, L, cfg)
    return x


# ----------------------------------------------------------------------------
# Deterministic parameter init (synthetic) + stacking for the fused kernels
# ----------------------------------------------------------------------------

def init_params(key, cfg, in_chans, num_patches):
    H, M = cfg["hidden"], cfg["mlp"]

    def dense(k, fi, fo):
        return jax.random.normal(k, (fi, fo), jnp.float32) * 0.02

    keys = jax.random.split(key, 4 + cfg["layers"])
    params = {
        "patch_w": dense(keys[0], in_chans * cfg["patch"] ** 2, H),
        "patch_b": jnp.zeros((H,), jnp.float32),
        "cls": jax.random.normal(keys[1], (1, 1, H), jnp.float32) * 0.02,
        "pos": jax.random.normal(keys[2], (1, 1 + num_patches, H), jnp.float32) * 0.02,
        "layers": [],
    }
    for i in range(cfg["layers"]):
        lk = jax.random.split(keys[4 + i], 4)
        params["layers"].append({
            "ln1_g": jnp.ones((H,), jnp.float32), "ln1_b": jnp.zeros((H,), jnp.float32),
            "qkv_w": dense(lk[0], H, 3 * H),      "qkv_b": jnp.zeros((3 * H,), jnp.float32),
            "out_w": dense(lk[1], H, H),          "out_b": jnp.zeros((H,), jnp.float32),
            "ln2_g": jnp.ones((H,), jnp.float32), "ln2_b": jnp.zeros((H,), jnp.float32),
            "fc1_w": dense(lk[2], H, M),          "fc1_b": jnp.zeros((M,), jnp.float32),
            "fc2_w": dense(lk[3], M, H),          "fc2_b": jnp.zeros((H,), jnp.float32),
        })
    return params


def prepare_params(params, cfg):
    """Stack per-layer weights (L, ...), split fused qkv, store matmul weights bf16."""
    H, M, L = cfg["hidden"], cfg["mlp"], cfg["layers"]
    layers = params["layers"]

    def stack(name):
        return jnp.stack([lp[name] for lp in layers], axis=0)

    def w16(a):
        return a.astype(jnp.bfloat16)

    qkv_w = stack("qkv_w")                                   # (L, H, 3H), [q|k|v]
    qkv_b = stack("qkv_b")                                   # (L, 3H)
    return {
        "patch_w": w16(params["patch_w"]),
        "patch_b": params["patch_b"].reshape(1, H),
        "cls": params["cls"].reshape(1, H),
        "pos": params["pos"].reshape(-1, H),
        "ln1_g": stack("ln1_g").reshape(L, 1, H), "ln1_b": stack("ln1_b").reshape(L, 1, H),
        "q_w": w16(qkv_w[:, :, 0:H]),       "q_b": qkv_b[:, 0:H].reshape(L, 1, H),
        "k_w": w16(qkv_w[:, :, H:2 * H]),   "k_b": qkv_b[:, H:2 * H].reshape(L, 1, H),
        "v_w": w16(qkv_w[:, :, 2 * H:]),    "v_b": qkv_b[:, 2 * H:].reshape(L, 1, H),
        "out_w": w16(stack("out_w")),       "out_b": stack("out_b").reshape(L, 1, H),
        "ln2_g": stack("ln2_g").reshape(L, 1, H), "ln2_b": stack("ln2_b").reshape(L, 1, H),
        "fc1_w": w16(stack("fc1_w")),       "fc1_b": stack("fc1_b").reshape(L, 1, M),
        "fc2_w": w16(stack("fc2_w")),       "fc2_b": stack("fc2_b").reshape(L, 1, H),
    }


# ----------------------------------------------------------------------------
# Main
# ----------------------------------------------------------------------------

if __name__ == "__main__":
    cfg = dict(
        patch=8, hidden=32, heads=4, head_dim=8, mlp=64,
        layers=8, compress_at_layer=6, prune_ratio=0.5, eps=1e-12,
    )
    B, C, HW = 2, 3, 16
    num_patches = (HW // cfg["patch"]) ** 2          # 4 patches -> 5 tokens with CLS

    key = jax.random.PRNGKey(0)
    pkey, xkey = jax.random.split(key)
    params = init_params(pkey, cfg, in_chans=C, num_patches=num_patches)
    sp = prepare_params(params, cfg)
    pixel_values = jax.random.normal(xkey, (B, C, HW, HW), jnp.float32)

    fwd = jax.jit(functools.partial(vit_with_token_compress, cfg=cfg))
    out = jax.block_until_ready(fwd(sp, pixel_values))

    # After compression: CLS + round(4 * (1 - 0.5)) = 3 tokens.
    assert out.shape == (B, 3, cfg["hidden"]), out.shape
    assert bool(jnp.all(jnp.isfinite(out)))
    print("KERNEL_OK")
</pallas_src>

<mosaic_0001>
module attributes {stable_mosaic.version = 11 : i64} {
  func.func @_embed_kernel(%arg0: i32, %arg1: memref<1x5x192xf32, #tpu.memory_space<vmem>>, %arg2: memref<192x32xbf16, #tpu.memory_space<vmem>>, %arg3: memref<5x32xf32, #tpu.memory_space<vmem>>, %arg4: memref<1x5x32xf32, #tpu.memory_space<vmem>>) attributes {dimension_semantics = [#tpu.dimension_semantics<parallel>], iteration_bounds = array<i64: 2>, scalar_prefetch = 0 : i64, scratch_operands = 0 : i64, tpu.core_type = #tpu.core_type<tc>, window_params = [{transform_indices = @transform_0, window_bounds = array<i64: 1, 5, 192>}, {pipeline_mode = #tpu.pipeline_mode<synchronous>, transform_indices = @transform_1, window_bounds = array<i64: 192, 32>}, {pipeline_mode = #tpu.pipeline_mode<synchronous>, transform_indices = @transform_2, window_bounds = array<i64: 5, 32>}, {transform_indices = @transform_3, window_bounds = array<i64: 1, 5, 32>}]} {
    %c0 = arith.constant 0 : index
    %c0_0 = arith.constant 0 : index
    %c0_1 = arith.constant 0 : index
    %0 = vector.load %arg1[%c0, %c0_0, %c0_1] : memref<1x5x192xf32, #tpu.memory_space<vmem>>, vector<1x5x192xf32>
    %1 = vector.shape_cast %0 : vector<1x5x192xf32> to vector<5x192xf32>
    %2 = arith.truncf %1 : vector<5x192xf32> to vector<5x192xbf16>
    %c0_2 = arith.constant 0 : index
    %c0_3 = arith.constant 0 : index
    %3 = vector.load %arg2[%c0_2, %c0_3] : memref<192x32xbf16, #tpu.memory_space<vmem>>, vector<192x32xbf16>
    %cst = arith.constant dense<0.000000e+00> : vector<5x32xf32>
    %4 = tpu.matmul %2, %3, %cst {dimension_numbers = #tpu.dot_dimension_numbers<[1], [0], [0], [1], [0, 0, 1, 1], [], []>} : vector<5x192xbf16>, vector<192x32xbf16>, vector<5x32xf32> -> vector<5x32xf32>
    %c0_4 = arith.constant 0 : index
    %c0_5 = arith.constant 0 : index
    %5 = vector.load %arg3[%c0_4, %c0_5] : memref<5x32xf32, #tpu.memory_space<vmem>>, vector<5x32xf32>
    %6 = arith.addf %4, %5 : vector<5x32xf32>
    %c0_6 = arith.constant 0 : index
    %c0_7 = arith.constant 0 : index
    %c0_8 = arith.constant 0 : index
    %7 = vector.load %arg4[%c0_6, %c0_7, %c0_8] : memref<1x5x32xf32, #tpu.memory_space<vmem>>, vector<1x5x32xf32>
    %8 = vector.shape_cast %7 : vector<1x5x32xf32> to vector<5x32xf32>
    %9 = vector.shape_cast %6 : vector<5x32xf32> to vector<1x5x32xf32>
    tpu.vector_store %arg4[%c0_6, %c0_7, %c0_8], %9 {strides = array<i32>} : memref<1x5x32xf32, #tpu.memory_space<vmem>>, vector<1x5x32xf32>,
    return
  }
  func.func @transform_0(%arg0: i32) -> (i32, i32, i32) {
    %c0_i32 = arith.constant 0 : i32
    %c0_i32_0 = arith.constant 0 : i32
    %c0_i32_1 = arith.constant 0 : i32
    return %arg0, %c0_i32, %c0_i32_0 : i32, i32, i32
  }
  func.func @transform_1(%arg0: i32) -> (i32, i32) {
    %c0_i32 = arith.constant 0 : i32
    %c0_i32_0 = arith.constant 0 : i32
    %c0_i32_1 = arith.constant 0 : i32
    return %c0_i32, %c0_i32_0 : i32, i32
  }
  func.func @transform_2(%arg0: i32) -> (i32, i32) {
    %c0_i32 = arith.constant 0 : i32
    %c0_i32_0 = arith.constant 0 : i32
    %c0_i32_1 = arith.constant 0 : i32
    return %c0_i32, %c0_i32_0 : i32, i32
  }
  func.func @transform_3(%arg0: i32) -> (i32, i32, i32) {
    %c0_i32 = arith.constant 0 : i32
    %c0_i32_0 = arith.constant 0 : i32
    %c0_i32_1 = arith.constant 0 : i32
    return %arg0, %c0_i32, %c0_i32_0 : i32, i32, i32
  }
}

module attributes {stable_mosaic.version = 11 : i64} {
  func.func @_encoder_stack_kernel(%arg0: i32, %arg1: i32, %arg2: memref<1x5x32xf32, #tpu.memory_space<vmem>>, %arg3: memref<1x1x32xf32, #tpu.memory_space<vmem>>, %arg4: memref<1x1x32xf32, #tpu.memory_space<vmem>>, %arg5: memref<1x32x32xbf16, #tpu.memory_space<vmem>>, %arg6: memref<1x1x32xf32, #tpu.memory_space<vmem>>, %arg7: memref<1x32x32xbf16, #tpu.memory_space<vmem>>, %arg8: memref<1x1x32xf32, #tpu.memory_space<vmem>>, %arg9: memref<1x32x32xbf16, #tpu.memory_space<vmem>>, %arg10: memref<1x1x32xf32, #tpu.memory_space<vmem>>, %arg11: memref<1x32x32xbf16, #tpu.memory_space<vmem>>, %arg12: memref<1x1x32xf32, #tpu.memory_space<vmem>>, %arg13: memref<1x1x32xf32, #tpu.memory_space<vmem>>, %arg14: memref<1x1x32xf32, #tpu.memory_space<vmem>>, %arg15: memref<1x32x64xbf16, #tpu.memory_space<vmem>>, %arg16: memref<1x1x64xf32, #tpu.memory_space<vmem>>, %arg17: memref<1x64x32xbf16, #tpu.memory_space<vmem>>, %arg18: memref<1x1x32xf32, #tpu.memory_space<vmem>>, %arg19: memref<1x5x32xf32, #tpu.memory_space<vmem>>) attributes {dimension_semantics = [#tpu.dimension_semantics<parallel>, #tpu.dimension_semantics<arbitrary>], iteration_bounds = array<i64: 2, 6>, scalar_prefetch = 0 : i64, scratch_operands = 0 : i64, tpu.core_type = #tpu.core_type<tc>, window_params = [{transform_indices = @transform_0, window_bounds = array<i64: 1, 5, 32>}, {transform_indices = @transform_1, window_bounds = array<i64: 1, 1, 32>}, {transform_indices = @transform_2, window_bounds = array<i64: 1, 1, 32>}, {transform_indices = @transform_3, window_bounds = array<i64: 1, 32, 32>}, {transform_indices = @transform_4, window_bounds = array<i64: 1, 1, 32>}, {transform_indices = @transform_5, window_bounds = array<i64: 1, 32, 32>}, {transform_indices = @transform_6, window_bounds = array<i64: 1, 1, 32>}, {transform_indices = @transform_7, window_bounds = array<i64: 1, 32, 32>}, {transform_indices = @transform_8, window_bounds = array<i64: 1, 1, 32>}, {transform_indices = @transform_9, window_bounds = array<i64: 1, 32, 32>}, {transform_indices = @transform_10, window_bounds = array<i64: 1, 1, 32>}, {transform_indices = @transform_11, window_bounds = array<i64: 1, 1, 32>}, {transform_indices = @transform_12, window_bounds = array<i64: 1, 1, 32>}, {transform_indices = @transform_13, window_bounds = array<i64: 1, 32, 64>}, {transform_indices = @transform_14, window_bounds = array<i64: 1, 1, 64>}, {transform_indices = @transform_15, window_bounds = array<i64: 1, 64, 32>}, {transform_indices = @transform_16, window_bounds = array<i64: 1, 1, 32>}, {transform_indices = @transform_17, window_bounds = array<i64: 1, 5, 32>}]} {
    %c0_i32 = arith.constant 0 : i32
    %0 = arith.cmpi eq, %arg1, %c0_i32 : i32
    %1 = arith.extui %0 : i1 to i32
    %c0_i32_0 = arith.constant 0 : i32
    %2 = arith.cmpi ne, %1, %c0_i32_0 : i32
    scf.if %2 {
      %c0_97 = arith.constant 0 : index
      %c0_98 = arith.constant 0 : index
      %c0_99 = arith.constant 0 : index
      %222 = vector.load %arg2[%c0_97, %c0_98, %c0_99] : memref<1x5x32xf32, #tpu.memory_space<vmem>>, vector<1x5x32xf32>
      %223 = vector.shape_cast %222 : vector<1x5x32xf32> to vector<5x32xf32>
      %c0_100 = arith.constant 0 : index
      %c0_101 = arith.constant 0 : index
      %c0_102 = arith.constant 0 : index
      %224 = vector.load %arg19[%c0_100, %c0_101, %c0_102] : memref<1x5x32xf32, #tpu.memory_space<vmem>>, vector<1x5x32xf32>
      %225 = vector.shape_cast %224 : vector<1x5x32xf32> to vector<5x32xf32>
      %226 = vector.shape_cast %223 : vector<5x32xf32> to vector<1x5x32xf32>
      tpu.vector_store %arg19[%c0_100, %c0_101, %c0_102], %226 {strides = array<i32>} : memref<1x5x32xf32, #tpu.memory_space<vmem>>, vector<1x5x32xf32>,
    } else {
    }
    %c0 = arith.constant 0 : index
    %c0_1 = arith.constant 0 : index
    %c0_2 = arith.constant 0 : index
    %3 = vector.load %arg19[%c0, %c0_1, %c0_2] : memref<1x5x32xf32, #tpu.memory_space<vmem>>, vector<1x5x32xf32>
    %4 = vector.shape_cast %3 : vector<1x5x32xf32> to vector<5x32xf32>
    %c0_3 = arith.constant 0 : index
    %c0_4 = arith.constant 0 : index
    %c0_5 = arith.constant 0 : index
    %5 = vector.load %arg3[%c0_3, %c0_4, %c0_5] : memref<1x1x32xf32, #tpu.memory_space<vmem>>, vector<1x1x32xf32>
    %6 = vector.shape_cast %5 : vector<1x1x32xf32> to vector<1x32xf32>
    %c0_6 = arith.constant 0 : index
    %c0_7 = arith.constant 0 : index
    %c0_8 = arith.constant 0 : index
    %7 = vector.load %arg4[%c0_6, %c0_7, %c0_8] : memref<1x1x32xf32, #tpu.memory_space<vmem>>, vector<1x1x32xf32>
    %8 = vector.shape_cast %7 : vector<1x1x32xf32> to vector<1x32xf32>
    %cst = arith.constant dense<0.000000e+00> : vector<5xf32>
    %9 = vector.multi_reduction <add>, %4, %cst [1] : vector<5x32xf32> to vector<5xf32>
    %10 = vector.shape_cast %9 : vector<5xf32> to vector<5x1xf32>
    %cst_9 = arith.constant 3.200000e+01 : f32
    %11 = vector.broadcast %cst_9 : f32 to vector<5x1xf32>
    %12 = arith.divf %10, %11 : vector<5x1xf32>
    %13 = vector.broadcast %12 : vector<5x1xf32> to vector<5x32xf32>
    %14 = arith.subf %4, %13 : vector<5x32xf32>
    %15 = arith.mulf %14, %14 : vector<5x32xf32>
    %cst_10 = arith.constant dense<0.000000e+00> : vector<5xf32>
    %16 = vector.multi_reduction <add>, %15, %cst_10 [1] : vector<5x32xf32> to vector<5xf32>
    %17 = vector.shape_cast %16 : vector<5xf32> to vector<5x1xf32>
    %cst_11 = arith.constant 3.200000e+01 : f32
    %18 = vector.broadcast %cst_11 : f32 to vector<5x1xf32>
    %19 = arith.divf %17, %18 : vector<5x1xf32>
    %20 = vector.broadcast %12 : vector<5x1xf32> to vector<5x32xf32>
    %21 = arith.subf %4, %20 : vector<5x32xf32>
    %cst_12 = arith.constant 9.99999996E-13 : f32
    %22 = vector.broadcast %cst_12 : f32 to vector<5x1xf32>
    %23 = arith.addf %19, %22 : vector<5x1xf32>
    %24 = math.rsqrt %23 : vector<5x1xf32>
    %25 = vector.broadcast %24 : vector<5x1xf32> to vector<5x32xf32>
    %26 = arith.mulf %21, %25 : vector<5x32xf32>
    %27 = vector.broadcast %6 : vector<1x32xf32> to vector<5x32xf32>
    %28 = arith.mulf %26, %27 : vector<5x32xf32>
    %29 = vector.broadcast %8 : vector<1x32xf32> to vector<5x32xf32>
    %30 = arith.addf %28, %29 : vector<5x32xf32>
    %c0_13 = arith.constant 0 : index
    %c0_14 = arith.constant 0 : index
    %c0_15 = arith.constant 0 : index
    %31 = vector.load %arg5[%c0_13, %c0_14, %c0_15] : memref<1x32x32xbf16, #tpu.memory_space<vmem>>, vector<1x32x32xbf16>
    %32 = vector.shape_cast %31 : vector<1x32x32xbf16> to vector<32x32xbf16>
    %c0_16 = arith.constant 0 : index
    %c0_17 = arith.constant 0 : index
    %c0_18 = arith.constant 0 : index
    %33 = vector.load %arg6[%c0_16, %c0_17, %c0_18] : memref<1x1x32xf32, #tpu.memory_space<vmem>>, vector<1x1x32xf32>
    %34 = vector.shape_cast %33 : vector<1x1x32xf32> to vector<1x32xf32>
    %35 = arith.truncf %30 : vector<5x32xf32> to vector<5x32xbf16>
    %cst_19 = arith.constant dense<0.000000e+00> : vector<5x32xf32>
    %36 = tpu.matmul %35, %32, %cst_19 {dimension_numbers = #tpu.dot_dimension_numbers<[1], [0], [0], [1], [0, 0, 1, 1], [], []>} : vector<5x32xbf16>, vector<32x32xbf16>, vector<5x32xf32> -> vector<5x32xf32>
    %37 = vector.broadcast %34 : vector<1x32xf32> to vector<5x32xf32>
    %38 = arith.addf %36, %37 : vector<5x32xf32>
    %c0_20 = arith.constant 0 : index
    %c0_21 = arith.constant 0 : index
    %c0_22 = arith.constant 0 : index
    %39 = vector.load %arg7[%c0_20, %c0_21, %c0_22] : memref<1x32x32xbf16, #tpu.memory_space<vmem>>, vector<1x32x32xbf16>
    %40 = vector.shape_cast %39 : vector<1x32x32xbf16> to vector<32x32xbf16>
    %c0_23 = arith.constant 0 : index
    %c0_24 = arith.constant 0 : index
    %c0_25 = arith.constant 0 : index
    %41 = vector.load %arg8[%c0_23, %c0_24, %c0_25] : memref<1x1x32xf32, #tpu.memory_space<vmem>>, vector<1x1x32xf32>
    %42 = vector.shape_cast %41 : vector<1x1x32xf32> to vector<1x32xf32>
    %43 = arith.truncf %30 : vector<5x32xf32> to vector<5x32xbf16>
    %cst_26 = arith.constant dense<0.000000e+00> : vector<5x32xf32>
    %44 = tpu.matmul %43, %40, %cst_26 {dimension_numbers = #tpu.dot_dimension_numbers<[1], [0], [0], [1], [0, 0, 1, 1], [], []>} : vector<5x32xbf16>, vector<32x32xbf16>, vector<5x32xf32> -> vector<5x32xf32>
    %45 = vector.broadcast %42 : vector<1x32xf32> to vector<5x32xf32>
    %46 = arith.addf %44, %45 : vector<5x32xf32>
    %c0_27 = arith.constant 0 : index
    %c0_28 = arith.constant 0 : index
    %c0_29 = arith.constant 0 : index
    %47 = vector.load %arg9[%c0_27, %c0_28, %c0_29] : memref<1x32x32xbf16, #tpu.memory_space<vmem>>, vector<1x32x32xbf16>
    %48 = vector.shape_cast %47 : vector<1x32x32xbf16> to vector<32x32xbf16>
    %c0_30 = arith.constant 0 : index
    %c0_31 = arith.constant 0 : index
    %c0_32 = arith.constant 0 : index
    %49 = vector.load %arg10[%c0_30, %c0_31, %c0_32] : memref<1x1x32xf32, #tpu.memory_space<vmem>>, vector<1x1x32xf32>
    %50 = vector.shape_cast %49 : vector<1x1x32xf32> to vector<1x32xf32>
    %51 = arith.truncf %30 : vector<5x32xf32> to vector<5x32xbf16>
    %cst_33 = arith.constant dense<0.000000e+00> : vector<5x32xf32>
    %52 = tpu.matmul %51, %48, %cst_33 {dimension_numbers = #tpu.dot_dimension_numbers<[1], [0], [0], [1], [0, 0, 1, 1], [], []>} : vector<5x32xbf16>, vector<32x32xbf16>, vector<5x32xf32> -> vector<5x32xf32>
    %53 = vector.broadcast %50 : vector<1x32xf32> to vector<5x32xf32>
    %54 = arith.addf %52, %53 : vector<5x32xf32>
    %c0_34 = arith.constant 0 : index
    %c0_35 = arith.constant 0 : index
    %c0_36 = arith.constant 0 : index
    %55 = vector.load %arg11[%c0_34, %c0_35, %c0_36] : memref<1x32x32xbf16, #tpu.memory_space<vmem>>, vector<1x32x32xbf16>
    %56 = vector.shape_cast %55 : vector<1x32x32xbf16> to vector<32x32xbf16>
    %cst_37 = arith.constant 0.000000e+00 : f32
    %57 = vector.broadcast %cst_37 : f32 to vector<5x32xf32>
    %58 = vector.extract_strided_slice %38 {offsets = [0, 0], sizes = [5, 8], strides = [1, 1]} : vector<5x32xf32> to vector<5x8xf32>
    %59 = vector.extract_strided_slice %46 {offsets = [0, 0], sizes = [5, 8], strides = [1, 1]} : vector<5x32xf32> to vector<5x8xf32>
    %60 = arith.truncf %58 : vector<5x8xf32> to vector<5x8xbf16>
    %61 = arith.truncf %59 : vector<5x8xf32> to vector<5x8xbf16>
    %cst_38 = arith.constant dense<0.000000e+00> : vector<5x5xf32>
    %62 = tpu.matmul %60, %61, %cst_38 {dimension_numbers = #tpu.dot_dimension_numbers<[1], [1], [0], [0], [0, 0, 1, 0], [], []>} : vector<5x8xbf16>, vector<5x8xbf16>, vector<5x5xf32> -> vector<5x5xf32>
    %cst_39 = arith.constant 0.353553385 : f32
    %63 = vector.broadcast %cst_39 : f32 to vector<5x5xf32>
    %64 = arith.mulf %62, %63 : vector<5x5xf32>
    %cst_40 = arith.constant dense<0xFF800000> : vector<5xf32>
    %65 = vector.multi_reduction <maximumf>, %64, %cst_40 [1] : vector<5x5xf32> to vector<5xf32>
    %66 = vector.shape_cast %65 : vector<5xf32> to vector<5x1xf32>
    %67 = vector.broadcast %66 : vector<5x1xf32> to vector<5x5xf32>
    %68 = arith.subf %64, %67 : vector<5x5xf32>
    %69 = math.exp %68 : vector<5x5xf32>
    %cst_41 = arith.constant dense<0.000000e+00> : vector<5xf32>
    %70 = vector.multi_reduction <add>, %69, %cst_41 [1] : vector<5x5xf32> to vector<5xf32>
    %71 = vector.shape_cast %70 : vector<5xf32> to vector<5x1xf32>
    %72 = tpu.reciprocal %71 {approx = true} : vector<5x1xf32> -> vector<5x1xf32>
    %73 = vector.broadcast %72 : vector<5x1xf32> to vector<5x5xf32>
    %74 = arith.mulf %69, %73 : vector<5x5xf32>
    %75 = arith.truncf %74 : vector<5x5xf32> to vector<5x5xbf16>
    %76 = vector.extract_strided_slice %54 {offsets = [0, 0], sizes = [5, 8], strides = [1, 1]} : vector<5x32xf32> to vector<5x8xf32>
    %77 = arith.truncf %76 : vector<5x8xf32> to vector<5x8xbf16>
    %cst_42 = arith.constant dense<0.000000e+00> : vector<5x8xf32>
    %78 = tpu.matmul %75, %77, %cst_42 {dimension_numbers = #tpu.dot_dimension_numbers<[1], [0], [0], [1], [0, 0, 1, 1], [], []>} : vector<5x5xbf16>, vector<5x8xbf16>, vector<5x8xf32> -> vector<5x8xf32>
    %79 = arith.truncf %78 : vector<5x8xf32> to vector<5x8xbf16>
    %80 = vector.extract_strided_slice %56 {offsets = [0, 0], sizes = [8, 32], strides = [1, 1]} : vector<32x32xbf16> to vector<8x32xbf16>
    %cst_43 = arith.constant dense<0.000000e+00> : vector<5x32xf32>
    %81 = tpu.matmul %79, %80, %cst_43 {dimension_numbers = #tpu.dot_dimension_numbers<[1], [0], [0], [1], [0, 0, 1, 1], [], []>} : vector<5x8xbf16>, vector<8x32xbf16>, vector<5x32xf32> -> vector<5x32xf32>
    %82 = arith.addf %57, %81 : vector<5x32xf32>
    %83 = vector.extract_strided_slice %38 {offsets = [0, 8], sizes = [5, 8], strides = [1, 1]} : vector<5x32xf32> to vector<5x8xf32>
    %84 = vector.extract_strided_slice %46 {offsets = [0, 8], sizes = [5, 8], strides = [1, 1]} : vector<5x32xf32> to vector<5x8xf32>
    %85 = arith.truncf %83 : vector<5x8xf32> to vector<5x8xbf16>
    %86 = arith.truncf %84 : vector<5x8xf32> to vector<5x8xbf16>
    %cst_44 = arith.constant dense<0.000000e+00> : vector<5x5xf32>
    %87 = tpu.matmul %85, %86, %cst_44 {dimension_numbers = #tpu.dot_dimension_numbers<[1], [1], [0], [0], [0, 0, 1, 0], [], []>} : vector<5x8xbf16>, vector<5x8xbf16>, vector<5x5xf32> -> vector<5x5xf32>
    %cst_45 = arith.constant 0.353553385 : f32
    %88 = vector.broadcast %cst_45 : f32 to vector<5x5xf32>
    %89 = arith.mulf %87, %88 : vector<5x5xf32>
    %cst_46 = arith.constant dense<0xFF800000> : vector<5xf32>
    %90 = vector.multi_reduction <maximumf>, %89, %cst_46 [1] : vector<5x5xf32> to vector<5xf32>
    %91 = vector.shape_cast %90 : vector<5xf32> to vector<5x1xf32>
    %92 = vector.broadcast %91 : vector<5x1xf32> to vector<5x5xf32>
    %93 = arith.subf %89, %92 : vector<5x5xf32>
    %94 = math.exp %93 : vector<5x5xf32>
    %cst_47 = arith.constant dense<0.000000e+00> : vector<5xf32>
    %95 = vector.multi_reduction <add>, %94, %cst_47 [1] : vector<5x5xf32> to vector<5xf32>
    %96 = vector.shape_cast %95 : vector<5xf32> to vector<5x1xf32>
    %97 = tpu.reciprocal %96 {approx = true} : vector<5x1xf32> -> vector<5x1xf32>
    %98 = vector.broadcast %97 : vector<5x1xf32> to vector<5x5xf32>
    %99 = arith.mulf %94, %98 : vector<5x5xf32>
    %100 = arith.truncf %99 : vector<5x5xf32> to vector<5x5xbf16>
    %101 = vector.extract_strided_slice %54 {offsets = [0, 8], sizes = [5, 8], strides = [1, 1]} : vector<5x32xf32> to vector<5x8xf32>
    %102 = arith.truncf %101 : vector<5x8xf32> to vector<5x8xbf16>
    %cst_48 = arith.constant dense<0.000000e+00> : vector<5x8xf32>
    %103 = tpu.matmul %100, %102, %cst_48 {dimension_numbers = #tpu.dot_dimension_numbers<[1], [0], [0], [1], [0, 0, 1, 1], [], []>} : vector<5x5xbf16>, vector<5x8xbf16>, vector<5x8xf32> -> vector<5x8xf32>
    %104 = arith.truncf %103 : vector<5x8xf32> to vector<5x8xbf16>
    %105 = vector.extract_strided_slice %56 {offsets = [8, 0], sizes = [8, 32], strides = [1, 1]} : vector<32x32xbf16> to vector<8x32xbf16>
    %cst_49 = arith.constant dense<0.000000e+00> : vector<5x32xf32>
    %106 = tpu.matmul %104, %105, %cst_49 {dimension_numbers = #tpu.dot_dimension_numbers<[1], [0], [0], [1], [0, 0, 1, 1], [], []>} : vector<5x8xbf16>, vector<8x32xbf16>, vector<5x32xf32> -> vector<5x32xf32>
    %107 = arith.addf %82, %106 : vector<5x32xf32>
    %108 = vector.extract_strided_slice %38 {offsets = [0, 16], sizes = [5, 8], strides = [1, 1]} : vector<5x32xf32> to vector<5x8xf32>
    %109 = vector.extract_strided_slice %46 {offsets = [0, 16], sizes = [5, 8], strides = [1, 1]} : vector<5x32xf32> to vector<5x8xf32>
    %110 = arith.truncf %108 : vector<5x8xf32> to vector<5x8xbf16>
    %111 = arith.truncf %109 : vector<5x8xf32> to vector<5x8xbf16>
    %cst_50 = arith.constant dense<0.000000e+00> : vector<5x5xf32>
    %112 = tpu.matmul %110, %111, %cst_50 {dimension_numbers = #tpu.dot_dimension_numbers<[1], [1], [0], [0], [0, 0, 1, 0], [], []>} : vector<5x8xbf16>, vector<5x8xbf16>, vector<5x5xf32> -> vector<5x5xf32>
    %cst_51 = arith.constant 0.353553385 : f32
    %113 = vector.broadcast %cst_51 : f32 to vector<5x5xf32>
    %114 = arith.mulf %112, %113 : vector<5x5xf32>
    %cst_52 = arith.constant dense<0xFF800000> : vector<5xf32>
    %115 = vector.multi_reduction <maximumf>, %114, %cst_52 [1] : vector<5x5xf32> to vector<5xf32>
    %116 = vector.shape_cast %115 : vector<5xf32> to vector<5x1xf32>
    %117 = vector.broadcast %116 : vector<5x1xf32> to vector<5x5xf32>
    %118 = arith.subf %114, %117 : vector<5x5xf32>
    %119 = math.exp %118 : vector<5x5xf32>
    %cst_53 = arith.constant dense<0.000000e+00> : vector<5xf32>
    %120 = vector.multi_reduction <add>, %119, %cst_53 [1] : vector<5x5xf32> to vector<5xf32>
    %121 = vector.shape_cast %120 : vector<5xf32> to vector<5x1xf32>
    %122 = tpu.reciprocal %121 {approx = true} : vector<5x1xf32> -> vector<5x1xf32>
    %123 = vector.broadcast %122 : vector<5x1xf32> to vector<5x5xf32>
    %124 = arith.mulf %119, %123 : vector<5x5xf32>
    %125 = arith.truncf %124 : vector<5x5xf32> to vector<5x5xbf16>
    %126 = vector.extract_strided_slice %54 {offsets = [0, 16], sizes = [5, 8], strides = [1, 1]} : vector<5x32xf32> to vector<5x8xf32>
    %127 = arith.truncf %126 : vector<5x8xf32> to vector<5x8xbf16>
    %cst_54 = arith.constant dense<0.000000e+00> : vector<5x8xf32>
    %128 = tpu.matmul %125, %127, %cst_54 {dimension_numbers = #tpu.dot_dimension_numbers<[1], [0], [0], [1], [0, 0, 1, 1], [], []>} : vector<5x5xbf16>, vector<5x8xbf16>, vector<5x8xf32> -> vector<5x8xf32>
    %129 = arith.truncf %128 : vector<5x8xf32> to vector<5x8xbf16>
    %130 = vector.extract_strided_slice %56 {offsets = [16, 0], sizes = [8, 32], strides = [1, 1]} : vector<32x32xbf16> to vector<8x32xbf16>
    %cst_55 = arith.constant dense<0.000000e+00> : vector<5x32xf32>
    %131 = tpu.matmul %129, %130, %cst_55 {dimension_numbers = #tpu.dot_dimension_numbers<[1], [0], [0], [1], [0, 0, 1, 1], [], []>} : vector<5x8xbf16>, vector<8x32xbf16>, vector<5x32xf32> -> vector<5x32xf32>
    %132 = arith.addf %107, %131 : vector<5x32xf32>
    %133 = vector.extract_strided_slice %38 {offsets = [0, 24], sizes = [5, 8], strides = [1, 1]} : vector<5x32xf32> to vector<5x8xf32>
    %134 = vector.extract_strided_slice %46 {offsets = [0, 24], sizes = [5, 8], strides = [1, 1]} : vector<5x32xf32> to vector<5x8xf32>
    %135 = arith.truncf %133 : vector<5x8xf32> to vector<5x8xbf16>
    %136 = arith.truncf %134 : vector<5x8xf32> to vector<5x8xbf16>
    %cst_56 = arith.constant dense<0.000000e+00> : vector<5x5xf32>
    %137 = tpu.matmul %135, %136, %cst_56 {dimension_numbers = #tpu.dot_dimension_numbers<[1], [1], [0], [0], [0, 0, 1, 0], [], []>} : vector<5x8xbf16>, vector<5x8xbf16>, vector<5x5xf32> -> vector<5x5xf32>
    %cst_57 = arith.constant 0.353553385 : f32
    %138 = vector.broadcast %cst_57 : f32 to vector<5x5xf32>
    %139 = arith.mulf %137, %138 : vector<5x5xf32>
    %cst_58 = arith.constant dense<0xFF800000> : vector<5xf32>
    %140 = vector.multi_reduction <maximumf>, %139, %cst_58 [1] : vector<5x5xf32> to vector<5xf32>
    %141 = vector.shape_cast %140 : vector<5xf32> to vector<5x1xf32>
    %142 = vector.broadcast %141 : vector<5x1xf32> to vector<5x5xf32>
    %143 = arith.subf %139, %142 : vector<5x5xf32>
    %144 = math.exp %143 : vector<5x5xf32>
    %cst_59 = arith.constant dense<0.000000e+00> : vector<5xf32>
    %145 = vector.multi_reduction <add>, %144, %cst_59 [1] : vector<5x5xf32> to vector<5xf32>
    %146 = vector.shape_cast %145 : vector<5xf32> to vector<5x1xf32>
    %147 = tpu.reciprocal %146 {approx = true} : vector<5x1xf32> -> vector<5x1xf32>
    %148 = vector.broadcast %147 : vector<5x1xf32> to vector<5x5xf32>
    %149 = arith.mulf %144, %148 : vector<5x5xf32>
    %150 = arith.truncf %149 : vector<5x5xf32> to vector<5x5xbf16>
    %151 = vector.extract_strided_slice %54 {offsets = [0, 24], sizes = [5, 8], strides = [1, 1]} : vector<5x32xf32> to vector<5x8xf32>
    %152 = arith.truncf %151 : vector<5x8xf32> to vector<5x8xbf16>
    %cst_60 = arith.constant dense<0.000000e+00> : vector<5x8xf32>
    %153 = tpu.matmul %150, %152, %cst_60 {dimension_numbers = #tpu.dot_dimension_numbers<[1], [0], [0], [1], [0, 0, 1, 1], [], []>} : vector<5x5xbf16>, vector<5x8xbf16>, vector<5x8xf32> -> vector<5x8xf32>
    %154 = arith.truncf %153 : vector<5x8xf32> to vector<5x8xbf16>
    %155 = vector.extract_strided_slice %56 {offsets = [24, 0], sizes = [8, 32], strides = [1, 1]} : vector<32x32xbf16> to vector<8x32xbf16>
    %cst_61 = arith.constant dense<0.000000e+00> : vector<5x32xf32>
    %156 = tpu.matmul %154, %155, %cst_61 {dimension_numbers = #tpu.dot_dimension_numbers<[1], [0], [0], [1], [0, 0, 1, 1], [], []>} : vector<5x8xbf16>, vector<8x32xbf16>, vector<5x32xf32> -> vector<5x32xf32>
    %157 = arith.addf %132, %156 : vector<5x32xf32>
    %158 = arith.addf %4, %157 : vector<5x32xf32>
    %c0_62 = arith.constant 0 : index
    %c0_63 = arith.constant 0 : index
    %c0_64 = arith.constant 0 : index
    %159 = vector.load %arg12[%c0_62, %c0_63, %c0_64] : memref<1x1x32xf32, #tpu.memory_space<vmem>>, vector<1x1x32xf32>
    %160 = vector.shape_cast %159 : vector<1x1x32xf32> to vector<1x32xf32>
    %161 = vector.broadcast %160 : vector<1x32xf32> to vector<5x32xf32>
    %162 = arith.addf %158, %161 : vector<5x32xf32>
    %c0_65 = arith.constant 0 : index
    %c0_66 = arith.constant 0 : index
    %c0_67 = arith.constant 0 : index
    %163 = vector.load %arg13[%c0_65, %c0_66, %c0_67] : memref<1x1x32xf32, #tpu.memory_space<vmem>>, vector<1x1x32xf32>
    %164 = vector.shape_cast %163 : vector<1x1x32xf32> to vector<1x32xf32>
    %c0_68 = arith.constant 0 : index
    %c0_69 = arith.constant 0 : index
    %c0_70 = arith.constant 0 : index
    %165 = vector.load %arg14[%c0_68, %c0_69, %c0_70] : memref<1x1x32xf32, #tpu.memory_space<vmem>>, vector<1x1x32xf32>
    %166 = vector.shape_cast %165 : vector<1x1x32xf32> to vector<1x32xf32>
    %cst_71 = arith.constant dense<0.000000e+00> : vector<5xf32>
    %167 = vector.multi_reduction <add>, %162, %cst_71 [1] : vector<5x32xf32> to vector<5xf32>
    %168 = vector.shape_cast %167 : vector<5xf32> to vector<5x1xf32>
    %cst_72 = arith.constant 3.200000e+01 : f32
    %169 = vector.broadcast %cst_72 : f32 to vector<5x1xf32>
    %170 = arith.divf %168, %169 : vector<5x1xf32>
    %171 = vector.broadcast %170 : vector<5x1xf32> to vector<5x32xf32>
    %172 = arith.subf %162, %171 : vector<5x32xf32>
    %173 = arith.mulf %172, %172 : vector<5x32xf32>
    %cst_73 = arith.constant dense<0.000000e+00> : vector<5xf32>
    %174 = vector.multi_reduction <add>, %173, %cst_73 [1] : vector<5x32xf32> to vector<5xf32>
    %175 = vector.shape_cast %174 : vector<5xf32> to vector<5x1xf32>
    %cst_74 = arith.constant 3.200000e+01 : f32
    %176 = vector.broadcast %cst_74 : f32 to vector<5x1xf32>
    %177 = arith.divf %175, %176 : vector<5x1xf32>
    %178 = vector.broadcast %170 : vector<5x1xf32> to vector<5x32xf32>
    %179 = arith.subf %162, %178 : vector<5x32xf32>
    %cst_75 = arith.constant 9.99999996E-13 : f32
    %180 = vector.broadcast %cst_75 : f32 to vector<5x1xf32>
    %181 = arith.addf %177, %180 : vector<5x1xf32>
    %182 = math.rsqrt %181 : vector<5x1xf32>
    %183 = vector.broadcast %182 : vector<5x1xf32> to vector<5x32xf32>
    %184 = arith.mulf %179, %183 : vector<5x32xf32>
    %185 = vector.broadcast %164 : vector<1x32xf32> to vector<5x32xf32>
    %186 = arith.mulf %184, %185 : vector<5x32xf32>
    %187 = vector.broadcast %166 : vector<1x32xf32> to vector<5x32xf32>
    %188 = arith.addf %186, %187 : vector<5x32xf32>
    %c0_76 = arith.constant 0 : index
    %c0_77 = arith.constant 0 : index
    %c0_78 = arith.constant 0 : index
    %189 = vector.load %arg15[%c0_76, %c0_77, %c0_78] : memref<1x32x64xbf16, #tpu.memory_space<vmem>>, vector<1x32x64xbf16>
    %190 = vector.shape_cast %189 : vector<1x32x64xbf16> to vector<32x64xbf16>
    %c0_79 = arith.constant 0 : index
    %c0_80 = arith.constant 0 : index
    %c0_81 = arith.constant 0 : index
    %191 = vector.load %arg16[%c0_79, %c0_80, %c0_81] : memref<1x1x64xf32, #tpu.memory_space<vmem>>, vector<1x1x64xf32>
    %192 = vector.shape_cast %191 : vector<1x1x64xf32> to vector<1x64xf32>
    %193 = arith.truncf %188 : vector<5x32xf32> to vector<5x32xbf16>
    %cst_82 = arith.constant dense<0.000000e+00> : vector<5x64xf32>
    %194 = tpu.matmul %193, %190, %cst_82 {dimension_numbers = #tpu.dot_dimension_numbers<[1], [0], [0], [1], [0, 0, 1, 1], [], []>} : vector<5x32xbf16>, vector<32x64xbf16>, vector<5x64xf32> -> vector<5x64xf32>
    %195 = vector.broadcast %192 : vector<1x64xf32> to vector<5x64xf32>
    %196 = arith.addf %194, %195 : vector<5x64xf32>
    %197 = arith.mulf %196, %196 : vector<5x64xf32>
    %198 = arith.mulf %196, %197 : vector<5x64xf32>
    %cst_83 = arith.constant 4.471500e-02 : f32
    %199 = vector.broadcast %cst_83 : f32 to vector<5x64xf32>
    %200 = arith.mulf %199, %198 : vector<5x64xf32>
    %201 = arith.addf %196, %200 : vector<5x64xf32>
    %cst_84 = arith.constant 0.797884583 : f32
    %202 = vector.broadcast %cst_84 : f32 to vector<5x64xf32>
    %203 = arith.mulf %202, %201 : vector<5x64xf32>
    %204 = math.tanh %203 : vector<5x64xf32>
    %cst_85 = arith.constant 1.000000e+00 : f32
    %205 = vector.broadcast %cst_85 : f32 to vector<5x64xf32>
    %206 = arith.addf %205, %204 : vector<5x64xf32>
    %cst_86 = arith.constant 5.000000e-01 : f32
    %207 = vector.broadcast %cst_86 : f32 to vector<5x64xf32>
    %208 = arith.mulf %207, %206 : vector<5x64xf32>
    %209 = arith.mulf %196, %208 : vector<5x64xf32>
    %c0_87 = arith.constant 0 : index
    %c0_88 = arith.constant 0 : index
    %c0_89 = arith.constant 0 : index
    %210 = vector.load %arg17[%c0_87, %c0_88, %c0_89] : memref<1x64x32xbf16, #tpu.memory_space<vmem>>, vector<1x64x32xbf16>
    %211 = vector.shape_cast %210 : vector<1x64x32xbf16> to vector<64x32xbf16>
    %c0_90 = arith.constant 0 : index
    %c0_91 = arith.constant 0 : index
    %c0_92 = arith.constant 0 : index
    %212 = vector.load %arg18[%c0_90, %c0_91, %c0_92] : memref<1x1x32xf32, #tpu.memory_space<vmem>>, vector<1x1x32xf32>
    %213 = vector.shape_cast %212 : vector<1x1x32xf32> to vector<1x32xf32>
    %214 = arith.truncf %209 : vector<5x64xf32> to vector<5x64xbf16>
    %cst_93 = arith.constant dense<0.000000e+00> : vector<5x32xf32>
    %215 = tpu.matmul %214, %211, %cst_93 {dimension_numbers = #tpu.dot_dimension_numbers<[1], [0], [0], [1], [0, 0, 1, 1], [], []>} : vector<5x64xbf16>, vector<64x32xbf16>, vector<5x32xf32> -> vector<5x32xf32>
    %216 = vector.broadcast %213 : vector<1x32xf32> to vector<5x32xf32>
    %217 = arith.addf %215, %216 : vector<5x32xf32>
    %218 = arith.addf %162, %217 : vector<5x32xf32>
    %c0_94 = arith.constant 0 : index
    %c0_95 = arith.constant 0 : index
    %c0_96 = arith.constant 0 : index
    %219 = vector.load %arg19[%c0_94, %c0_95, %c0_96] : memref<1x5x32xf32, #tpu.memory_space<vmem>>, vector<1x5x32xf32>
    %220 = vector.shape_cast %219 : vector<1x5x32xf32> to vector<5x32xf32>
    %221 = vector.shape_cast %218 : vector<5x32xf32> to vector<1x5x32xf32>
    tpu.vector_store %arg19[%c0_94, %c0_95, %c0_96], %221 {strides = array<i32>} : memref<1x5x32xf32, #tpu.memory_space<vmem>>, vector<1x5x32xf32>,
    return
  }
  func.func @transform_0(%arg0: i32, %arg1: i32) -> (i32, i32, i32) {
    %c0_i32 = arith.constant 0 : i32
    %c0_i32_0 = arith.constant 0 : i32
    %c0_i32_1 = arith.constant 0 : i32
    return %arg0, %c0_i32, %c0_i32_0 : i32, i32, i32
  }
  func.func @transform_1(%arg0: i32, %arg1: i32) -> (i32, i32, i32) {
    %c0_i32 = arith.constant 0 : i32
    %0 = arith.addi %arg1, %c0_i32 : i32
    %c0_i32_0 = arith.constant 0 : i32
    %c0_i32_1 = arith.constant 0 : i32
    %c0_i32_2 = arith.constant 0 : i32
    return %0, %c0_i32_0, %c0_i32_1 : i32, i32, i32
  }
  func.func @transform_2(%arg0: i32, %arg1: i32) -> (i32, i32, i32) {
    %c0_i32 = arith.constant 0 : i32
    %0 = arith.addi %arg1, %c0_i32 : i32
    %c0_i32_0 = arith.constant 0 : i32
    %c0_i32_1 = arith.constant 0 : i32
    %c0_i32_2 = arith.constant 0 : i32
    return %0, %c0_i32_0, %c0_i32_1 : i32, i32, i32
  }
  func.func @transform_3(%arg0: i32, %arg1: i32) -> (i32, i32, i32) {
    %c0_i32 = arith.constant 0 : i32
    %0 = arith.addi %arg1, %c0_i32 : i32
    %c0_i32_0 = arith.constant 0 : i32
    %c0_i32_1 = arith.constant 0 : i32
    %c0_i32_2 = arith.constant 0 : i32
    return %0, %c0_i32_0, %c0_i32_1 : i32, i32, i32
  }
  func.func @transform_4(%arg0: i32, %arg1: i32) -> (i32, i32, i32) {
    %c0_i32 = arith.constant 0 : i32
    %0 = arith.addi %arg1, %c0_i32 : i32
    %c0_i32_0 = arith.constant 0 : i32
    %c0_i32_1 = arith.constant 0 : i32
    %c0_i32_2 = arith.constant 0 : i32
    return %0, %c0_i32_0, %c0_i32_1 : i32, i32, i32
  }
  func.func @transform_5(%arg0: i32, %arg1: i32) -> (i32, i32, i32) {
    %c0_i32 = arith.constant 0 : i32
    %0 = arith.addi %arg1, %c0_i32 : i32
    %c0_i32_0 = arith.constant 0 : i32
    %c0_i32_1 = arith.constant 0 : i32
    %c0_i32_2 = arith.constant 0 : i32
    return %0, %c0_i32_0, %c0_i32_1 : i32, i32, i32
  }
  func.func @transform_6(%arg0: i32, %arg1: i32) -> (i32, i32, i32) {
    %c0_i32 = arith.constant 0 : i32
    %0 = arith.addi %arg1, %c0_i32 : i32
    %c0_i32_0 = arith.constant 0 : i32
    %c0_i32_1 = arith.constant 0 : i32
    %c0_i32_2 = arith.constant 0 : i32
    return %0, %c0_i32_0, %c0_i32_1 : i32, i32, i32
  }
  func.func @transform_7(%arg0: i32, %arg1: i32) -> (i32, i32, i32) {
    %c0_i32 = arith.constant 0 : i32
    %0 = arith.addi %arg1, %c0_i32 : i32
    %c0_i32_0 = arith.constant 0 : i32
    %c0_i32_1 = arith.constant 0 : i32
    %c0_i32_2 = arith.constant 0 : i32
    return %0, %c0_i32_0, %c0_i32_1 : i32, i32, i32
  }
  func.func @transform_8(%arg0: i32, %arg1: i32) -> (i32, i32, i32) {
    %c0_i32 = arith.constant 0 : i32
    %0 = arith.addi %arg1, %c0_i32 : i32
    %c0_i32_0 = arith.constant 0 : i32
    %c0_i32_1 = arith.constant 0 : i32
    %c0_i32_2 = arith.constant 0 : i32
    return %0, %c0_i32_0, %c0_i32_1 : i32, i32, i32
  }
  func.func @transform_9(%arg0: i32, %arg1: i32) -> (i32, i32, i32) {
    %c0_i32 = arith.constant 0 : i32
    %0 = arith.addi %arg1, %c0_i32 : i32
    %c0_i32_0 = arith.constant 0 : i32
    %c0_i32_1 = arith.constant 0 : i32
    %c0_i32_2 = arith.constant 0 : i32
    return %0, %c0_i32_0, %c0_i32_1 : i32, i32, i32
  }
  func.func @transform_10(%arg0: i32, %arg1: i32) -> (i32, i32, i32) {
    %c0_i32 = arith.constant 0 : i32
    %0 = arith.addi %arg1, %c0_i32 : i32
    %c0_i32_0 = arith.constant 0 : i32
    %c0_i32_1 = arith.constant 0 : i32
    %c0_i32_2 = arith.constant 0 : i32
    return %0, %c0_i32_0, %c0_i32_1 : i32, i32, i32
  }
  func.func @transform_11(%arg0: i32, %arg1: i32) -> (i32, i32, i32) {
    %c0_i32 = arith.constant 0 : i32
    %0 = arith.addi %arg1, %c0_i32 : i32
    %c0_i32_0 = arith.constant 0 : i32
    %c0_i32_1 = arith.constant 0 : i32
    %c0_i32_2 = arith.constant 0 : i32
    return %0, %c0_i32_0, %c0_i32_1 : i32, i32, i32
  }
  func.func @transform_12(%arg0: i32, %arg1: i32) -> (i32, i32, i32) {
    %c0_i32 = arith.constant 0 : i32
    %0 = arith.addi %arg1, %c0_i32 : i32
    %c0_i32_0 = arith.constant 0 : i32
    %c0_i32_1 = arith.constant 0 : i32
    %c0_i32_2 = arith.constant 0 : i32
    return %0, %c0_i32_0, %c0_i32_1 : i32, i32, i32
  }
  func.func @transform_13(%arg0: i32, %arg1: i32) -> (i32, i32, i32) {
    %c0_i32 = arith.constant 0 : i32
    %0 = arith.addi %arg1, %c0_i32 : i32
    %c0_i32_0 = arith.constant 0 : i32
    %c0_i32_1 = arith.constant 0 : i32
    %c0_i32_2 = arith.constant 0 : i32
    return %0, %c0_i32_0, %c0_i32_1 : i32, i32, i32
  }
  func.func @transform_14(%arg0: i32, %arg1: i32) -> (i32, i32, i32) {
    %c0_i32 = arith.constant 0 : i32
    %0 = arith.addi %arg1, %c0_i32 : i32
    %c0_i32_0 = arith.constant 0 : i32
    %c0_i32_1 = arith.constant 0 : i32
    %c0_i32_2 = arith.constant 0 : i32
    return %0, %c0_i32_0, %c0_i32_1 : i32, i32, i32
  }
  func.func @transform_15(%arg0: i32, %arg1: i32) -> (i32, i32, i32) {
    %c0_i32 = arith.constant 0 : i32
    %0 = arith.addi %arg1, %c0_i32 : i32
    %c0_i32_0 = arith.constant 0 : i32
    %c0_i32_1 = arith.constant 0 : i32
    %c0_i32_2 = arith.constant 0 : i32
    return %0, %c0_i32_0, %c0_i32_1 : i32, i32, i32
  }
  func.func @transform_16(%arg0: i32, %arg1: i32) -> (i32, i32, i32) {
    %c0_i32 = arith.constant 0 : i32
    %0 = arith.addi %arg1, %c0_i32 : i32
    %c0_i32_0 = arith.constant 0 : i32
    %c0_i32_1 = arith.constant 0 : i32
    %c0_i32_2 = arith.constant 0 : i32
    return %0, %c0_i32_0, %c0_i32_1 : i32, i32, i32
  }
  func.func @transform_17(%arg0: i32, %arg1: i32) -> (i32, i32, i32) {
    %c0_i32 = arith.constant 0 : i32
    %c0_i32_0 = arith.constant 0 : i32
    %c0_i32_1 = arith.constant 0 : i32
    return %arg0, %c0_i32, %c0_i32_0 : i32, i32, i32
  }
}

module attributes {stable_mosaic.version = 11 : i64} {
  func.func @_cls_score_kernel(%arg0: i32, %arg1: memref<1x5x32xf32, #tpu.memory_space<vmem>>, %arg2: memref<32x32xbf16, #tpu.memory_space<vmem>>, %arg3: memref<1x32xf32, #tpu.memory_space<vmem>>, %arg4: memref<32x32xbf16, #tpu.memory_space<vmem>>, %arg5: memref<1x32xf32, #tpu.memory_space<vmem>>, %arg6: memref<1x1x5xf32, #tpu.memory_space<vmem>>) attributes {dimension_semantics = [#tpu.dimension_semantics<parallel>], iteration_bounds = array<i64: 2>, scalar_prefetch = 0 : i64, scratch_operands = 0 : i64, tpu.core_type = #tpu.core_type<tc>, window_params = [{transform_indices = @transform_0, window_bounds = array<i64: 1, 5, 32>}, {pipeline_mode = #tpu.pipeline_mode<synchronous>, transform_indices = @transform_1, window_bounds = array<i64: 32, 32>}, {pipeline_mode = #tpu.pipeline_mode<synchronous>, transform_indices = @transform_2, window_bounds = array<i64: 1, 32>}, {pipeline_mode = #tpu.pipeline_mode<synchronous>, transform_indices = @transform_3, window_bounds = array<i64: 32, 32>}, {pipeline_mode = #tpu.pipeline_mode<synchronous>, transform_indices = @transform_4, window_bounds = array<i64: 1, 32>}, {transform_indices = @transform_5, window_bounds = array<i64: 1, 1, 5>}]} {
    %c0 = arith.constant 0 : index
    %c0_0 = arith.constant 0 : index
    %c0_1 = arith.constant 0 : index
    %0 = vector.load %arg1[%c0, %c0_0, %c0_1] : memref<1x5x32xf32, #tpu.memory_space<vmem>>, vector<1x5x32xf32>
    %1 = vector.shape_cast %0 : vector<1x5x32xf32> to vector<5x32xf32>
    %2 = vector.extract_strided_slice %1 {offsets = [0, 0], sizes = [1, 32], strides = [1, 1]} : vector<5x32xf32> to vector<1x32xf32>
    %c0_2 = arith.constant 0 : index
    %c0_3 = arith.constant 0 : index
    %3 = vector.load %arg2[%c0_2, %c0_3] : memref<32x32xbf16, #tpu.memory_space<vmem>>, vector<32x32xbf16>
    %c0_4 = arith.constant 0 : index
    %c0_5 = arith.constant 0 : index
    %4 = vector.load %arg3[%c0_4, %c0_5] : memref<1x32xf32, #tpu.memory_space<vmem>>, vector<1x32xf32>
    %5 = arith.truncf %2 : vector<1x32xf32> to vector<1x32xbf16>
    %cst = arith.constant dense<0.000000e+00> : vector<1x32xf32>
    %6 = tpu.matmul %5, %3, %cst {dimension_numbers = #tpu.dot_dimension_numbers<[1], [0], [0], [1], [0, 0, 1, 1], [], []>} : vector<1x32xbf16>, vector<32x32xbf16>, vector<1x32xf32> -> vector<1x32xf32>
    %7 = arith.addf %6, %4 : vector<1x32xf32>
    %c0_6 = arith.constant 0 : index
    %c0_7 = arith.constant 0 : index
    %8 = vector.load %arg4[%c0_6, %c0_7] : memref<32x32xbf16, #tpu.memory_space<vmem>>, vector<32x32xbf16>
    %c0_8 = arith.constant 0 : index
    %c0_9 = arith.constant 0 : index
    %9 = vector.load %arg5[%c0_8, %c0_9] : memref<1x32xf32, #tpu.memory_space<vmem>>, vector<1x32xf32>
    %10 = arith.truncf %1 : vector<5x32xf32> to vector<5x32xbf16>
    %cst_10 = arith.constant dense<0.000000e+00> : vector<5x32xf32>
    %11 = tpu.matmul %10, %8, %cst_10 {dimension_numbers = #tpu.dot_dimension_numbers<[1], [0], [0], [1], [0, 0, 1, 1], [], []>} : vector<5x32xbf16>, vector<32x32xbf16>, vector<5x32xf32> -> vector<5x32xf32>
    %12 = vector.broadcast %9 : vector<1x32xf32> to vector<5x32xf32>
    %13 = arith.addf %11, %12 : vector<5x32xf32>
    %cst_11 = arith.constant 0.000000e+00 : f32
    %14 = vector.broadcast %cst_11 : f32 to vector<1x5xf32>
    %15 = vector.extract_strided_slice %7 {offsets = [0, 0], sizes = [1, 8], strides = [1, 1]} : vector<1x32xf32> to vector<1x8xf32>
    %16 = vector.extract_strided_slice %13 {offsets = [0, 0], sizes = [5, 8], strides = [1, 1]} : vector<5x32xf32> to vector<5x8xf32>
    %17 = arith.truncf %15 : vector<1x8xf32> to vector<1x8xbf16>
    %18 = arith.truncf %16 : vector<5x8xf32> to vector<5x8xbf16>
    %cst_12 = arith.constant dense<0.000000e+00> : vector<1x5xf32>
    %19 = tpu.matmul %17, %18, %cst_12 {dimension_numbers = #tpu.dot_dimension_numbers<[1], [1], [0], [0], [0, 0, 1, 0], [], []>} : vector<1x8xbf16>, vector<5x8xbf16>, vector<1x5xf32> -> vector<1x5xf32>
    %cst_13 = arith.constant 0.353553385 : f32
    %20 = vector.broadcast %cst_13 : f32 to vector<1x5xf32>
    %21 = arith.mulf %19, %20 : vector<1x5xf32>
    %cst_14 = arith.constant dense<0xFF800000> : vector<1xf32>
    %22 = vector.multi_reduction <maximumf>, %21, %cst_14 [1] : vector<1x5xf32> to vector<1xf32>
    %23 = vector.shape_cast %22 : vector<1xf32> to vector<1x1xf32>
    %24 = vector.broadcast %23 : vector<1x1xf32> to vector<1x5xf32>
    %25 = arith.subf %21, %24 : vector<1x5xf32>
    %26 = math.exp %25 : vector<1x5xf32>
    %cst_15 = arith.constant dense<0.000000e+00> : vector<1xf32>
    %27 = vector.multi_reduction <add>, %26, %cst_15 [1] : vector<1x5xf32> to vector<1xf32>
    %28 = vector.shape_cast %27 : vector<1xf32> to vector<1x1xf32>
    %29 = tpu.reciprocal %28 {approx = true} : vector<1x1xf32> -> vector<1x1xf32>
    %30 = vector.broadcast %29 : vector<1x1xf32> to vector<1x5xf32>
    %31 = arith.mulf %26, %30 : vector<1x5xf32>
    %32 = arith.addf %14, %31 : vector<1x5xf32>
    %33 = vector.extract_strided_slice %7 {offsets = [0, 8], sizes = [1, 8], strides = [1, 1]} : vector<1x32xf32> to vector<1x8xf32>
    %34 = vector.extract_strided_slice %13 {offsets = [0, 8], sizes = [5, 8], strides = [1, 1]} : vector<5x32xf32> to vector<5x8xf32>
    %35 = arith.truncf %33 : vector<1x8xf32> to vector<1x8xbf16>
    %36 = arith.truncf %34 : vector<5x8xf32> to vector<5x8xbf16>
    %cst_16 = arith.constant dense<0.000000e+00> : vector<1x5xf32>
    %37 = tpu.matmul %35, %36, %cst_16 {dimension_numbers = #tpu.dot_dimension_numbers<[1], [1], [0], [0], [0, 0, 1, 0], [], []>} : vector<1x8xbf16>, vector<5x8xbf16>, vector<1x5xf32> -> vector<1x5xf32>
    %cst_17 = arith.constant 0.353553385 : f32
    %38 = vector.broadcast %cst_17 : f32 to vector<1x5xf32>
    %39 = arith.mulf %37, %38 : vector<1x5xf32>
    %cst_18 = arith.constant dense<0xFF800000> : vector<1xf32>
    %40 = vector.multi_reduction <maximumf>, %39, %cst_18 [1] : vector<1x5xf32> to vector<1xf32>
    %41 = vector.shape_cast %40 : vector<1xf32> to vector<1x1xf32>
    %42 = vector.broadcast %41 : vector<1x1xf32> to vector<1x5xf32>
    %43 = arith.subf %39, %42 : vector<1x5xf32>
    %44 = math.exp %43 : vector<1x5xf32>
    %cst_19 = arith.constant dense<0.000000e+00> : vector<1xf32>
    %45 = vector.multi_reduction <add>, %44, %cst_19 [1] : vector<1x5xf32> to vector<1xf32>
    %46 = vector.shape_cast %45 : vector<1xf32> to vector<1x1xf32>
    %47 = tpu.reciprocal %46 {approx = true} : vector<1x1xf32> -> vector<1x1xf32>
    %48 = vector.broadcast %47 : vector<1x1xf32> to vector<1x5xf32>
    %49 = arith.mulf %44, %48 : vector<1x5xf32>
    %50 = arith.addf %32, %49 : vector<1x5xf32>
    %51 = vector.extract_strided_slice %7 {offsets = [0, 16], sizes = [1, 8], strides = [1, 1]} : vector<1x32xf32> to vector<1x8xf32>
    %52 = vector.extract_strided_slice %13 {offsets = [0, 16], sizes = [5, 8], strides = [1, 1]} : vector<5x32xf32> to vector<5x8xf32>
    %53 = arith.truncf %51 : vector<1x8xf32> to vector<1x8xbf16>
    %54 = arith.truncf %52 : vector<5x8xf32> to vector<5x8xbf16>
    %cst_20 = arith.constant dense<0.000000e+00> : vector<1x5xf32>
    %55 = tpu.matmul %53, %54, %cst_20 {dimension_numbers = #tpu.dot_dimension_numbers<[1], [1], [0], [0], [0, 0, 1, 0], [], []>} : vector<1x8xbf16>, vector<5x8xbf16>, vector<1x5xf32> -> vector<1x5xf32>
    %cst_21 = arith.constant 0.353553385 : f32
    %56 = vector.broadcast %cst_21 : f32 to vector<1x5xf32>
    %57 = arith.mulf %55, %56 : vector<1x5xf32>
    %cst_22 = arith.constant dense<0xFF800000> : vector<1xf32>
    %58 = vector.multi_reduction <maximumf>, %57, %cst_22 [1] : vector<1x5xf32> to vector<1xf32>
    %59 = vector.shape_cast %58 : vector<1xf32> to vector<1x1xf32>
    %60 = vector.broadcast %59 : vector<1x1xf32> to vector<1x5xf32>
    %61 = arith.subf %57, %60 : vector<1x5xf32>
    %62 = math.exp %61 : vector<1x5xf32>
    %cst_23 = arith.constant dense<0.000000e+00> : vector<1xf32>
    %63 = vector.multi_reduction <add>, %62, %cst_23 [1] : vector<1x5xf32> to vector<1xf32>
    %64 = vector.shape_cast %63 : vector<1xf32> to vector<1x1xf32>
    %65 = tpu.reciprocal %64 {approx = true} : vector<1x1xf32> -> vector<1x1xf32>
    %66 = vector.broadcast %65 : vector<1x1xf32> to vector<1x5xf32>
    %67 = arith.mulf %62, %66 : vector<1x5xf32>
    %68 = arith.addf %50, %67 : vector<1x5xf32>
    %69 = vector.extract_strided_slice %7 {offsets = [0, 24], sizes = [1, 8], strides = [1, 1]} : vector<1x32xf32> to vector<1x8xf32>
    %70 = vector.extract_strided_slice %13 {offsets = [0, 24], sizes = [5, 8], strides = [1, 1]} : vector<5x32xf32> to vector<5x8xf32>
    %71 = arith.truncf %69 : vector<1x8xf32> to vector<1x8xbf16>
    %72 = arith.truncf %70 : vector<5x8xf32> to vector<5x8xbf16>
    %cst_24 = arith.constant dense<0.000000e+00> : vector<1x5xf32>
    %73 = tpu.matmul %71, %72, %cst_24 {dimension_numbers = #tpu.dot_dimension_numbers<[1], [1], [0], [0], [0, 0, 1, 0], [], []>} : vector<1x8xbf16>, vector<5x8xbf16>, vector<1x5xf32> -> vector<1x5xf32>
    %cst_25 = arith.constant 0.353553385 : f32
    %74 = vector.broadcast %cst_25 : f32 to vector<1x5xf32>
    %75 = arith.mulf %73, %74 : vector<1x5xf32>
    %cst_26 = arith.constant dense<0xFF800000> : vector<1xf32>
    %76 = vector.multi_reduction <maximumf>, %75, %cst_26 [1] : vector<1x5xf32> to vector<1xf32>
    %77 = vector.shape_cast %76 : vector<1xf32> to vector<1x1xf32>
    %78 = vector.broadcast %77 : vector<1x1xf32> to vector<1x5xf32>
    %79 = arith.subf %75, %78 : vector<1x5xf32>
    %80 = math.exp %79 : vector<1x5xf32>
    %cst_27 = arith.constant dense<0.000000e+00> : vector<1xf32>
    %81 = vector.multi_reduction <add>, %80, %cst_27 [1] : vector<1x5xf32> to vector<1xf32>
    %82 = vector.shape_cast %81 : vector<1xf32> to vector<1x1xf32>
    %83 = tpu.reciprocal %82 {approx = true} : vector<1x1xf32> -> vector<1x1xf32>
    %84 = vector.broadcast %83 : vector<1x1xf32> to vector<1x5xf32>
    %85 = arith.mulf %80, %84 : vector<1x5xf32>
    %86 = arith.addf %68, %85 : vector<1x5xf32>
    %cst_28 = arith.constant 2.500000e-01 : f32
    %87 = vector.broadcast %cst_28 : f32 to vector<1x5xf32>
    %88 = arith.mulf %86, %87 : vector<1x5xf32>
    %c0_29 = arith.constant 0 : index
    %c0_30 = arith.constant 0 : index
    %c0_31 = arith.constant 0 : index
    %89 = vector.load %arg6[%c0_29, %c0_30, %c0_31] : memref<1x1x5xf32, #tpu.memory_space<vmem>>, vector<1x1x5xf32>
    %90 = vector.shape_cast %89 : vector<1x1x5xf32> to vector<1x5xf32>
    %91 = vector.shape_cast %88 : vector<1x5xf32> to vector<1x1x5xf32>
    tpu.vector_store %arg6[%c0_29, %c0_30, %c0_31], %91 {strides = array<i32>} : memref<1x1x5xf32, #tpu.memory_space<vmem>>, vector<1x1x5xf32>,
    return
  }
  func.func @transform_0(%arg0: i32) -> (i32, i32, i32) {
    %c0_i32 = arith.constant 0 : i32
    %c0_i32_0 = arith.constant 0 : i32
    %c0_i32_1 = arith.constant 0 : i32
    return %arg0, %c0_i32, %c0_i32_0 : i32, i32, i32
  }
  func.func @transform_1(%arg0: i32) -> (i32, i32) {
    %c0_i32 = arith.constant 0 : i32
    %c0_i32_0 = arith.constant 0 : i32
    %c0_i32_1 = arith.constant 0 : i32
    return %c0_i32, %c0_i32_0 : i32, i32
  }
  func.func @transform_2(%arg0: i32) -> (i32, i32) {
    %c0_i32 = arith.constant 0 : i32
    %c0_i32_0 = arith.constant 0 : i32
    %c0_i32_1 = arith.constant 0 : i32
    return %c0_i32, %c0_i32_0 : i32, i32
  }
  func.func @transform_3(%arg0: i32) -> (i32, i32) {
    %c0_i32 = arith.constant 0 : i32
    %c0_i32_0 = arith.constant 0 : i32
    %c0_i32_1 = arith.constant 0 : i32
    return %c0_i32, %c0_i32_0 : i32, i32
  }
  func.func @transform_4(%arg0: i32) -> (i32, i32) {
    %c0_i32 = arith.constant 0 : i32
    %c0_i32_0 = arith.constant 0 : i32
    %c0_i32_1 = arith.constant 0 : i32
    return %c0_i32, %c0_i32_0 : i32, i32
  }
  func.func @transform_5(%arg0: i32) -> (i32, i32, i32) {
    %c0_i32 = arith.constant 0 : i32
    %c0_i32_0 = arith.constant 0 : i32
    %c0_i32_1 = arith.constant 0 : i32
    return %arg0, %c0_i32, %c0_i32_0 : i32, i32, i32
  }
}

module attributes {stable_mosaic.version = 11 : i64} {
  func.func @_encoder_stack_kernel(%arg0: i32, %arg1: i32, %arg2: memref<1x3x32xf32, #tpu.memory_space<vmem>>, %arg3: memref<1x1x32xf32, #tpu.memory_space<vmem>>, %arg4: memref<1x1x32xf32, #tpu.memory_space<vmem>>, %arg5: memref<1x32x32xbf16, #tpu.memory_space<vmem>>, %arg6: memref<1x1x32xf32, #tpu.memory_space<vmem>>, %arg7: memref<1x32x32xbf16, #tpu.memory_space<vmem>>, %arg8: memref<1x1x32xf32, #tpu.memory_space<vmem>>, %arg9: memref<1x32x32xbf16, #tpu.memory_space<vmem>>, %arg10: memref<1x1x32xf32, #tpu.memory_space<vmem>>, %arg11: memref<1x32x32xbf16, #tpu.memory_space<vmem>>, %arg12: memref<1x1x32xf32, #tpu.memory_space<vmem>>, %arg13: memref<1x1x32xf32, #tpu.memory_space<vmem>>, %arg14: memref<1x1x32xf32, #tpu.memory_space<vmem>>, %arg15: memref<1x32x64xbf16, #tpu.memory_space<vmem>>, %arg16: memref<1x1x64xf32, #tpu.memory_space<vmem>>, %arg17: memref<1x64x32xbf16, #tpu.memory_space<vmem>>, %arg18: memref<1x1x32xf32, #tpu.memory_space<vmem>>, %arg19: memref<1x3x32xf32, #tpu.memory_space<vmem>>) attributes {dimension_semantics = [#tpu.dimension_semantics<parallel>, #tpu.dimension_semantics<arbitrary>], iteration_bounds = array<i64: 2, 2>, scalar_prefetch = 0 : i64, scratch_operands = 0 : i64, tpu.core_type = #tpu.core_type<tc>, window_params = [{transform_indices = @transform_0, window_bounds = array<i64: 1, 3, 32>}, {transform_indices = @transform_1, window_bounds = array<i64: 1, 1, 32>}, {transform_indices = @transform_2, window_bounds = array<i64: 1, 1, 32>}, {transform_indices = @transform_3, window_bounds = array<i64: 1, 32, 32>}, {transform_indices = @transform_4, window_bounds = array<i64: 1, 1, 32>}, {transform_indices = @transform_5, window_bounds = array<i64: 1, 32, 32>}, {transform_indices = @transform_6, window_bounds = array<i64: 1, 1, 32>}, {transform_indices = @transform_7, window_bounds = array<i64: 1, 32, 32>}, {transform_indices = @transform_8, window_bounds = array<i64: 1, 1, 32>}, {transform_indices = @transform_9, window_bounds = array<i64: 1, 32, 32>}, {transform_indices = @transform_10, window_bounds = array<i64: 1, 1, 32>}, {transform_indices = @transform_11, window_bounds = array<i64: 1, 1, 32>}, {transform_indices = @transform_12, window_bounds = array<i64: 1, 1, 32>}, {transform_indices = @transform_13, window_bounds = array<i64: 1, 32, 64>}, {transform_indices = @transform_14, window_bounds = array<i64: 1, 1, 64>}, {transform_indices = @transform_15, window_bounds = array<i64: 1, 64, 32>}, {transform_indices = @transform_16, window_bounds = array<i64: 1, 1, 32>}, {transform_indices = @transform_17, window_bounds = array<i64: 1, 3, 32>}]} {
    %c0_i32 = arith.constant 0 : i32
    %0 = arith.cmpi eq, %arg1, %c0_i32 : i32
    %1 = arith.extui %0 : i1 to i32
    %c0_i32_0 = arith.constant 0 : i32
    %2 = arith.cmpi ne, %1, %c0_i32_0 : i32
    scf.if %2 {
      %c0_97 = arith.constant 0 : index
      %c0_98 = arith.constant 0 : index
      %c0_99 = arith.constant 0 : index
      %222 = vector.load %arg2[%c0_97, %c0_98, %c0_99] : memref<1x3x32xf32, #tpu.memory_space<vmem>>, vector<1x3x32xf32>
      %223 = vector.shape_cast %222 : vector<1x3x32xf32> to vector<3x32xf32>
      %c0_100 = arith.constant 0 : index
      %c0_101 = arith.constant 0 : index
      %c0_102 = arith.constant 0 : index
      %224 = vector.load %arg19[%c0_100, %c0_101, %c0_102] : memref<1x3x32xf32, #tpu.memory_space<vmem>>, vector<1x3x32xf32>
      %225 = vector.shape_cast %224 : vector<1x3x32xf32> to vector<3x32xf32>
      %226 = vector.shape_cast %223 : vector<3x32xf32> to vector<1x3x32xf32>
      tpu.vector_store %arg19[%c0_100, %c0_101, %c0_102], %226 {strides = array<i32>} : memref<1x3x32xf32, #tpu.memory_space<vmem>>, vector<1x3x32xf32>,
    } else {
    }
    %c0 = arith.constant 0 : index
    %c0_1 = arith.constant 0 : index
    %c0_2 = arith.constant 0 : index
    %3 = vector.load %arg19[%c0, %c0_1, %c0_2] : memref<1x3x32xf32, #tpu.memory_space<vmem>>, vector<1x3x32xf32>
    %4 = vector.shape_cast %3 : vector<1x3x32xf32> to vector<3x32xf32>
    %c0_3 = arith.constant 0 : index
    %c0_4 = arith.constant 0 : index
    %c0_5 = arith.constant 0 : index
    %5 = vector.load %arg3[%c0_3, %c0_4, %c0_5] : memref<1x1x32xf32, #tpu.memory_space<vmem>>, vector<1x1x32xf32>
    %6 = vector.shape_cast %5 : vector<1x1x32xf32> to vector<1x32xf32>
    %c0_6 = arith.constant 0 : index
    %c0_7 = arith.constant 0 : index
    %c0_8 = arith.constant 0 : index
    %7 = vector.load %arg4[%c0_6, %c0_7, %c0_8] : memref<1x1x32xf32, #tpu.memory_space<vmem>>, vector<1x1x32xf32>
    %8 = vector.shape_cast %7 : vector<1x1x32xf32> to vector<1x32xf32>
    %cst = arith.constant dense<0.000000e+00> : vector<3xf32>
    %9 = vector.multi_reduction <add>, %4, %cst [1] : vector<3x32xf32> to vector<3xf32>
    %10 = vector.shape_cast %9 : vector<3xf32> to vector<3x1xf32>
    %cst_9 = arith.constant 3.200000e+01 : f32
    %11 = vector.broadcast %cst_9 : f32 to vector<3x1xf32>
    %12 = arith.divf %10, %11 : vector<3x1xf32>
    %13 = vector.broadcast %12 : vector<3x1xf32> to vector<3x32xf32>
    %14 = arith.subf %4, %13 : vector<3x32xf32>
    %15 = arith.mulf %14, %14 : vector<3x32xf32>
    %cst_10 = arith.constant dense<0.000000e+00> : vector<3xf32>
    %16 = vector.multi_reduction <add>, %15, %cst_10 [1] : vector<3x32xf32> to vector<3xf32>
    %17 = vector.shape_cast %16 : vector<3xf32> to vector<3x1xf32>
    %cst_11 = arith.constant 3.200000e+01 : f32
    %18 = vector.broadcast %cst_11 : f32 to vector<3x1xf32>
    %19 = arith.divf %17, %18 : vector<3x1xf32>
    %20 = vector.broadcast %12 : vector<3x1xf32> to vector<3x32xf32>
    %21 = arith.subf %4, %20 : vector<3x32xf32>
    %cst_12 = arith.constant 9.99999996E-13 : f32
    %22 = vector.broadcast %cst_12 : f32 to vector<3x1xf32>
    %23 = arith.addf %19, %22 : vector<3x1xf32>
    %24 = math.rsqrt %23 : vector<3x1xf32>
    %25 = vector.broadcast %24 : vector<3x1xf32> to vector<3x32xf32>
    %26 = arith.mulf %21, %25 : vector<3x32xf32>
    %27 = vector.broadcast %6 : vector<1x32xf32> to vector<3x32xf32>
    %28 = arith.mulf %26, %27 : vector<3x32xf32>
    %29 = vector.broadcast %8 : vector<1x32xf32> to vector<3x32xf32>
    %30 = arith.addf %28, %29 : vector<3x32xf32>
    %c0_13 = arith.constant 0 : index
    %c0_14 = arith.constant 0 : index
    %c0_15 = arith.constant 0 : index
    %31 = vector.load %arg5[%c0_13, %c0_14, %c0_15] : memref<1x32x32xbf16, #tpu.memory_space<vmem>>, vector<1x32x32xbf16>
    %32 = vector.shape_cast %31 : vector<1x32x32xbf16> to vector<32x32xbf16>
    %c0_16 = arith.constant 0 : index
    %c0_17 = arith.constant 0 : index
    %c0_18 = arith.constant 0 : index
    %33 = vector.load %arg6[%c0_16, %c0_17, %c0_18] : memref<1x1x32xf32, #tpu.memory_space<vmem>>, vector<1x1x32xf32>
    %34 = vector.shape_cast %33 : vector<1x1x32xf32> to vector<1x32xf32>
    %35 = arith.truncf %30 : vector<3x32xf32> to vector<3x32xbf16>
    %cst_19 = arith.constant dense<0.000000e+00> : vector<3x32xf32>
    %36 = tpu.matmul %35, %32, %cst_19 {dimension_numbers = #tpu.dot_dimension_numbers<[1], [0], [0], [1], [0, 0, 1, 1], [], []>} : vector<3x32xbf16>, vector<32x32xbf16>, vector<3x32xf32> -> vector<3x32xf32>
    %37 = vector.broadcast %34 : vector<1x32xf32> to vector<3x32xf32>
    %38 = arith.addf %36, %37 : vector<3x32xf32>
    %c0_20 = arith.constant 0 : index
    %c0_21 = arith.constant 0 : index
    %c0_22 = arith.constant 0 : index
    %39 = vector.load %arg7[%c0_20, %c0_21, %c0_22] : memref<1x32x32xbf16, #tpu.memory_space<vmem>>, vector<1x32x32xbf16>
    %40 = vector.shape_cast %39 : vector<1x32x32xbf16> to vector<32x32xbf16>
    %c0_23 = arith.constant 0 : index
    %c0_24 = arith.constant 0 : index
    %c0_25 = arith.constant 0 : index
    %41 = vector.load %arg8[%c0_23, %c0_24, %c0_25] : memref<1x1x32xf32, #tpu.memory_space<vmem>>, vector<1x1x32xf32>
    %42 = vector.shape_cast %41 : vector<1x1x32xf32> to vector<1x32xf32>
    %43 = arith.truncf %30 : vector<3x32xf32> to vector<3x32xbf16>
    %cst_26 = arith.constant dense<0.000000e+00> : vector<3x32xf32>
    %44 = tpu.matmul %43, %40, %cst_26 {dimension_numbers = #tpu.dot_dimension_numbers<[1], [0], [0], [1], [0, 0, 1, 1], [], []>} : vector<3x32xbf16>, vector<32x32xbf16>, vector<3x32xf32> -> vector<3x32xf32>
    %45 = vector.broadcast %42 : vector<1x32xf32> to vector<3x32xf32>
    %46 = arith.addf %44, %45 : vector<3x32xf32>
    %c0_27 = arith.constant 0 : index
    %c0_28 = arith.constant 0 : index
    %c0_29 = arith.constant 0 : index
    %47 = vector.load %arg9[%c0_27, %c0_28, %c0_29] : memref<1x32x32xbf16, #tpu.memory_space<vmem>>, vector<1x32x32xbf16>
    %48 = vector.shape_cast %47 : vector<1x32x32xbf16> to vector<32x32xbf16>
    %c0_30 = arith.constant 0 : index
    %c0_31 = arith.constant 0 : index
    %c0_32 = arith.constant 0 : index
    %49 = vector.load %arg10[%c0_30, %c0_31, %c0_32] : memref<1x1x32xf32, #tpu.memory_space<vmem>>, vector<1x1x32xf32>
    %50 = vector.shape_cast %49 : vector<1x1x32xf32> to vector<1x32xf32>
    %51 = arith.truncf %30 : vector<3x32xf32> to vector<3x32xbf16>
    %cst_33 = arith.constant dense<0.000000e+00> : vector<3x32xf32>
    %52 = tpu.matmul %51, %48, %cst_33 {dimension_numbers = #tpu.dot_dimension_numbers<[1], [0], [0], [1], [0, 0, 1, 1], [], []>} : vector<3x32xbf16>, vector<32x32xbf16>, vector<3x32xf32> -> vector<3x32xf32>
    %53 = vector.broadcast %50 : vector<1x32xf32> to vector<3x32xf32>
    %54 = arith.addf %52, %53 : vector<3x32xf32>
    %c0_34 = arith.constant 0 : index
    %c0_35 = arith.constant 0 : index
    %c0_36 = arith.constant 0 : index
    %55 = vector.load %arg11[%c0_34, %c0_35, %c0_36] : memref<1x32x32xbf16, #tpu.memory_space<vmem>>, vector<1x32x32xbf16>
    %56 = vector.shape_cast %55 : vector<1x32x32xbf16> to vector<32x32xbf16>
    %cst_37 = arith.constant 0.000000e+00 : f32
    %57 = vector.broadcast %cst_37 : f32 to vector<3x32xf32>
    %58 = vector.extract_strided_slice %38 {offsets = [0, 0], sizes = [3, 8], strides = [1, 1]} : vector<3x32xf32> to vector<3x8xf32>
    %59 = vector.extract_strided_slice %46 {offsets = [0, 0], sizes = [3, 8], strides = [1, 1]} : vector<3x32xf32> to vector<3x8xf32>
    %60 = arith.truncf %58 : vector<3x8xf32> to vector<3x8xbf16>
    %61 = arith.truncf %59 : vector<3x8xf32> to vector<3x8xbf16>
    %cst_38 = arith.constant dense<0.000000e+00> : vector<3x3xf32>
    %62 = tpu.matmul %60, %61, %cst_38 {dimension_numbers = #tpu.dot_dimension_numbers<[1], [1], [0], [0], [0, 0, 1, 0], [], []>} : vector<3x8xbf16>, vector<3x8xbf16>, vector<3x3xf32> -> vector<3x3xf32>
    %cst_39 = arith.constant 0.353553385 : f32
    %63 = vector.broadcast %cst_39 : f32 to vector<3x3xf32>
    %64 = arith.mulf %62, %63 : vector<3x3xf32>
    %cst_40 = arith.constant dense<0xFF800000> : vector<3xf32>
    %65 = vector.multi_reduction <maximumf>, %64, %cst_40 [1] : vector<3x3xf32> to vector<3xf32>
    %66 = vector.shape_cast %65 : vector<3xf32> to vector<3x1xf32>
    %67 = vector.broadcast %66 : vector<3x1xf32> to vector<3x3xf32>
    %68 = arith.subf %64, %67 : vector<3x3xf32>
    %69 = math.exp %68 : vector<3x3xf32>
    %cst_41 = arith.constant dense<0.000000e+00> : vector<3xf32>
    %70 = vector.multi_reduction <add>, %69, %cst_41 [1] : vector<3x3xf32> to vector<3xf32>
    %71 = vector.shape_cast %70 : vector<3xf32> to vector<3x1xf32>
    %72 = tpu.reciprocal %71 {approx = true} : vector<3x1xf32> -> vector<3x1xf32>
    %73 = vector.broadcast %72 : vector<3x1xf32> to vector<3x3xf32>
    %74 = arith.mulf %69, %73 : vector<3x3xf32>
    %75 = arith.truncf %74 : vector<3x3xf32> to vector<3x3xbf16>
    %76 = vector.extract_strided_slice %54 {offsets = [0, 0], sizes = [3, 8], strides = [1, 1]} : vector<3x32xf32> to vector<3x8xf32>
    %77 = arith.truncf %76 : vector<3x8xf32> to vector<3x8xbf16>
    %cst_42 = arith.constant dense<0.000000e+00> : vector<3x8xf32>
    %78 = tpu.matmul %75, %77, %cst_42 {dimension_numbers = #tpu.dot_dimension_numbers<[1], [0], [0], [1], [0, 0, 1, 1], [], []>} : vector<3x3xbf16>, vector<3x8xbf16>, vector<3x8xf32> -> vector<3x8xf32>
    %79 = arith.truncf %78 : vector<3x8xf32> to vector<3x8xbf16>
    %80 = vector.extract_strided_slice %56 {offsets = [0, 0], sizes = [8, 32], strides = [1, 1]} : vector<32x32xbf16> to vector<8x32xbf16>
    %cst_43 = arith.constant dense<0.000000e+00> : vector<3x32xf32>
    %81 = tpu.matmul %79, %80, %cst_43 {dimension_numbers = #tpu.dot_dimension_numbers<[1], [0], [0], [1], [0, 0, 1, 1], [], []>} : vector<3x8xbf16>, vector<8x32xbf16>, vector<3x32xf32> -> vector<3x32xf32>
    %82 = arith.addf %57, %81 : vector<3x32xf32>
    %83 = vector.extract_strided_slice %38 {offsets = [0, 8], sizes = [3, 8], strides = [1, 1]} : vector<3x32xf32> to vector<3x8xf32>
    %84 = vector.extract_strided_slice %46 {offsets = [0, 8], sizes = [3, 8], strides = [1, 1]} : vector<3x32xf32> to vector<3x8xf32>
    %85 = arith.truncf %83 : vector<3x8xf32> to vector<3x8xbf16>
    %86 = arith.truncf %84 : vector<3x8xf32> to vector<3x8xbf16>
    %cst_44 = arith.constant dense<0.000000e+00> : vector<3x3xf32>
    %87 = tpu.matmul %85, %86, %cst_44 {dimension_numbers = #tpu.dot_dimension_numbers<[1], [1], [0], [0], [0, 0, 1, 0], [], []>} : vector<3x8xbf16>, vector<3x8xbf16>, vector<3x3xf32> -> vector<3x3xf32>
    %cst_45 = arith.constant 0.353553385 : f32
    %88 = vector.broadcast %cst_45 : f32 to vector<3x3xf32>
    %89 = arith.mulf %87, %88 : vector<3x3xf32>
    %cst_46 = arith.constant dense<0xFF800000> : vector<3xf32>
    %90 = vector.multi_reduction <maximumf>, %89, %cst_46 [1] : vector<3x3xf32> to vector<3xf32>
    %91 = vector.shape_cast %90 : vector<3xf32> to vector<3x1xf32>
    %92 = vector.broadcast %91 : vector<3x1xf32> to vector<3x3xf32>
    %93 = arith.subf %89, %92 : vector<3x3xf32>
    %94 = math.exp %93 : vector<3x3xf32>
    %cst_47 = arith.constant dense<0.000000e+00> : vector<3xf32>
    %95 = vector.multi_reduction <add>, %94, %cst_47 [1] : vector<3x3xf32> to vector<3xf32>
    %96 = vector.shape_cast %95 : vector<3xf32> to vector<3x1xf32>
    %97 = tpu.reciprocal %96 {approx = true} : vector<3x1xf32> -> vector<3x1xf32>
    %98 = vector.broadcast %97 : vector<3x1xf32> to vector<3x3xf32>
    %99 = arith.mulf %94, %98 : vector<3x3xf32>
    %100 = arith.truncf %99 : vector<3x3xf32> to vector<3x3xbf16>
    %101 = vector.extract_strided_slice %54 {offsets = [0, 8], sizes = [3, 8], strides = [1, 1]} : vector<3x32xf32> to vector<3x8xf32>
    %102 = arith.truncf %101 : vector<3x8xf32> to vector<3x8xbf16>
    %cst_48 = arith.constant dense<0.000000e+00> : vector<3x8xf32>
    %103 = tpu.matmul %100, %102, %cst_48 {dimension_numbers = #tpu.dot_dimension_numbers<[1], [0], [0], [1], [0, 0, 1, 1], [], []>} : vector<3x3xbf16>, vector<3x8xbf16>, vector<3x8xf32> -> vector<3x8xf32>
    %104 = arith.truncf %103 : vector<3x8xf32> to vector<3x8xbf16>
    %105 = vector.extract_strided_slice %56 {offsets = [8, 0], sizes = [8, 32], strides = [1, 1]} : vector<32x32xbf16> to vector<8x32xbf16>
    %cst_49 = arith.constant dense<0.000000e+00> : vector<3x32xf32>
    %106 = tpu.matmul %104, %105, %cst_49 {dimension_numbers = #tpu.dot_dimension_numbers<[1], [0], [0], [1], [0, 0, 1, 1], [], []>} : vector<3x8xbf16>, vector<8x32xbf16>, vector<3x32xf32> -> vector<3x32xf32>
    %107 = arith.addf %82, %106 : vector<3x32xf32>
    %108 = vector.extract_strided_slice %38 {offsets = [0, 16], sizes = [3, 8], strides = [1, 1]} : vector<3x32xf32> to vector<3x8xf32>
    %109 = vector.extract_strided_slice %46 {offsets = [0, 16], sizes = [3, 8], strides = [1, 1]} : vector<3x32xf32> to vector<3x8xf32>
    %110 = arith.truncf %108 : vector<3x8xf32> to vector<3x8xbf16>
    %111 = arith.truncf %109 : vector<3x8xf32> to vector<3x8xbf16>
    %cst_50 = arith.constant dense<0.000000e+00> : vector<3x3xf32>
    %112 = tpu.matmul %110, %111, %cst_50 {dimension_numbers = #tpu.dot_dimension_numbers<[1], [1], [0], [0], [0, 0, 1, 0], [], []>} : vector<3x8xbf16>, vector<3x8xbf16>, vector<3x3xf32> -> vector<3x3xf32>
    %cst_51 = arith.constant 0.353553385 : f32
    %113 = vector.broadcast %cst_51 : f32 to vector<3x3xf32>
    %114 = arith.mulf %112, %113 : vector<3x3xf32>
    %cst_52 = arith.constant dense<0xFF800000> : vector<3xf32>
    %115 = vector.multi_reduction <maximumf>, %114, %cst_52 [1] : vector<3x3xf32> to vector<3xf32>
    %116 = vector.shape_cast %115 : vector<3xf32> to vector<3x1xf32>
    %117 = vector.broadcast %116 : vector<3x1xf32> to vector<3x3xf32>
    %118 = arith.subf %114, %117 : vector<3x3xf32>
    %119 = math.exp %118 : vector<3x3xf32>
    %cst_53 = arith.constant dense<0.000000e+00> : vector<3xf32>
    %120 = vector.multi_reduction <add>, %119, %cst_53 [1] : vector<3x3xf32> to vector<3xf32>
    %121 = vector.shape_cast %120 : vector<3xf32> to vector<3x1xf32>
    %122 = tpu.reciprocal %121 {approx = true} : vector<3x1xf32> -> vector<3x1xf32>
    %123 = vector.broadcast %122 : vector<3x1xf32> to vector<3x3xf32>
    %124 = arith.mulf %119, %123 : vector<3x3xf32>
    %125 = arith.truncf %124 : vector<3x3xf32> to vector<3x3xbf16>
    %126 = vector.extract_strided_slice %54 {offsets = [0, 16], sizes = [3, 8], strides = [1, 1]} : vector<3x32xf32> to vector<3x8xf32>
    %127 = arith.truncf %126 : vector<3x8xf32> to vector<3x8xbf16>
    %cst_54 = arith.constant dense<0.000000e+00> : vector<3x8xf32>
    %128 = tpu.matmul %125, %127, %cst_54 {dimension_numbers = #tpu.dot_dimension_numbers<[1], [0], [0], [1], [0, 0, 1, 1], [], []>} : vector<3x3xbf16>, vector<3x8xbf16>, vector<3x8xf32> -> vector<3x8xf32>
    %129 = arith.truncf %128 : vector<3x8xf32> to vector<3x8xbf16>
    %130 = vector.extract_strided_slice %56 {offsets = [16, 0], sizes = [8, 32], strides = [1, 1]} : vector<32x32xbf16> to vector<8x32xbf16>
    %cst_55 = arith.constant dense<0.000000e+00> : vector<3x32xf32>
    %131 = tpu.matmul %129, %130, %cst_55 {dimension_numbers = #tpu.dot_dimension_numbers<[1], [0], [0], [1], [0, 0, 1, 1], [], []>} : vector<3x8xbf16>, vector<8x32xbf16>, vector<3x32xf32> -> vector<3x32xf32>
    %132 = arith.addf %107, %131 : vector<3x32xf32>
    %133 = vector.extract_strided_slice %38 {offsets = [0, 24], sizes = [3, 8], strides = [1, 1]} : vector<3x32xf32> to vector<3x8xf32>
    %134 = vector.extract_strided_slice %46 {offsets = [0, 24], sizes = [3, 8], strides = [1, 1]} : vector<3x32xf32> to vector<3x8xf32>
    %135 = arith.truncf %133 : vector<3x8xf32> to vector<3x8xbf16>
    %136 = arith.truncf %134 : vector<3x8xf32> to vector<3x8xbf16>
    %cst_56 = arith.constant dense<0.000000e+00> : vector<3x3xf32>
    %137 = tpu.matmul %135, %136, %cst_56 {dimension_numbers = #tpu.dot_dimension_numbers<[1], [1], [0], [0], [0, 0, 1, 0], [], []>} : vector<3x8xbf16>, vector<3x8xbf16>, vector<3x3xf32> -> vector<3x3xf32>
    %cst_57 = arith.constant 0.353553385 : f32
    %138 = vector.broadcast %cst_57 : f32 to vector<3x3xf32>
    %139 = arith.mulf %137, %138 : vector<3x3xf32>
    %cst_58 = arith.constant dense<0xFF800000> : vector<3xf32>
    %140 = vector.multi_reduction <maximumf>, %139, %cst_58 [1] : vector<3x3xf32> to vector<3xf32>
    %141 = vector.shape_cast %140 : vector<3xf32> to vector<3x1xf32>
    %142 = vector.broadcast %141 : vector<3x1xf32> to vector<3x3xf32>
    %143 = arith.subf %139, %142 : vector<3x3xf32>
    %144 = math.exp %143 : vector<3x3xf32>
    %cst_59 = arith.constant dense<0.000000e+00> : vector<3xf32>
    %145 = vector.multi_reduction <add>, %144, %cst_59 [1] : vector<3x3xf32> to vector<3xf32>
    %146 = vector.shape_cast %145 : vector<3xf32> to vector<3x1xf32>
    %147 = tpu.reciprocal %146 {approx = true} : vector<3x1xf32> -> vector<3x1xf32>
    %148 = vector.broadcast %147 : vector<3x1xf32> to vector<3x3xf32>
    %149 = arith.mulf %144, %148 : vector<3x3xf32>
    %150 = arith.truncf %149 : vector<3x3xf32> to vector<3x3xbf16>
    %151 = vector.extract_strided_slice %54 {offsets = [0, 24], sizes = [3, 8], strides = [1, 1]} : vector<3x32xf32> to vector<3x8xf32>
    %152 = arith.truncf %151 : vector<3x8xf32> to vector<3x8xbf16>
    %cst_60 = arith.constant dense<0.000000e+00> : vector<3x8xf32>
    %153 = tpu.matmul %150, %152, %cst_60 {dimension_numbers = #tpu.dot_dimension_numbers<[1], [0], [0], [1], [0, 0, 1, 1], [], []>} : vector<3x3xbf16>, vector<3x8xbf16>, vector<3x8xf32> -> vector<3x8xf32>
    %154 = arith.truncf %153 : vector<3x8xf32> to vector<3x8xbf16>
    %155 = vector.extract_strided_slice %56 {offsets = [24, 0], sizes = [8, 32], strides = [1, 1]} : vector<32x32xbf16> to vector<8x32xbf16>
    %cst_61 = arith.constant dense<0.000000e+00> : vector<3x32xf32>
    %156 = tpu.matmul %154, %155, %cst_61 {dimension_numbers = #tpu.dot_dimension_numbers<[1], [0], [0], [1], [0, 0, 1, 1], [], []>} : vector<3x8xbf16>, vector<8x32xbf16>, vector<3x32xf32> -> vector<3x32xf32>
    %157 = arith.addf %132, %156 : vector<3x32xf32>
    %158 = arith.addf %4, %157 : vector<3x32xf32>
    %c0_62 = arith.constant 0 : index
    %c0_63 = arith.constant 0 : index
    %c0_64 = arith.constant 0 : index
    %159 = vector.load %arg12[%c0_62, %c0_63, %c0_64] : memref<1x1x32xf32, #tpu.memory_space<vmem>>, vector<1x1x32xf32>
    %160 = vector.shape_cast %159 : vector<1x1x32xf32> to vector<1x32xf32>
    %161 = vector.broadcast %160 : vector<1x32xf32> to vector<3x32xf32>
    %162 = arith.addf %158, %161 : vector<3x32xf32>
    %c0_65 = arith.constant 0 : index
    %c0_66 = arith.constant 0 : index
    %c0_67 = arith.constant 0 : index
    %163 = vector.load %arg13[%c0_65, %c0_66, %c0_67] : memref<1x1x32xf32, #tpu.memory_space<vmem>>, vector<1x1x32xf32>
    %164 = vector.shape_cast %163 : vector<1x1x32xf32> to vector<1x32xf32>
    %c0_68 = arith.constant 0 : index
    %c0_69 = arith.constant 0 : index
    %c0_70 = arith.constant 0 : index
    %165 = vector.load %arg14[%c0_68, %c0_69, %c0_70] : memref<1x1x32xf32, #tpu.memory_space<vmem>>, vector<1x1x32xf32>
    %166 = vector.shape_cast %165 : vector<1x1x32xf32> to vector<1x32xf32>
    %cst_71 = arith.constant dense<0.000000e+00> : vector<3xf32>
    %167 = vector.multi_reduction <add>, %162, %cst_71 [1] : vector<3x32xf32> to vector<3xf32>
    %168 = vector.shape_cast %167 : vector<3xf32> to vector<3x1xf32>
    %cst_72 = arith.constant 3.200000e+01 : f32
    %169 = vector.broadcast %cst_72 : f32 to vector<3x1xf32>
    %170 = arith.divf %168, %169 : vector<3x1xf32>
    %171 = vector.broadcast %170 : vector<3x1xf32> to vector<3x32xf32>
    %172 = arith.subf %162, %171 : vector<3x32xf32>
    %173 = arith.mulf %172, %172 : vector<3x32xf32>
    %cst_73 = arith.constant dense<0.000000e+00> : vector<3xf32>
    %174 = vector.multi_reduction <add>, %173, %cst_73 [1] : vector<3x32xf32> to vector<3xf32>
    %175 = vector.shape_cast %174 : vector<3xf32> to vector<3x1xf32>
    %cst_74 = arith.constant 3.200000e+01 : f32
    %176 = vector.broadcast %cst_74 : f32 to vector<3x1xf32>
    %177 = arith.divf %175, %176 : vector<3x1xf32>
    %178 = vector.broadcast %170 : vector<3x1xf32> to vector<3x32xf32>
    %179 = arith.subf %162, %178 : vector<3x32xf32>
    %cst_75 = arith.constant 9.99999996E-13 : f32
    %180 = vector.broadcast %cst_75 : f32 to vector<3x1xf32>
    %181 = arith.addf %177, %180 : vector<3x1xf32>
    %182 = math.rsqrt %181 : vector<3x1xf32>
    %183 = vector.broadcast %182 : vector<3x1xf32> to vector<3x32xf32>
    %184 = arith.mulf %179, %183 : vector<3x32xf32>
    %185 = vector.broadcast %164 : vector<1x32xf32> to vector<3x32xf32>
    %186 = arith.mulf %184, %185 : vector<3x32xf32>
    %187 = vector.broadcast %166 : vector<1x32xf32> to vector<3x32xf32>
    %188 = arith.addf %186, %187 : vector<3x32xf32>
    %c0_76 = arith.constant 0 : index
    %c0_77 = arith.constant 0 : index
    %c0_78 = arith.constant 0 : index
    %189 = vector.load %arg15[%c0_76, %c0_77, %c0_78] : memref<1x32x64xbf16, #tpu.memory_space<vmem>>, vector<1x32x64xbf16>
    %190 = vector.shape_cast %189 : vector<1x32x64xbf16> to vector<32x64xbf16>
    %c0_79 = arith.constant 0 : index
    %c0_80 = arith.constant 0 : index
    %c0_81 = arith.constant 0 : index
    %191 = vector.load %arg16[%c0_79, %c0_80, %c0_81] : memref<1x1x64xf32, #tpu.memory_space<vmem>>, vector<1x1x64xf32>
    %192 = vector.shape_cast %191 : vector<1x1x64xf32> to vector<1x64xf32>
    %193 = arith.truncf %188 : vector<3x32xf32> to vector<3x32xbf16>
    %cst_82 = arith.constant dense<0.000000e+00> : vector<3x64xf32>
    %194 = tpu.matmul %193, %190, %cst_82 {dimension_numbers = #tpu.dot_dimension_numbers<[1], [0], [0], [1], [0, 0, 1, 1], [], []>} : vector<3x32xbf16>, vector<32x64xbf16>, vector<3x64xf32> -> vector<3x64xf32>
    %195 = vector.broadcast %192 : vector<1x64xf32> to vector<3x64xf32>
    %196 = arith.addf %194, %195 : vector<3x64xf32>
    %197 = arith.mulf %196, %196 : vector<3x64xf32>
    %198 = arith.mulf %196, %197 : vector<3x64xf32>
    %cst_83 = arith.constant 4.471500e-02 : f32
    %199 = vector.broadcast %cst_83 : f32 to vector<3x64xf32>
    %200 = arith.mulf %199, %198 : vector<3x64xf32>
    %201 = arith.addf %196, %200 : vector<3x64xf32>
    %cst_84 = arith.constant 0.797884583 : f32
    %202 = vector.broadcast %cst_84 : f32 to vector<3x64xf32>
    %203 = arith.mulf %202, %201 : vector<3x64xf32>
    %204 = math.tanh %203 : vector<3x64xf32>
    %cst_85 = arith.constant 1.000000e+00 : f32
    %205 = vector.broadcast %cst_85 : f32 to vector<3x64xf32>
    %206 = arith.addf %205, %204 : vector<3x64xf32>
    %cst_86 = arith.constant 5.000000e-01 : f32
    %207 = vector.broadcast %cst_86 : f32 to vector<3x64xf32>
    %208 = arith.mulf %207, %206 : vector<3x64xf32>
    %209 = arith.mulf %196, %208 : vector<3x64xf32>
    %c0_87 = arith.constant 0 : index
    %c0_88 = arith.constant 0 : index
    %c0_89 = arith.constant 0 : index
    %210 = vector.load %arg17[%c0_87, %c0_88, %c0_89] : memref<1x64x32xbf16, #tpu.memory_space<vmem>>, vector<1x64x32xbf16>
    %211 = vector.shape_cast %210 : vector<1x64x32xbf16> to vector<64x32xbf16>
    %c0_90 = arith.constant 0 : index
    %c0_91 = arith.constant 0 : index
    %c0_92 = arith.constant 0 : index
    %212 = vector.load %arg18[%c0_90, %c0_91, %c0_92] : memref<1x1x32xf32, #tpu.memory_space<vmem>>, vector<1x1x32xf32>
    %213 = vector.shape_cast %212 : vector<1x1x32xf32> to vector<1x32xf32>
    %214 = arith.truncf %209 : vector<3x64xf32> to vector<3x64xbf16>
    %cst_93 = arith.constant dense<0.000000e+00> : vector<3x32xf32>
    %215 = tpu.matmul %214, %211, %cst_93 {dimension_numbers = #tpu.dot_dimension_numbers<[1], [0], [0], [1], [0, 0, 1, 1], [], []>} : vector<3x64xbf16>, vector<64x32xbf16>, vector<3x32xf32> -> vector<3x32xf32>
    %216 = vector.broadcast %213 : vector<1x32xf32> to vector<3x32xf32>
    %217 = arith.addf %215, %216 : vector<3x32xf32>
    %218 = arith.addf %162, %217 : vector<3x32xf32>
    %c0_94 = arith.constant 0 : index
    %c0_95 = arith.constant 0 : index
    %c0_96 = arith.constant 0 : index
    %219 = vector.load %arg19[%c0_94, %c0_95, %c0_96] : memref<1x3x32xf32, #tpu.memory_space<vmem>>, vector<1x3x32xf32>
    %220 = vector.shape_cast %219 : vector<1x3x32xf32> to vector<3x32xf32>
    %221 = vector.shape_cast %218 : vector<3x32xf32> to vector<1x3x32xf32>
    tpu.vector_store %arg19[%c0_94, %c0_95, %c0_96], %221 {strides = array<i32>} : memref<1x3x32xf32, #tpu.memory_space<vmem>>, vector<1x3x32xf32>,
    return
  }
  func.func @transform_0(%arg0: i32, %arg1: i32) -> (i32, i32, i32) {
    %c0_i32 = arith.constant 0 : i32
    %c0_i32_0 = arith.constant 0 : i32
    %c0_i32_1 = arith.constant 0 : i32
    return %arg0, %c0_i32, %c0_i32_0 : i32, i32, i32
  }
  func.func @transform_1(%arg0: i32, %arg1: i32) -> (i32, i32, i32) {
    %c6_i32 = arith.constant 6 : i32
    %0 = arith.addi %arg1, %c6_i32 : i32
    %c0_i32 = arith.constant 0 : i32
    %c0_i32_0 = arith.constant 0 : i32
    %c0_i32_1 = arith.constant 0 : i32
    return %0, %c0_i32, %c0_i32_0 : i32, i32, i32
  }
  func.func @transform_2(%arg0: i32, %arg1: i32) -> (i32, i32, i32) {
    %c6_i32 = arith.constant 6 : i32
    %0 = arith.addi %arg1, %c6_i32 : i32
    %c0_i32 = arith.constant 0 : i32
    %c0_i32_0 = arith.constant 0 : i32
    %c0_i32_1 = arith.constant 0 : i32
    return %0, %c0_i32, %c0_i32_0 : i32, i32, i32
  }
  func.func @transform_3(%arg0: i32, %arg1: i32) -> (i32, i32, i32) {
    %c6_i32 = arith.constant 6 : i32
    %0 = arith.addi %arg1, %c6_i32 : i32
    %c0_i32 = arith.constant 0 : i32
    %c0_i32_0 = arith.constant 0 : i32
    %c0_i32_1 = arith.constant 0 : i32
    return %0, %c0_i32, %c0_i32_0 : i32, i32, i32
  }
  func.func @transform_4(%arg0: i32, %arg1: i32) -> (i32, i32, i32) {
    %c6_i32 = arith.constant 6 : i32
    %0 = arith.addi %arg1, %c6_i32 : i32
    %c0_i32 = arith.constant 0 : i32
    %c0_i32_0 = arith.constant 0 : i32
    %c0_i32_1 = arith.constant 0 : i32
    return %0, %c0_i32, %c0_i32_0 : i32, i32, i32
  }
  func.func @transform_5(%arg0: i32, %arg1: i32) -> (i32, i32, i32) {
    %c6_i32 = arith.constant 6 : i32
    %0 = arith.addi %arg1, %c6_i32 : i32
    %c0_i32 = arith.constant 0 : i32
    %c0_i32_0 = arith.constant 0 : i32
    %c0_i32_1 = arith.constant 0 : i32
    return %0, %c0_i32, %c0_i32_0 : i32, i32, i32
  }
  func.func @transform_6(%arg0: i32, %arg1: i32) -> (i32, i32, i32) {
    %c6_i32 = arith.constant 6 : i32
    %0 = arith.addi %arg1, %c6_i32 : i32
    %c0_i32 = arith.constant 0 : i32
    %c0_i32_0 = arith.constant 0 : i32
    %c0_i32_1 = arith.constant 0 : i32
    return %0, %c0_i32, %c0_i32_0 : i32, i32, i32
  }
  func.func @transform_7(%arg0: i32, %arg1: i32) -> (i32, i32, i32) {
    %c6_i32 = arith.constant 6 : i32
    %0 = arith.addi %arg1, %c6_i32 : i32
    %c0_i32 = arith.constant 0 : i32
    %c0_i32_0 = arith.constant 0 : i32
    %c0_i32_1 = arith.constant 0 : i32
    return %0, %c0_i32, %c0_i32_0 : i32, i32, i32
  }
  func.func @transform_8(%arg0: i32, %arg1: i32) -> (i32, i32, i32) {
    %c6_i32 = arith.constant 6 : i32
    %0 = arith.addi %arg1, %c6_i32 : i32
    %c0_i32 = arith.constant 0 : i32
    %c0_i32_0 = arith.constant 0 : i32
    %c0_i32_1 = arith.constant 0 : i32
    return %0, %c0_i32, %c0_i32_0 : i32, i32, i32
  }
  func.func @transform_9(%arg0: i32, %arg1: i32) -> (i32, i32, i32) {
    %c6_i32 = arith.constant 6 : i32
    %0 = arith.addi %arg1, %c6_i32 : i32
    %c0_i32 = arith.constant 0 : i32
    %c0_i32_0 = arith.constant 0 : i32
    %c0_i32_1 = arith.constant 0 : i32
    return %0, %c0_i32, %c0_i32_0 : i32, i32, i32
  }
  func.func @transform_10(%arg0: i32, %arg1: i32) -> (i32, i32, i32) {
    %c6_i32 = arith.constant 6 : i32
    %0 = arith.addi %arg1, %c6_i32 : i32
    %c0_i32 = arith.constant 0 : i32
    %c0_i32_0 = arith.constant 0 : i32
    %c0_i32_1 = arith.constant 0 : i32
    return %0, %c0_i32, %c0_i32_0 : i32, i32, i32
  }
  func.func @transform_11(%arg0: i32, %arg1: i32) -> (i32, i32, i32) {
    %c6_i32 = arith.constant 6 : i32
    %0 = arith.addi %arg1, %c6_i32 : i32
    %c0_i32 = arith.constant 0 : i32
    %c0_i32_0 = arith.constant 0 : i32
    %c0_i32_1 = arith.constant 0 : i32
    return %0, %c0_i32, %c0_i32_0 : i32, i32, i32
  }
  func.func @transform_12(%arg0: i32, %arg1: i32) -> (i32, i32, i32) {
    %c6_i32 = arith.constant 6 : i32
    %0 = arith.addi %arg1, %c6_i32 : i32
    %c0_i32 = arith.constant 0 : i32
    %c0_i32_0 = arith.constant 0 : i32
    %c0_i32_1 = arith.constant 0 : i32
    return %0, %c0_i32, %c0_i32_0 : i32, i32, i32
  }
  func.func @transform_13(%arg0: i32, %arg1: i32) -> (i32, i32, i32) {
    %c6_i32 = arith.constant 6 : i32
    %0 = arith.addi %arg1, %c6_i32 : i32
    %c0_i32 = arith.constant 0 : i32
    %c0_i32_0 = arith.constant 0 : i32
    %c0_i32_1 = arith.constant 0 : i32
    return %0, %c0_i32, %c0_i32_0 : i32, i32, i32
  }
  func.func @transform_14(%arg0: i32, %arg1: i32) -> (i32, i32, i32) {
    %c6_i32 = arith.constant 6 : i32
    %0 = arith.addi %arg1, %c6_i32 : i32
    %c0_i32 = arith.constant 0 : i32
    %c0_i32_0 = arith.constant 0 : i32
    %c0_i32_1 = arith.constant 0 : i32
    return %0, %c0_i32, %c0_i32_0 : i32, i32, i32
  }
  func.func @transform_15(%arg0: i32, %arg1: i32) -> (i32, i32, i32) {
    %c6_i32 = arith.constant 6 : i32
    %0 = arith.addi %arg1, %c6_i32 : i32
    %c0_i32 = arith.constant 0 : i32
    %c0_i32_0 = arith.constant 0 : i32
    %c0_i32_1 = arith.constant 0 : i32
    return %0, %c0_i32, %c0_i32_0 : i32, i32, i32
  }
  func.func @transform_16(%arg0: i32, %arg1: i32) -> (i32, i32, i32) {
    %c6_i32 = arith.constant 6 : i32
    %0 = arith.addi %arg1, %c6_i32 : i32
    %c0_i32 = arith.constant 0 : i32
    %c0_i32_0 = arith.constant 0 : i32
    %c0_i32_1 = arith.constant 0 : i32
    return %0, %c0_i32, %c0_i32_0 : i32, i32, i32
  }
  func.func @transform_17(%arg0: i32, %arg1: i32) -> (i32, i32, i32) {
    %c0_i32 = arith.constant 0 : i32
    %c0_i32_0 = arith.constant 0 : i32
    %c0_i32_1 = arith.constant 0 : i32
    return %arg0, %c0_i32, %c0_i32_0 : i32, i32, i32
  }
}

</mosaic_0001>

<bundles_post_ra>
// kernel: vit_with_token_compress.4
= control target key start
LH: loop header
LB: loop body
LE: loop exit
PB: predicated region body
PF: predicated region fallthrough
CT: control target
= control target key end

     0   :  { %s464_s12 = smov 0   ;;  %s524_s0 = inlined_call_operand.vmem [shape: f32[2,5,192], index: 0, kind: input, shape index: {}]   ;;  %s525_s1 = inlined_call_operand.vmem [shape: bf16[192,32], index: 1, kind: input, shape index: {}]   ;;  %s526_s2 = inlined_call_operand.vmem [shape: f32[5,32], index: 2, kind: input, shape index: {}]   ;;  %s527_s3 = inlined_call_operand.vmem [shape: f32[2,5,32], index: 3, kind: output, shape index: {}]  }
   0x1 LB: > { %s356_s13 = sadd.s32 4294967295, %s442_s12   ;;  %p360_p0 = scmp.ge.s32.totalorder %s442_s12, 1  ;;  %s442_s12 = sphi %s464_s12, %s13_s12  }
   0x2   : > { %p137_p1 = scmp.lt.s32.totalorder %s442_s12, 3 }
   0x4   : > { %p138_p2 = pnand %p360_p0, %p137_p1 }
   0x5   : > { %p160_p3 = scmp.lt.s32.totalorder (!%p138_p2), %s356_s13, 1 }
   0x6   : > { %141 = sbr.rel (%p138_p2) target bundleno = 177 (0xb1), region = 32 }
   0xb   : > { %v423_v0 = vld [vmem:[%s525_s1 + $0x38] sm:$0xff]  ;;  %v422_v2 = vld [vmem:[%s525_s1 + $0x30] sm:$0xff]  ;;  %s529_s13 = smov (!%p160_p3, %s356_s13), 1  ;;  %v421_v4 = vld [vmem:[%s525_s1 + $0x28] sm:$0xff]  ;;  %vm271_vm0 = vcmask 523264   ;;  %vm301_vm1 = vcmask 258048  }
   0xc   : > { %v427_v1 = vld [vmem:[%s525_s1 + $0x58] sm:$0xff]  ;;  %275 = vmatpush.bf16.msra.mxu0 %v423_v0  ;;  %v426_v3 = vld [vmem:[%s525_s1 + $0x50] sm:$0xff]  ;;  %s415_s22 = sshll.u32 %s529_s13, 4  ;;  %v425_v5 = vld [vmem:[%s525_s1 + $0x48] sm:$0xff]  ;;  %s363_s19 = sshll.u32 %s529_s13, 3 }
   0xd   : > { %292 = vmatpush.bf16.msra.mxu1 %v427_v1  ;;  %s164_s29 = scalar_lea.vmem %s524_s0, %s415_s22  ;;  %v420_v6 = vld [vmem:[%s525_s1 + $0x20] sm:$0xff]  ;;  %v419_v9 = vld [vmem:[%s525_s1 + $0x18] sm:$0xff]  ;;  %v418_v11 = vld [vmem:[%s525_s1 + $0x10] sm:$0xff]  ;;  %s168_s22 = scalar_lea.vmem %s527_s3, %s363_s19 }
   0xe   : > { %v424_v7 = vld [vmem:[%s525_s1 + $0x40] sm:$0xff]  ;;  %v171_v8 = vld [vmem:[%s164_s29 + $0x8] sm:$0x1f] }
   0xf   : > { %v173_v10 = vpack.c.bf16 %v171_v8, %v171_v8  ;;  %v417_v12 = vld [vmem:[%s525_s1 + $0x8] sm:$0xff]  ;;  %v416_v13 = vld [vmem:[%s525_s1] sm:$0xff] }
  0x10   : > { %276 = vmatpush.bf16.msra.mxu0 %v422_v2  ;;  %v170_v14 = vld [vmem:[%s164_s29] sm:$0x1f] }
  0x11   : > { %293 = vmatpush.bf16.msra.mxu1 %v426_v3  ;;  %v172_v15 = vpack.c.bf16 %v170_v14, %v170_v14  ;;  %v198_v18 = vld [vmem:[%s526_s2] sm:$0x1f] }
  0x14   : > { %277 = vmatpush.bf16.msra.mxu0 %v421_v4 }
  0x15   : > { %294 = vmatpush.bf16.msra.mxu1 %v425_v5 }
  0x18   : > { %278 = vmatpush.bf16.msra.mxu0 %v420_v6 }
  0x19   : > { %295 = vmatpush.bf16.msra.mxu1 %v424_v7 }
  0x1c   : > { %279 = vmatpush.bf16.msra.mxu0 %v419_v9  ;;  %412 = vmatmul.msk.bf16.vlgmr.msra.gmra.mxu1 %vm271_vm0, %v173_v10 }
  0x20   : > { %280 = vmatpush.bf16.msra.mxu0 %v418_v11 }
  0x24   : > { %281 = vmatpush.bf16.msra.mxu0 %v417_v12 }
  0x28   : > { %282 = vmatpush.bf16.msra.mxu0 %v416_v13 }
  0x2b   : > { %283 = vmatmul.bf16.vlgmr.msra.gmra.mxu0 %v172_v15 }
  0x99   : > { %v297_v16 = vpop.f32.mrf.mxu1 }
  0xa1   : > { %v299_v17 = vpop.f32.mrf.mxu1 }
  0xa8   : > { %v284_v19 = vpop.f32.mrf.mxu0 }
  0xa9   : > { %v285_v20 = vadd.f32 %v284_v19, %v198_v18 }
  0xab   : > { %v298_v21 = vadd.f32 %v297_v16, %v285_v20 }
  0xad   : > { %302 = vst.msk [vmem:[%s168_s22] sm:$0x1f] %vm301_vm1, %v298_v21 }
  0xb0   : > { %v286_v22 = vpop.f32.mrf.mxu0 }
  0xb1 PF: > { %s13_s12 = sadd.s32 1, %s442_s12  }
  0xb2   : > { %p10_p4 = scmp.ge.s32.totalorder %s13_s12, 4  }
  0xb4   :  { %12 = sbr.rel (!%p10_p4) target bundleno = 1 (0x1), region = 62 }

// kernel: vit_with_token_compress.6
= control target key start
LH: loop header
LB: loop body
LE: loop exit
PB: predicated region body
PF: predicated region fallthrough
CT: control target
= control target key end

     0   :  { %s586_s18 = smov 0   ;;  %s642_s0 = inlined_call_operand.vmem [shape: f32[2,5,32], index: 0, kind: input, shape index: {}]   ;;  %s643_s1 = inlined_call_operand.vmem [shape: bf16[32,32], index: 1, kind: input, shape index: {}]   ;;  %s644_s2 = inlined_call_operand.vmem [shape: f32[1,32], index: 2, kind: input, shape index: {}]   ;;  %s645_s3 = inlined_call_operand.vmem [shape: bf16[32,32], index: 3, kind: input, shape index: {}]   ;;  %s646_s4 = inlined_call_operand.vmem [shape: f32[1,32], index: 4, kind: input, shape index: {}]   ;;  %s647_s5 = inlined_call_operand.vmem [shape: f32[2,1,5], index: 5, kind: output, shape index: {}]  }
   0x1 LB: > { %s483_s19 = sadd.s32 4294967295, %s551_s18   ;;  %p487_p0 = scmp.ge.s32.totalorder %s551_s18, 1  ;;  %s551_s18 = sphi %s586_s18, %s15_s18  }
   0x2   : > { %p186_p1 = scmp.lt.s32.totalorder %s551_s18, 3 }
   0x4   : > { %p187_p2 = pnand %p487_p0, %p186_p1 }
   0x5   : > { %p211_p3 = scmp.lt.s32.totalorder (!%p187_p2), %s483_s19, 1  ;;  %s553_s11 = smov (!%p187_p2), 112  }
   0x6   : > { %190 = sbr.rel (%p187_p2) target bundleno = 669 (0x29d), region = 40  ;;  %s554_s12 = smov (!%p187_p2), 120  }
   0x7   : > { %s555_s13 = smov (!%p187_p2), 104  }
   0xb   : > { %v516_v0 = vld [vmem:[%s645_s3 + $0x8] sm:$0xff]  ;;  %v515_v2 = vld [vmem:[%s645_s3] sm:$0xff]  ;;  %s649_s19 = smov (!%p211_p3, %s483_s19), 1  ;;  %vm238_vm0 = vcmask 261120   ;;  %vm290_vm1 = vcmask 64512   ;;  %vm311_vm2 = vcmask 32768  }
   0xc   : > { %v514_v1 = vld [vmem:[%s643_s1 + $0x8] sm:$0xff]  ;;  %281 = vmatpush.bf16.msra.mxu1 %v516_v0  ;;  %v513_v3 = vld [vmem:[%s643_s1] sm:$0xff]  ;;  %s488_s28 = sshll.u32 %s649_s19, 3  ;;  %s217_s16 = scalar_lea.vmem %s647_s5, %s649_s19 }
   0xd   : > { %248 = vmatpush.bf16.msra.mxu0 %v514_v1  ;;  %s214_s6 = scalar_lea.vmem %s642_s0, %s488_s28  ;;  %v528_v6 = vld [vmem:[%s646_s4] ss:$0 sm:$0xff] }
   0xe   : > { %v219_v4 = vld [vmem:[%s214_s6] sm:$0x1f] }
   0xf   : > { %v225_v5 = vpack.c.bf16 %v219_v4, %v219_v4  ;;  %v224_v7 = vld [vmem:[%s644_s2] sm:$0x1] }
  0x10   : > { %282 = vmatpush.bf16.msra.mxu1 %v515_v2 }
  0x11   : > { %249 = vmatpush.bf16.msra.mxu0 %v513_v3 }
  0x13   : > { %506 = vmatmul.msk.bf16.vlgmr.msra.gmra.mxu1 %vm238_vm0, %v225_v5 }
  0x14   : > { %497 = vmatmul.msk.bf16.vlgmr.msra.gmra.mxu0 %vm238_vm0, %v225_v5 }
  0x90   : > { %v284_v8 = vpop.f32.mrf.mxu1 }
  0x91   : > { %v251_v9 = vpop.f32.mrf.mxu0  ;;  %v285_v10 = vadd.f32 %v528_v6, %v284_v8 }
  0x92   : > { %v252_v11 = vadd.f32 %v251_v9, %v224_v7 }
  0x93   : > { %v289_v12 = vpack.c.bf16 %v285_v10, %v285_v10 }
  0x94   : > { %v288_v13 = vpack.c.bf16 %v252_v11, %v252_v11 }
  0x95   : > { %364 = vrot.lane.b32.xlu1 %v289_v12, %s553_s11  ;;  %328 = vrot.lane.b32.xlu0 %v289_v12, %s554_s12  ;;  %v295_v14 = vsel %vm290_vm1, %v289_v12, 0 }
  0x96   : > { %304 = vmatpush.bf16.xpose.msra.mxu2 %v295_v14  ;;  %362 = vrot.lane.b32.xlu2 %v288_v13, %s553_s11 }
  0x98   : > { %v286_v15 = vpop.f32.mrf.mxu1 }
  0x99   : > { %v253_v16 = vpop.f32.mrf.mxu0 }
  0x9d   : > { %400 = vrot.lane.b32.xlu1 %v289_v12, %s555_s13  ;;  %325 = vrot.lane.b32.xlu0 %v288_v13, %s554_s12 }
  0x9e   : > { %507 = vmatmul.msk.bf16.vlgmr.msra.gmra.mxu2 %vm290_vm1, %v288_v13  ;;  %398 = vrot.lane.b32.xlu2 %v288_v13, %s555_s13 }
  0xf0   : > { %v363_v21 = vpop.permute.xlu2 %362 }
  0xf8   : > { %v399_v25 = vpop.permute.xlu2 %398 }
 0x107   : > { %v365_v17 = vpop.permute.xlu1 %364  ;;  %v329_v18 = vpop.permute.xlu0 %328 }
 0x108   : > { %v334_v19 = vsel %vm290_vm1, %v329_v18, 0  ;;  %v370_v20 = vsel %vm290_vm1, %v365_v17, 0 }
 0x109   : > { %343 = vmatpush.bf16.xpose.msra.mxu3 %v334_v19  ;;  %379 = vmatpush.bf16.xpose.msrb.mxu0 %v370_v20 }
 0x10f   : > { %v401_v22 = vpop.permute.xlu1 %400  ;;  %v326_v23 = vpop.permute.xlu0 %325 }
 0x110   : > { %508 = vmatmul.msk.bf16.vlgmr.msra.gmra.mxu3 %vm290_vm1, %v326_v23  ;;  %509 = vmatmul.msk.bf16.vlgmr.msrb.gmra.mxu0 %vm290_vm1, %v363_v21  ;;  %v406_v24 = vsel %vm290_vm1, %v401_v22, 0 }
 0x111   : > { %415 = vmatpush.bf16.xpose.msrb.mxu1 %v406_v24 }
 0x118   : > { %510 = vmatmul.msk.bf16.vlgmr.msrb.gmra.mxu1 %vm290_vm1, %v399_v25 }
 0x121   : > { %v306_v26 = vpop.f32.mrf.mxu2 }
 0x122   : > { %v310_v27 = vmul.f32 0.35355338, %v306_v26 }
 0x124   : > { %v312_v28 = vsel %vm311_vm2, %v310_v27, -inf }
 0x125   : > { %313 = vmax.xlane.f32.xlu0 %v312_v28 }
 0x129   : > { %v308_v29 = vpop.f32.mrf.mxu2 }
 0x18d   : > { %v381_v30 = vpop.f32.mrf.mxu0 }
 0x18e   : > { %v385_v31 = vmul.f32 0.35355338, %v381_v30 }
 0x190   : > { %v386_v32 = vsel %vm311_vm2, %v385_v31, -inf }
 0x191   : > { %387 = vmax.xlane.f32.xlu2 %v386_v32 }
 0x193   : > { %v345_v33 = vpop.f32.mrf.mxu3 }
 0x194   : > { %v349_v34 = vmul.f32 0.35355338, %v345_v33 }
 0x195   : > { %v383_v35 = vpop.f32.mrf.mxu0  ;;  %v417_v36 = vpop.f32.mrf.mxu1 }
 0x196   : > { %v421_v37 = vmul.f32 0.35355338, %v417_v36  ;;  %v350_v38 = vsel %vm311_vm2, %v349_v34, -inf }
 0x197   : > { %351 = vmax.xlane.f32.xlu1 %v350_v38 }
 0x198   : > { %v314_v39 = vpop.xlane.xlu0 %313  ;;  %v422_v40 = vsel %vm311_vm2, %v421_v37, -inf }
 0x199   : > { %v315_v41 = vsub.f32 %v310_v27, %v314_v39  ;;  %423 = vmax.xlane.f32.xlu2 %v422_v40 }
 0x19b   : > { %v316_v42 = vmul.f32 1.442695, %v315_v41  ;;  %v347_v43 = vpop.f32.mrf.mxu3 }
 0x19d   : > { %529 = vpow2.f32 %v316_v42  ;;  %v419_v44 = vpop.f32.mrf.mxu1 }
 0x1a3   : > { %v530_v45 = vpop.eup %529 }
 0x1a4   : > { %v318_v46 = vsel %vm311_vm2, %v530_v45, 0.0 }
 0x1a5   : > { %319 = vadd.xlane.f32.xlu0 %v318_v46 }
 0x204   : > { %v388_v47 = vpop.xlane.xlu2 %387 }
 0x205   : > { %v389_v48 = vsub.f32 %v385_v31, %v388_v47 }
 0x207   : > { %v390_v49 = vmul.f32 1.442695, %v389_v48 }
 0x209   : > { %531 = vpow2.f32 %v390_v49 }
 0x20a   : > { %v352_v50 = vpop.xlane.xlu1 %351 }
 0x20b   : > { %v353_v51 = vsub.f32 %v349_v34, %v352_v50 }
 0x20c   : > { %v424_v52 = vpop.xlane.xlu2 %423 }
 0x20d   : > { %v354_v53 = vmul.f32 1.442695, %v353_v51  ;;  %v425_v54 = vsub.f32 %v421_v37, %v424_v52 }
 0x20f   : > { %v532_v55 = vpop.eup %531  ;;  %533 = vpow2.f32 %v354_v53  ;;  %v426_v56 = vmul.f32 1.442695, %v425_v54 }
 0x210   : > { %v392_v57 = vsel %vm311_vm2, %v532_v55, 0.0 }
 0x211   : > { %535 = vpow2.f32 %v426_v56  ;;  %393 = vadd.xlane.f32.xlu2 %v392_v57 }
 0x215   : > { %v534_v58 = vpop.eup %533 }
 0x216   : > { %v356_v59 = vsel %vm311_vm2, %v534_v58, 0.0 }
 0x217   : > { %v536_v60 = vpop.eup %535  ;;  %357 = vadd.xlane.f32.xlu1 %v356_v59 }
 0x218   : > { %v428_v61 = vsel %vm311_vm2, %v536_v60, 0.0  ;;  %v320_v62 = vpop.xlane.xlu0 %319 }
 0x219   : > { %429 = vadd.xlane.f32.xlu0 %v428_v61  ;;  %537 = vrcp.f32 %v320_v62 }
 0x21f   : > { %v538_v2 = vpop.eup %537 }
 0x220   : > { %v322_v5 = vmul.f32 %v538_v2, %v530_v45 }
 0x284   : > { %v394_v63 = vpop.xlane.xlu2 %393 }
 0x285   : > { %539 = vrcp.f32 %v394_v63 }
 0x28a   : > { %v358_v0 = vpop.xlane.xlu1 %357 }
 0x28b   : > { %541 = vrcp.f32 %v358_v0  ;;  %v540_v3 = vpop.eup %539 }
 0x28c   : > { %v430_v1 = vpop.xlane.xlu0 %429  ;;  %v396_v8 = vmul.f32 %v540_v3, %v532_v55 }
 0x28d   : > { %543 = vrcp.f32 %v430_v1 }
 0x291   : > { %v542_v4 = vpop.eup %541 }
 0x292   : > { %v360_v6 = vmul.f32 %v542_v4, %v534_v58 }
 0x293   : > { %v544_v7 = vpop.eup %543 }
 0x294   : > { %v361_v9 = vadd.f32 %v360_v6, %v322_v5  ;;  %v432_v11 = vmul.f32 %v544_v7, %v536_v60 }
 0x296   : > { %v397_v10 = vadd.f32 %v396_v8, %v361_v9 }
 0x298   : > { %v433_v12 = vadd.f32 %v432_v11, %v397_v10 }
 0x29a   : > { %v434_v13 = vmul.f32 0.25, %v433_v12 }
 0x29c   : > { %435 = vst.msk [vmem:[%s217_s16] sm:$0x1] %vm311_vm2, %v434_v13 }
 0x29d PF: > { %s15_s18 = sadd.s32 1, %s551_s18  }
 0x29e   : > { %p12_p4 = scmp.ge.s32.totalorder %s15_s18, 4  }
 0x2a0   :  { %14 = sbr.rel (!%p12_p4) target bundleno = 1 (0x1), region = 70 }

// kernel: vit_with_token_compress.5
= control target key start
LH: loop header
LB: loop body
LE: loop exit
PB: predicated region body
PF: predicated region fallthrough
CT: control target
= control target key end

     0   :  { %s1976_s24 = smov 0   ;;  %s1978_s25 = smov 0   ;;  %s2254_s0 = inlined_call_operand.vmem [shape: f32[2,5,32], index: 0, kind: input, shape index: {}]   ;;  %s2255_s1 = inlined_call_operand.vmem [shape: f32[8,1,32], index: 1, kind: input, shape index: {}]   ;;  %s2256_s2 = inlined_call_operand.vmem [shape: f32[8,1,32], index: 2, kind: input, shape index: {}]   ;;  %s2257_s3 = inlined_call_operand.vmem [shape: bf16[8,32,32], index: 3, kind: input, shape index: {}]   ;;  %s2258_s4 = inlined_call_operand.vmem [shape: f32[8,1,32], index: 4, kind: input, shape index: {}]   ;;  %s2259_s5 = inlined_call_operand.vmem [shape: bf16[8,32,32], index: 5, kind: input, shape index: {}]   ;;  %s2260_s6 = inlined_call_operand.vmem [shape: f32[8,1,32], index: 6, kind: input, shape index: {}]   ;;  %s2261_s7 = inlined_call_operand.vmem [shape: bf16[8,32,32], index: 7, kind: input, shape index: {}]   ;;  %s2262_s8 = inlined_call_operand.vmem [shape: f32[8,1,32], index: 8, kind: input, shape index: {}]   ;;  %s2263_s9 = inlined_call_operand.vmem [shape: bf16[8,32,32], index: 9, kind: input, shape index: {}]   ;;  %s2264_s10 = inlined_call_operand.vmem [shape: f32[8,1,32], index: 10, kind: input, shape index: {}]   ;;  %s2265_s11 = inlined_call_operand.vmem [shape: f32[8,1,32], index: 11, kind: input, shape index: {}]   ;;  %s2266_s12 = inlined_call_operand.vmem [shape: f32[8,1,32], index: 12, kind: input, shape index: {}]   ;;  %s2267_s13 = inlined_call_operand.vmem [shape: bf16[8,32,64], index: 13, kind: input, shape index: {}]   ;;  %s2268_s14 = inlined_call_operand.vmem [shape: f32[8,1,64], index: 14, kind: input, shape index: {}]   ;;  %s2269_s15 = inlined_call_operand.vmem [shape: bf16[8,64,32], index: 15, kind: input, shape index: {}]   ;;  %s2270_s16 = inlined_call_operand.vmem [shape: f32[8,1,32], index: 16, kind: input, shape index: {}]   ;;  %s2271_s17 = inlined_call_operand.vmem [shape: f32[2,5,32], index: 17, kind: output, shape index: {}]  }
   0x1   :  { %2277 = sst [smem:[#allocation9_spill]] %s2254_s0  ;;  %s1980_s26 = smov 0  }
   0x2   :  { %2278 = sst [smem:[#allocation10_spill]] %s2255_s1  ;;  %s1982_s27 = smov 0  }
   0x3   :  { %2279 = sst [smem:[#allocation11_spill]] %s2257_s3  ;;  %s1984_s28 = smov 0  }
   0x4   :  { %2280 = sst [smem:[#allocation12_spill]] %s2258_s4 }
   0x5   :  { %2281 = sst [smem:[#allocation13_spill]] %s2259_s5 }
   0x6   :  { %2282 = sst [smem:[#allocation14_spill]] %s2261_s7 }
   0x7   :  { %2283 = sst [smem:[#allocation15_spill]] %s2263_s9 }
   0x8   :  { %2284 = sst [smem:[#allocation16_spill]] %s2264_s10 }
   0x9   :  { %2285 = sst [smem:[#allocation17_spill]] %s2265_s11 }
   0xa   :  { %2286 = sst [smem:[#allocation18_spill]] %s2268_s14 }
   0xb   :  { %2287 = sst [smem:[#allocation19_spill]] %s2269_s15 }
   0xc   :  { %2288 = sst [smem:[#allocation20_spill]] %s2270_s16 }
   0xd   :  { %2289 = sst [smem:[#allocation21_spill]] %s2271_s17 }
   0xe LB: > { %2290 = sst [smem:[#allocation2_spill]] %s1863_s24  ;;  %s36_s29 = sadd.s32 1, %s1871_s26  ;;  %s1879_s28 = sphi %s1984_s28, %s27_s28   ;;  %s1875_s27 = sphi %s1982_s27, %s2330_s27   ;;  %s1871_s26 = sphi %s1980_s26, %s2329_s26   ;;  %s1867_s25 = sphi %s1978_s25, %s2328_s25   ;;  %s1863_s24 = sphi %s1976_s24, %s2327_s24  }
   0xf   : > { %2291 = sst [smem:[#allocation3_spill]] %s1871_s26  ;;  %s39_s0 = sadd.s32 1, %s1875_s27 }
  0x10   : > { %2292 = sst [smem:[#allocation4_spill]] %s1875_s27  ;;  %p37_p0 = scmp.ge.s32.totalorder %s36_s29, 6 }
  0x11   : > { %2293 = sst [smem:[#allocation5_spill]] %s1879_s28  ;;  %p1661_p1 = scmp.ge.s32.totalorder %s1879_s28, 1 }
  0x12   : > { %p638_p2 = scmp.lt.s32.totalorder %s1879_s28, 13  ;;  %s2332_s29 = smov (%p37_p0, %s36_s29), 0 }
  0x13   : > { %2294 = sst [smem:[#allocation6_spill]] %s2332_s29  ;;  %s2334_s0 = smov (!%p37_p0, %s39_s0), %s1875_s27 }
  0x14   : > { %p639_p3 = pnand %p1661_p1, %p638_p2  ;;  %p41_p4 = scmp.ge.s32.totalorder %s2334_s0, 2 }
  0x16   : > { %s2336_s0 = smov (%p41_p4, %s2334_s0), 0  ;;  %642 = sbr.rel (%p639_p3) target bundleno = 2218 (0x8aa), region = 88 }
  0x17   : > { %2295 = sst [smem:[#allocation7_spill]] %s2336_s0 }
  0x1b   : > { %p748_p5 = scmp.lt.s32.totalorder %s1867_s25, 1  ;;  %p752_p6 = scmp.lt.s32.totalorder %s1863_s24, 7 }
  0x1c   : > { %s2296_s20 = sld [smem:[#allocation9_spill]] }
  0x1d   : > { %s2338_s25 = smov (!%p748_p5, %s1867_s25), 1  ;;  %s2298_s3 = sld [smem:[#allocation11_spill]] }
  0x1e   : > { %s2010_s30 = scalar_select %p752_p6, %s1863_s24, 7 }
  0x1f   : > { %s1662_s18 = sshll.u32 %s2338_s25, 3  ;;  %s2300_s5 = sld [smem:[#allocation13_spill]] }
  0x20   : > { %s1744_s24 = sshll.u32 %s2010_s30, 4  ;;  %s2301_s7 = sld [smem:[#allocation14_spill]] }
  0x21   : > { %s2302_s9 = sld [smem:[#allocation15_spill]]  ;;  %s2071_s17 = scalar_lea.vmem %s2267_s13, %s1744_s24 }
  0x22   : > { %s751_s21 = scalar_lea.vmem %s2296_s20, %s1662_s18  ;;  %s2308_s26 = sld [smem:[#allocation19_spill]] }
  0x23   : > { %s2027_s25 = scalar_lea.vmem %s2298_s3, %s1744_s24  ;;  %s2306_s3 = sld [smem:[#allocation18_spill]] }
  0x25   : > { %s2036_s22 = scalar_lea.vmem %s2300_s5, %s1744_s24  ;;  %s2307_s5 = sld [smem:[#allocation20_spill]] }
  0x26   : > { %s2045_s29 = scalar_lea.vmem %s2301_s7, %s1744_s24  ;;  %s2309_s7 = sld [smem:[#allocation21_spill]] }
  0x27   : > { %s2054_s1 = scalar_lea.vmem %s2302_s9, %s1744_s24  ;;  %s2310_s24 = sld [smem:[#allocation2_spill]] }
  0x28   : > { %2303 = sst [smem:[#allocation8_spill]] %s2054_s1  ;;  %s1749_s1 = sshll.u32 %s2010_s30, 5 }
  0x29   : > { %s803_s9 = scalar_lea.vmem %s2306_s3, %s2010_s30  ;;  %s2085_s11 = scalar_lea.vmem %s2308_s26, %s1749_s1 }
  0x2b   : > { %s811_s10 = scalar_lea.vmem %s2307_s5, %s2010_s30 }
  0x2c   : > { %s2090_s4 = scalar_lea.vmem %s2309_s7, %s1662_s18 }
  0x2d   : > { %p1676_p7 = scmp.ne.s32.totalorder %s2310_s24, 0 }
  0x2f   : > { %820 = sbr.rel (%p1676_p7) target bundleno = 54 (0x36), region = 92 }
  0x34   : > { %v821_v0 = vld [vmem:[%s751_s21] sm:$0x1f]  ;;  %vm822_vm0 = vcmask 258048  }
  0x35   : > { %823 = vst.msk [vmem:[%s2090_s4] sm:$0x1f] %vm822_vm0, %v821_v0 }
  0x36 PF: > { %vm827_vm1 = vcmask 258048   ;;  %v1881_v3 = vmov 32.0   ;;  %v1751_v15 = vld [vmem:[%s2027_s25 + $0x8] sm:$0xff]  ;;  %v1750_v18 = vld [vmem:[%s2027_s25] sm:$0xff]  ;;  %s2311_s7 = sld [smem:[#allocation10_spill]]  ;;  %s2313_s25 = scalar_lea.vmem %s2256_s2, %s2010_s30  ;;  %vm886_vm6 = vcmask 261120  }
  0x37   : > { %1817 = vrcp.f32 %v1881_v3  ;;  %v1753_v16 = vld [vmem:[%s2036_s22 + $0x8] sm:$0xff]  ;;  %896 = vmatpush.bf16.msra.mxu0 %v1751_v15  ;;  %v1752_v19 = vld [vmem:[%s2036_s22] sm:$0xff]  ;;  %s2314_s26 = scalar_lea.vmem %s2260_s6, %s2010_s30  ;;  %vm975_vm7 = vcmask 64512   ;;  %s2315_s19 = sld [smem:[#allocation12_spill]]  ;;  %vm1014_vm8 = vcmask 1041408   ;;  %vm1015_vm9 = vcmask 1042432  }
  0x38   : > { %v1755_v17 = vld [vmem:[%s2045_s29 + $0x8] sm:$0xff]  ;;  %929 = vmatpush.bf16.msra.mxu1 %v1753_v16  ;;  %v1754_v20 = vld [vmem:[%s2045_s29] sm:$0xff]  ;;  %s2317_s23 = scalar_lea.vmem %s2262_s8, %s2010_s30  ;;  %s1882_s28 = smov 112   ;;  %v1884_v45 = vmov 65535   ;;  %vm996_vm10 = vcmask 36864   ;;  %vm1099_vm11 = vcmask 1043456  }
  0x39   : > { %962 = vmatpush.bf16.msra.mxu2 %v1755_v17  ;;  %v1808_v33 = vld [vmem:[%s2313_s25] ss:$0 sm:$0xff]  ;;  %s1883_s27 = smov 120   ;;  %v1016_v46 = vsel %vm1014_vm8, 4294967295, %v1884_v45  ;;  %s1885_s24 = smov 104   ;;  %vm1010_vm12 = vcmask 39936  }
  0x3a   : > { %v1810_v37 = vld [vmem:[%s2314_s26] ss:$0 sm:$0xff]  ;;  %v2142_v52 = vsel %vm1015_vm9, %v1016_v46, 0  ;;  %s2318_s3 = sld [smem:[#allocation8_spill]]  ;;  %s2323_s15 = scalar_lea.vmem %s2266_s12, %s2010_s30  ;;  %vm1412_vm0 = vcmask 523264  }
  0x3b   : > { %897 = vmatpush.bf16.msra.mxu0 %v1750_v18  ;;  %v1811_v43 = vld [vmem:[%s2317_s23] ss:$0 sm:$0xff]  ;;  %s2321_s25 = sld [smem:[#allocation17_spill]] }
  0x3c   : > { %v2095_v1 = vld [vmem:[%s2090_s4] sm:$0x1f]  ;;  %930 = vmatpush.bf16.msra.mxu1 %v1752_v19  ;;  %s2312_s29 = scalar_lea.vmem %s2311_s7, %s2010_s30 }
  0x3d   : > { %v828_v2 = vsel %vm827_vm1, %v2095_v1, 0.0  ;;  %v1818_v4 = vpop.eup %1817  ;;  %963 = vmatpush.bf16.msra.mxu2 %v1754_v20  ;;  %v1807_v30 = vld [vmem:[%s2312_s29] ss:$0 sm:$0xff]  ;;  %s2316_s14 = scalar_lea.vmem %s2315_s19, %s2010_s30  ;;  %s2319_s29 = sld [smem:[#allocation16_spill]] }
  0x3e   : > { %829 = vadd.xlane.f32.xlu0 %v828_v2  ;;  %v832_v5 = vmul.f32 32.0, %v1818_v4  ;;  %vm836_vm2 = vweird.f32 %v1818_v4  ;;  %v1809_v41 = vld [vmem:[%s2316_s14] ss:$0 sm:$0xff] }
  0x40   : > { %v833_v6 = vsub.f32 1.0, %v832_v5  ;;  %v969_v20 = vld [vmem:[%s2318_s3] sm:$0xf] }
  0x41   : > { %s2322_s1 = scalar_lea.vmem %s2321_s25, %s2010_s30 }
  0x42   : > { %v834_v7 = vmul.f32 %v1818_v4, %v833_v6 }
  0x43   : > { %s2320_s18 = scalar_lea.vmem %s2319_s29, %s2010_s30 }
  0x44   : > { %v835_v8 = vadd.f32 %v1818_v4, %v834_v7 }
  0x46   : > { %v2099_v9 = vsel %vm836_vm2, %v1818_v4, %v835_v8 }
  0xb1   : > { %v830_v10 = vpop.xlane.xlu0 %829 }
  0xb2   : > { %v838_v11 = vmul.f32 %v2099_v9, %v830_v10 }
  0xb4   : > { %v839_v12 = vsub.f32 %v2095_v1, %v838_v11 }
  0xb6   : > { %v840_v13 = vmul.f32 %v839_v12, %v839_v12 }
  0xb8   : > { %v841_v14 = vsel %vm827_vm1, %v840_v13, 0.0 }
  0xb9   : > { %842 = vadd.xlane.f32.xlu0 %v841_v14 }
 0x12c   : > { %v843_v21 = vpop.xlane.xlu0 %842 }
 0x12d   : > { %v844_v22 = vmul.f32 %v843_v21, %v2099_v9  ;;  %v1120_v21 = vsel %vm1099_vm11, %v969_v20, 0  ;;  %v972_v20 = vld [vmem:[%s2318_s3 + $0xc] sm:$0xf] }
 0x12f   : > { %v845_v23 = vadd.f32 1e-12, %v844_v22 }
 0x131   : > { %1819 = vrsqrt.f32 %v845_v23  ;;  %vm852_vm4 = vweird.f32 %v845_v23 }
 0x137   : > { %v1820_v24 = vpop.eup %1819 }
 0x138   : > { %v847_v25 = vmul.f32 %v1820_v24, %v845_v23  ;;  %vm853_vm3 = vweird.f32 %v1820_v24 }
 0x139   : > { %vm854_vm5 = vmor %vm852_vm4, %vm853_vm3 }
 0x13a   : > { %v848_v26 = vmul.f32 %v1820_v24, %v847_v25 }
 0x13c   : > { %v849_v27 = vmul.f32 0.5, %v848_v26 }
 0x13e   : > { %v850_v28 = vsub.f32 1.5, %v849_v27 }
 0x140   : > { %v851_v29 = vmul.f32 %v1820_v24, %v850_v28 }
 0x142   : > { %v855_v31 = vsel %vm854_vm5, %v1820_v24, %v851_v29 }
 0x143   : > { %v856_v32 = vmul.f32 %v855_v31, %v839_v12 }
 0x145   : > { %v860_v34 = vmul.f32 %v1807_v30, %v856_v32 }
 0x147   : > { %v864_v35 = vadd.f32 %v1808_v33, %v860_v34 }
 0x149   : > { %v870_v36 = vpack.c.bf16 %v864_v35, %v864_v35 }
 0x14b   : > { %1685 = vmatmul.msk.bf16.vlgmr.msra.gmra.mxu0 %vm886_vm6, %v870_v36  ;;  %1694 = vmatmul.msk.bf16.vlgmr.msra.gmra.mxu1 %vm886_vm6, %v870_v36 }
 0x14c   : > { %1703 = vmatmul.msk.bf16.vlgmr.msra.gmra.mxu2 %vm886_vm6, %v870_v36 }
 0x1c8   : > { %v899_v38 = vpop.f32.mrf.mxu0  ;;  %v932_v39 = vpop.f32.mrf.mxu1 }
 0x1c9   : > { %v933_v40 = vadd.f32 %v1810_v37, %v932_v39  ;;  %v900_v47 = vadd.f32 %v1809_v41, %v899_v38 }
 0x1cb   : > { %v974_v42 = vpack.c.bf16 %v933_v40, %v933_v40  ;;  %v973_v54 = vpack.c.bf16 %v900_v47, %v900_v47 }
 0x1cd   : > { %1137 = vrot.lane.b32.xlu0 %v974_v42, %s1882_s28  ;;  %1039 = vrot.lane.b32.xlu2 %v974_v42, %s1883_s27  ;;  %v980_v44 = vsel %vm975_vm7, %v974_v42, 0 }
 0x1ce   : > { %989 = vmatpush.bf16.xpose.msra.mxu3 %v980_v44 }
 0x1cf   : > { %v965_v48 = vpop.f32.mrf.mxu2 }
 0x1d0   : > { %v966_v49 = vadd.f32 %v1811_v43, %v965_v48  ;;  %v901_v50 = vpop.f32.mrf.mxu0  ;;  %v934_v51 = vpop.f32.mrf.mxu1 }
 0x1d2   : > { %v2144_v53 = vpack.c.bf16 %v966_v49, %v966_v49 }
 0x1d4   : > { %v1019_v55 = vand.u32 %v2142_v52, %v2144_v53 }
 0x1d5   : > { %1036 = vrot.lane.b32.xlu2 %v973_v54, %s1883_s27  ;;  %1704 = vmatmul.msk.bf16.vlgmr.msra.gmra.mxu3 %vm975_vm7, %v973_v54 }
 0x1d6   : > { %1028 = vmatpush.bf16.msrb.mxu0 %v1019_v55 }
 0x1d7   : > { %v967_v56 = vpop.f32.mrf.mxu2 }
 0x1da   : > { %1129 = vmatpush.bf16.msra.mxu0 %v1120_v21  ;;  %v1275_v21 = vsel %vm1099_vm11, %v972_v20, 0 }
 0x1dd   : > { %1215 = vrot.lane.b32.xlu2 %v974_v42, %s1885_s24 }
 0x1e5   : > { %1213 = vrot.lane.b32.xlu2 %v973_v54, %s1885_s24 }
 0x227   : > { %v1040_v57 = vpop.permute.xlu2 %1039 }
 0x228   : > { %v1045_v58 = vsel %vm975_vm7, %v1040_v57, 0 }
 0x229   : > { %1054 = vmatpush.bf16.xpose.msrb.mxu1 %v1045_v58 }
 0x22f   : > { %v1037_v59 = vpop.permute.xlu2 %1036 }
 0x230   : > { %1706 = vmatmul.msk.bf16.vlgmr.msrb.gmra.mxu1 %vm975_vm7, %v1037_v59 }
 0x237   : > { %v1216_v13 = vpop.permute.xlu2 %1215 }
 0x238   : > { %v1221_v26 = vsel %vm975_vm7, %v1216_v13, 0 }
 0x23f   : > { %v1138_v60 = vpop.permute.xlu0 %1137  ;;  %v1214_v14 = vpop.permute.xlu2 %1213 }
 0x240   : > { %v1143_v61 = vsel %vm975_vm7, %v1138_v60, 0 }
 0x241   : > { %1152 = vmatpush.bf16.xpose.msra.mxu1 %v1143_v61 }
 0x258   : > { %v991_v62 = vpop.f32.mrf.mxu3 }
 0x259   : > { %v995_v63 = vmul.f32 0.35355338, %v991_v62 }
 0x25b   : > { %v997_v0 = vsel %vm996_vm10, %v995_v63, -inf }
 0x25c   : > { %998 = vmax.xlane.f32.xlu1 %v997_v0 }
 0x260   : > { %v993_v2 = vpop.f32.mrf.mxu3 }
 0x2ad   : > { %v1056_v3 = vpop.f32.mrf.mxu1 }
 0x2ae   : > { %v1060_v4 = vmul.f32 0.35355338, %v1056_v3 }
 0x2b0   : > { %v1061_v5 = vsel %vm996_vm10, %v1060_v4, -inf }
 0x2b1   : > { %1062 = vmax.xlane.f32.xlu2 %v1061_v5 }
 0x2b5   : > { %v1058_v6 = vpop.f32.mrf.mxu1 }
 0x2cf   : > { %v999_v7 = vpop.xlane.xlu1 %998 }
 0x2d0   : > { %v1000_v8 = vsub.f32 %v995_v63, %v999_v7 }
 0x2d2   : > { %v1001_v10 = vmul.f32 1.442695, %v1000_v8  ;;  %v971_v8 = vld [vmem:[%s2318_s3 + $0x8] sm:$0xf] }
 0x2d4   : > { %1821 = vpow2.f32 %v1001_v10  ;;  %v1197_v10 = vsel %vm1099_vm11, %v971_v8, 0 }
 0x2da   : > { %v1822_v11 = vpop.eup %1821 }
 0x2db   : > { %v1003_v12 = vsel %vm996_vm10, %v1822_v11, 0.0 }
 0x2dc   : > { %1004 = vadd.xlane.f32.xlu1 %v1003_v12 }
 0x2f5   : > { %1135 = vrot.lane.b32.xlu1 %v973_v54, %s1882_s28  ;;  %v970_v54 = vld [vmem:[%s2318_s3 + $0x4] sm:$0xf] }
 0x2f6   : > { %v1101_v55 = vsel %vm1099_vm11, %v970_v54, 0  ;;  %v1814_v54 = vld [vmem:[%s2323_s15] ss:$0 sm:$0xff] }
 0x2f7   : > { %1110 = vmatpush.bf16.msrb.mxu3 %v1101_v55 }
 0x2fb   : > { %1206 = vmatpush.bf16.msra.mxu3 %v1197_v10 }
 0x324   : > { %v1063_v15 = vpop.xlane.xlu2 %1062 }
 0x325   : > { %v1064_v16 = vsub.f32 %v1060_v4, %v1063_v15 }
 0x327   : > { %v1065_v17 = vmul.f32 1.442695, %v1064_v16 }
 0x329   : > { %1823 = vpow2.f32 %v1065_v17 }
 0x32f   : > { %v1824_v18 = vpop.eup %1823 }
 0x330   : > { %v1067_v19 = vsel %vm996_vm10, %v1824_v18, 0.0 }
 0x331   : > { %1068 = vadd.xlane.f32.xlu2 %v1067_v19 }
 0x34f   : > { %v1005_v22 = vpop.xlane.xlu1 %1004 }
 0x350   : > { %1825 = vrcp.f32 %v1005_v22 }
 0x356   : > { %v1826_v23 = vpop.eup %1825 }
 0x357   : > { %v1007_v24 = vmul.f32 %v1826_v23, %v1822_v11 }
 0x359   : > { %v1008_v25 = vpack.c.bf16 %v1007_v24, %v1007_v24 }
 0x35b   : > { %1705 = vmatmul.msk.bf16.vlgmr.msrb.gmra.mxu0 %vm1010_vm12, %v1008_v25 }
 0x35c   : > { %1230 = vmatpush.bf16.xpose.msrb.mxu0 %v1221_v26 }
 0x367   : > { %v1136_v27 = vpop.permute.xlu1 %1135 }
 0x368   : > { %1710 = vmatmul.msk.bf16.vlgmr.msra.gmra.mxu1 %vm975_vm7, %v1136_v27 }
 0x3a4   : > { %v1069_v40 = vpop.xlane.xlu2 %1068 }
 0x3d8   : > { %v1030_v28 = vpop.f32.mrf.mxu0 }
 0x3d9   : > { %v1034_v29 = vpack.c.bf16 %v1030_v28, %v1030_v28 }
 0x3db   : > { %1709 = vmatmul.msk.bf16.vlgmr.msra.gmra.mxu0 %vm975_vm7, %v1034_v29 }
 0x3e0   : > { %v1032_v30 = vpop.f32.mrf.mxu0 }
 0x3e1   : > { %v1812_v30 = vld [vmem:[%s2320_s18] ss:$0 sm:$0xff] }
 0x3e5   : > { %v1154_v31 = vpop.f32.mrf.mxu1 }
 0x3e6   : > { %v1158_v32 = vmul.f32 0.35355338, %v1154_v31 }
 0x3e8   : > { %v1159_v33 = vsel %vm996_vm10, %v1158_v32, -inf }
 0x3e9   : > { %1160 = vmax.xlane.f32.xlu0 %v1159_v33 }
 0x3eb   : > { %1713 = vmatmul.msk.bf16.vlgmr.msrb.gmra.mxu0 %vm975_vm7, %v1214_v14 }
 0x3ed   : > { %v1156_v34 = vpop.f32.mrf.mxu1 }
 0x3fd   : > { %1074 = vrot.lane.b32.xlu0 %v2144_v53, %s1883_s27 }
 0x458   : > { %v2170_v35 = vpop.f32.mrf.mxu0 }
 0x45c   : > { %v1161_v36 = vpop.xlane.xlu0 %1160 }
 0x45d   : > { %v1162_v37 = vsub.f32 %v1158_v32, %v1161_v36 }
 0x45f   : > { %v1163_v38 = vmul.f32 1.442695, %v1162_v37 }
 0x460   : > { %v1133_v39 = vpop.f32.mrf.mxu0 }
 0x461   : > { %1827 = vpow2.f32 %v1163_v38 }
 0x462   : > { %1829 = vrcp.f32 %v1069_v40  ;;  %v1757_v40 = vld [vmem:[%s2071_s17 + $0x8] sm:$0xff] }
 0x467   : > { %v1828_v41 = vpop.eup %1827 }
 0x468   : > { %v1232_v42 = vpop.f32.mrf.mxu0  ;;  %v1165_v43 = vsel %vm996_vm10, %v1828_v41, 0.0  ;;  %v1830_v46 = vpop.eup %1829 }
 0x469   : > { %v1236_v44 = vmul.f32 0.35355338, %v1232_v42  ;;  %1166 = vadd.xlane.f32.xlu2 %v1165_v43  ;;  %v1071_v47 = vmul.f32 %v1830_v46, %v1824_v18 }
 0x46b   : > { %v1237_v45 = vsel %vm996_vm10, %v1236_v44, -inf  ;;  %v1072_v51 = vpack.c.bf16 %v1071_v47, %v1071_v47 }
 0x46c   : > { %1238 = vmax.xlane.f32.xlu1 %v1237_v45 }
 0x46f   : > { %v1075_v48 = vpop.permute.xlu0 %1074 }
 0x470   : > { %v1080_v49 = vand.u32 %v1075_v48, %v2142_v52  ;;  %v1234_v50 = vpop.f32.mrf.mxu0 }
 0x471   : > { %v1813_v50 = vld [vmem:[%s2322_s1] ss:$0 sm:$0xff] }
 0x472   : > { %1089 = vmatpush.bf16.msrb.mxu2 %v1080_v49 }
 0x475   : > { %1707 = vmatmul.msk.bf16.vlgmr.msrb.gmra.mxu2 %vm1010_vm12, %v1072_v51 }
 0x485   : > { %1171 = vrot.lane.b32.xlu1 %v2144_v53, %s1882_s28 }
 0x4dc   : > { %v1167_v60 = vpop.xlane.xlu2 %1166 }
 0x4df   : > { %v1239_v56 = vpop.xlane.xlu1 %1238 }
 0x4e0   : > { %v1240_v57 = vsub.f32 %v1236_v44, %v1239_v56 }
 0x4e2   : > { %v1241_v58 = vmul.f32 1.442695, %v1240_v57 }
 0x4e4   : > { %1831 = vpow2.f32 %v1241_v58  ;;  %v1761_v58 = vld [vmem:[%s2085_s11 + $0x18] sm:$0xff] }
 0x4e5   : > { %1833 = vrcp.f32 %v1167_v60  ;;  %1420 = vmatpush.bf16.msra.mxu0 %v1761_v58  ;;  %v1759_v60 = vld [vmem:[%s2085_s11 + $0x8] sm:$0xff] }
 0x4ea   : > { %v1832_v59 = vpop.eup %1831 }
 0x4eb   : > { %v1243_v61 = vsel %vm996_vm10, %v1832_v59, 0.0  ;;  %v1834_v62 = vpop.eup %1833 }
 0x4ec   : > { %1244 = vadd.xlane.f32.xlu2 %v1243_v61  ;;  %v1169_v63 = vmul.f32 %v1834_v62, %v1828_v41  ;;  %v1758_v61 = vld [vmem:[%s2085_s11] sm:$0xff] }
 0x4ed   : > { %v1815_v62 = vld [vmem:[%s803_s9] ss:$0 sm:$0xff] }
 0x4ee   : > { %v1170_v5 = vpack.c.bf16 %v1169_v63, %v1169_v63 }
 0x4f7   : > { %v1172_v0 = vpop.permute.xlu1 %1171 }
 0x4f8   : > { %v1177_v2 = vand.u32 %v1172_v0, %v2142_v52  ;;  %v1091_v3 = vpop.f32.mrf.mxu2 }
 0x4f9   : > { %v1095_v4 = vpack.c.bf16 %v1091_v3, %v1091_v3 }
 0x4fa   : > { %1186 = vmatpush.bf16.msra.mxu2 %v1177_v2 }
 0x4fb   : > { %1708 = vmatmul.msk.bf16.vlgmr.msrb.gmra.mxu3 %vm975_vm7, %v1095_v4 }
 0x4fc   : > { %1359 = vmatpush.bf16.msrb.mxu3 %v1757_v40 }
 0x4fd   : > { %1711 = vmatmul.msk.bf16.vlgmr.msra.gmra.mxu2 %vm1010_vm12, %v1170_v5 }
 0x4fe   : > { %1284 = vmatpush.bf16.msrb.mxu2 %v1275_v21 }
 0x500   : > { %v1093_v6 = vpop.f32.mrf.mxu2 }
 0x504   : > { %1249 = vrot.lane.b32.xlu2 %v2144_v53, %s1885_s24 }
 0x55f   : > { %v1245_v7 = vpop.xlane.xlu2 %1244 }
 0x560   : > { %1835 = vrcp.f32 %v1245_v7 }
 0x566   : > { %v1836_v11 = vpop.eup %1835 }
 0x567   : > { %v1247_v12 = vmul.f32 %v1836_v11, %v1832_v59  ;;  %v1250_v13 = vpop.permute.xlu2 %1249  ;;  %v1760_v59 = vld [vmem:[%s2085_s11 + $0x10] sm:$0xff] }
 0x568   : > { %v1255_v14 = vand.u32 %v1250_v13, %v2142_v52  ;;  %1421 = vmatpush.bf16.msra.mxu0 %v1760_v59 }
 0x569   : > { %v1248_v15 = vpack.c.bf16 %v1247_v12, %v1247_v12 }
 0x56a   : > { %1264 = vmatpush.bf16.msrb.mxu1 %v1255_v14  ;;  %v1816_v14 = vld [vmem:[%s811_s10] ss:$0 sm:$0xff] }
 0x56c   : > { %1422 = vmatpush.bf16.msra.mxu0 %v1759_v60 }
 0x56d   : > { %1714 = vmatmul.msk.bf16.vlgmr.msrb.gmra.mxu1 %vm1010_vm12, %v1248_v15 }
 0x570   : > { %1423 = vmatpush.bf16.msra.mxu0 %v1758_v61 }
 0x57e   : > { %v1112_v16 = vpop.f32.mrf.mxu3 }
 0x57f   : > { %v1132_v24 = vadd.f32 %v2170_v35, %v1112_v16 }
 0x580   : > { %v1188_v17 = vpop.f32.mrf.mxu2 }
 0x581   : > { %v1192_v18 = vpack.c.bf16 %v1188_v17, %v1188_v17 }
 0x583   : > { %1712 = vmatmul.msk.bf16.vlgmr.msra.gmra.mxu3 %vm975_vm7, %v1192_v18 }
 0x586   : > { %v1114_v53 = vpop.f32.mrf.mxu3 }
 0x588   : > { %v1190_v19 = vpop.f32.mrf.mxu2 }
 0x5ea   : > { %v1266_v22 = vpop.f32.mrf.mxu1 }
 0x5eb   : > { %v1270_v23 = vpack.c.bf16 %v1266_v22, %v1266_v22 }
 0x5ed   : > { %1715 = vmatmul.msk.bf16.vlgmr.msrb.gmra.mxu2 %vm975_vm7, %v1270_v23 }
 0x5f2   : > { %v1268_v52 = vpop.f32.mrf.mxu1 }
 0x606   : > { %v1208_v25 = vpop.f32.mrf.mxu3 }
 0x607   : > { %v1212_v26 = vadd.f32 %v1208_v25, %v1132_v24 }
 0x60e   : > { %v1210_v27 = vpop.f32.mrf.mxu3 }
 0x670   : > { %v1286_v28 = vpop.f32.mrf.mxu2 }
 0x671   : > { %v1290_v29 = vadd.f32 %v1286_v28, %v1212_v26 }
 0x673   : > { %v1291_v31 = vadd.f32 %v1290_v29, %v2095_v1  ;;  %v1756_v1 = vld [vmem:[%s2071_s17] sm:$0xff] }
 0x674   : > { %1360 = vmatpush.bf16.msrb.mxu3 %v1756_v1 }
 0x675   : > { %v2201_v32 = vadd.f32 %v1812_v30, %v1291_v31 }
 0x677   : > { %v1299_v33 = vsel %vm827_vm1, %v2201_v32, 0.0 }
 0x678   : > { %v1288_v34 = vpop.f32.mrf.mxu2  ;;  %1300 = vadd.xlane.f32.xlu0 %v1299_v33 }
 0x6eb   : > { %v1301_v35 = vpop.xlane.xlu0 %1300 }
 0x6ec   : > { %v1302_v36 = vmul.f32 %v1301_v35, %v2099_v9 }
 0x6ee   : > { %v1303_v37 = vsub.f32 %v2201_v32, %v1302_v36 }
 0x6f0   : > { %v1304_v38 = vmul.f32 %v1303_v37, %v1303_v37 }
 0x6f2   : > { %v1305_v39 = vsel %vm827_vm1, %v1304_v38, 0.0 }
 0x6f3   : > { %1306 = vadd.xlane.f32.xlu1 %v1305_v39 }
 0x766   : > { %v1307_v41 = vpop.xlane.xlu1 %1306 }
 0x767   : > { %v1308_v42 = vmul.f32 %v1307_v41, %v2099_v9 }
 0x769   : > { %v1309_v43 = vadd.f32 1e-12, %v1308_v42 }
 0x76b   : > { %1837 = vrsqrt.f32 %v1309_v43  ;;  %vm1316_vm14 = vweird.f32 %v1309_v43 }
 0x771   : > { %v1838_v44 = vpop.eup %1837 }
 0x772   : > { %v1311_v45 = vmul.f32 %v1838_v44, %v1309_v43  ;;  %vm1317_vm13 = vweird.f32 %v1838_v44 }
 0x773   : > { %vm1318_vm15 = vmor %vm1316_vm14, %vm1317_vm13 }
 0x774   : > { %v1312_v46 = vmul.f32 %v1838_v44, %v1311_v45 }
 0x776   : > { %v1313_v47 = vmul.f32 0.5, %v1312_v46 }
 0x778   : > { %v1314_v48 = vsub.f32 1.5, %v1313_v47 }
 0x77a   : > { %v1315_v49 = vmul.f32 %v1838_v44, %v1314_v48 }
 0x77c   : > { %v1319_v9 = vsel %vm1318_vm15, %v1838_v44, %v1315_v49 }
 0x77d   : > { %v1320_v51 = vmul.f32 %v1319_v9, %v1303_v37 }
 0x77f   : > { %v1324_v55 = vmul.f32 %v1813_v50, %v1320_v51 }
 0x781   : > { %v1328_v56 = vadd.f32 %v1814_v54, %v1324_v55 }
 0x783   : > { %v1334_v57 = vpack.c.bf16 %v1328_v56, %v1328_v56 }
 0x785   : > { %1724 = vmatmul.msk.bf16.vlgmr.msrb.gmra.mxu3 %vm886_vm6, %v1334_v57 }
 0x808   : > { %v1362_v63 = vpop.f32.mrf.mxu3 }
 0x809   : > { %v1363_v0 = vadd.f32 %v1815_v62, %v1362_v63 }
 0x80b   : > { %v1366_v2 = vmul.f32 %v1363_v0, %v1363_v0 }
 0x80d   : > { %v1367_v3 = vmul.f32 %v1366_v2, %v1363_v0 }
 0x80f   : > { %v1368_v4 = vmul.f32 0.044715, %v1367_v3 }
 0x810   : > { %v1364_v5 = vpop.f32.mrf.mxu3 }
 0x811   : > { %v1369_v6 = vadd.f32 %v1368_v4, %v1363_v0 }
 0x813   : > { %v1370_v7 = vmul.f32 0.7978846, %v1369_v6 }
 0x815   : > { %1839 = vtanh.f32 %v1370_v7 }
 0x81b   : > { %v1840_v8 = vpop.eup %1839 }
 0x81c   : > { %v1372_v10 = vadd.f32 1.0, %v1840_v8 }
 0x81e   : > { %v1373_v11 = vmul.f32 0.5, %v1372_v10 }
 0x820   : > { %v1374_v12 = vmul.f32 %v1373_v11, %v1363_v0 }
 0x822   : > { %v1384_v13 = vpack.c.bf16 %v1374_v12, %v1374_v12 }
 0x824   : > { %1741 = vmatmul.msk.bf16.vlgmr.msra.gmra.mxu0 %vm1412_vm0, %v1384_v13 }
 0x8a1   : > { %v1425_v15 = vpop.f32.mrf.mxu0 }
 0x8a2   : > { %v1426_v16 = vadd.f32 %v1816_v14, %v1425_v15 }
 0x8a4   : > { %v1429_v17 = vadd.f32 %v1426_v16, %v2201_v32 }
 0x8a6   : > { %1430 = vst.msk [vmem:[%s2090_s4] sm:$0x1f] %vm827_vm1, %v1429_v17 }
 0x8a9   : > { %v1427_v18 = vpop.f32.mrf.mxu0 }
 0x8aa PF: > { %s2326_s0 = sld [smem:[#allocation5_spill]] }
 0x8ab   : > { %s2327_s24 = sld [smem:[#allocation3_spill]] }
 0x8ac   : > { %s2328_s25 = sld [smem:[#allocation4_spill]] }
 0x8ad   : > { %s2329_s26 = sld [smem:[#allocation6_spill]] }
 0x8ae   : > { %s2330_s27 = sld [smem:[#allocation7_spill]] }
 0x8b0   : > { %s27_s28 = sadd.s32 1, %s2326_s0  }
 0x8b1   : > { %p24_p8 = scmp.ge.s32.totalorder %s27_s28, 14  }
 0x8b3   :  { %26 = sbr.rel (!%p24_p8) target bundleno = 14 (0xe), region = 170 }

// kernel: vit_with_token_compress.7
= control target key start
LH: loop header
LB: loop body
LE: loop exit
PB: predicated region body
PF: predicated region fallthrough
CT: control target
= control target key end

     0   :  { %s2088_s24 = smov 0   ;;  %s2090_s25 = smov 0   ;;  %s2365_s0 = inlined_call_operand.vmem [shape: f32[2,3,32], index: 0, kind: input, shape index: {}]   ;;  %s2366_s1 = inlined_call_operand.vmem [shape: f32[8,1,32], index: 1, kind: input, shape index: {}]   ;;  %s2367_s2 = inlined_call_operand.vmem [shape: f32[8,1,32], index: 2, kind: input, shape index: {}]   ;;  %s2368_s3 = inlined_call_operand.vmem [shape: bf16[8,32,32], index: 3, kind: input, shape index: {}]   ;;  %s2369_s4 = inlined_call_operand.vmem [shape: f32[8,1,32], index: 4, kind: input, shape index: {}]   ;;  %s2370_s5 = inlined_call_operand.vmem [shape: bf16[8,32,32], index: 5, kind: input, shape index: {}]   ;;  %s2371_s6 = inlined_call_operand.vmem [shape: f32[8,1,32], index: 6, kind: input, shape index: {}]   ;;  %s2372_s7 = inlined_call_operand.vmem [shape: bf16[8,32,32], index: 7, kind: input, shape index: {}]   ;;  %s2373_s8 = inlined_call_operand.vmem [shape: f32[8,1,32], index: 8, kind: input, shape index: {}]   ;;  %s2374_s9 = inlined_call_operand.vmem [shape: bf16[8,32,32], index: 9, kind: input, shape index: {}]   ;;  %s2375_s10 = inlined_call_operand.vmem [shape: f32[8,1,32], index: 10, kind: input, shape index: {}]   ;;  %s2376_s11 = inlined_call_operand.vmem [shape: f32[8,1,32], index: 11, kind: input, shape index: {}]   ;;  %s2377_s12 = inlined_call_operand.vmem [shape: f32[8,1,32], index: 12, kind: input, shape index: {}]   ;;  %s2378_s13 = inlined_call_operand.vmem [shape: bf16[8,32,64], index: 13, kind: input, shape index: {}]   ;;  %s2379_s14 = inlined_call_operand.vmem [shape: f32[8,1,64], index: 14, kind: input, shape index: {}]   ;;  %s2380_s15 = inlined_call_operand.vmem [shape: bf16[8,64,32], index: 15, kind: input, shape index: {}]   ;;  %s2381_s16 = inlined_call_operand.vmem [shape: f32[8,1,32], index: 16, kind: input, shape index: {}]   ;;  %s2382_s17 = inlined_call_operand.vmem [shape: f32[2,3,32], index: 17, kind: output, shape index: {}]  }
   0x1   :  { %2388 = sst [smem:[#allocation9_spill]] %s2365_s0  ;;  %s2092_s26 = smov 0  }
   0x2   :  { %2389 = sst [smem:[#allocation10_spill]] %s2366_s1  ;;  %s2094_s27 = smov 0  }
   0x3   :  { %2390 = sst [smem:[#allocation11_spill]] %s2368_s3  ;;  %s2096_s28 = smov 0  }
   0x4   :  { %2391 = sst [smem:[#allocation12_spill]] %s2369_s4 }
   0x5   :  { %2392 = sst [smem:[#allocation13_spill]] %s2370_s5 }
   0x6   :  { %2393 = sst [smem:[#allocation14_spill]] %s2372_s7 }
   0x7   :  { %2394 = sst [smem:[#allocation15_spill]] %s2374_s9 }
   0x8   :  { %2395 = sst [smem:[#allocation16_spill]] %s2375_s10 }
   0x9   :  { %2396 = sst [smem:[#allocation17_spill]] %s2376_s11 }
   0xa   :  { %2397 = sst [smem:[#allocation18_spill]] %s2379_s14 }
   0xb   :  { %2398 = sst [smem:[#allocation19_spill]] %s2380_s15 }
   0xc   :  { %2399 = sst [smem:[#allocation20_spill]] %s2381_s16 }
   0xd   :  { %2400 = sst [smem:[#allocation21_spill]] %s2382_s17 }
   0xe LB: > { %2401 = sst [smem:[#allocation2_spill]] %s1975_s24  ;;  %s36_s29 = sadd.s32 1, %s1983_s26  ;;  %s1991_s28 = sphi %s2096_s28, %s27_s28   ;;  %s1987_s27 = sphi %s2094_s27, %s2441_s27   ;;  %s1983_s26 = sphi %s2092_s26, %s2440_s26   ;;  %s1979_s25 = sphi %s2090_s25, %s2439_s25   ;;  %s1975_s24 = sphi %s2088_s24, %s2438_s24  }
   0xf   : > { %2402 = sst [smem:[#allocation3_spill]] %s1983_s26  ;;  %s39_s0 = sadd.s32 1, %s1987_s27 }
  0x10   : > { %2403 = sst [smem:[#allocation4_spill]] %s1987_s27  ;;  %p37_p0 = scmp.ge.s32.totalorder %s36_s29, 2 }
  0x11   : > { %2404 = sst [smem:[#allocation5_spill]] %s1991_s28  ;;  %p1773_p1 = scmp.ge.s32.totalorder %s1991_s28, 1 }
  0x12   : > { %p702_p2 = scmp.lt.s32.totalorder %s1991_s28, 5  ;;  %s2443_s29 = smov (%p37_p0, %s36_s29), 0 }
  0x13   : > { %2405 = sst [smem:[#allocation6_spill]] %s2443_s29  ;;  %s2445_s0 = smov (!%p37_p0, %s39_s0), %s1987_s27 }
  0x14   : > { %p703_p3 = pnand %p1773_p1, %p702_p2  ;;  %p41_p4 = scmp.ge.s32.totalorder %s2445_s0, 2 }
  0x16   : > { %s2447_s0 = smov (%p41_p4, %s2445_s0), 0  ;;  %706 = sbr.rel (%p703_p3) target bundleno = 2218 (0x8aa), region = 88 }
  0x17   : > { %2406 = sst [smem:[#allocation7_spill]] %s2447_s0 }
  0x1b   : > { %p828_p5 = scmp.lt.s32.totalorder %s1979_s25, 1  ;;  %s832_s30 = sadd.s32 6, %s1975_s24 }
  0x1c   : > { %p833_p6 = scmp.lt.s32.totalorder %s832_s30, 7  ;;  %s2407_s20 = sld [smem:[#allocation9_spill]] }
  0x1d   : > { %s2449_s25 = smov (!%p828_p5, %s1979_s25), 1  ;;  %s2409_s3 = sld [smem:[#allocation11_spill]] }
  0x1e   : > { %s2451_s30 = smov (!%p833_p6, %s832_s30), 7  ;;  %s1774_s18 = sshll.u32 %s2449_s25, 2 }
  0x1f   : > { %s1856_s24 = sshll.u32 %s2451_s30, 4  ;;  %s2411_s5 = sld [smem:[#allocation13_spill]] }
  0x20   : > { %s2412_s7 = sld [smem:[#allocation14_spill]]  ;;  %s2182_s17 = scalar_lea.vmem %s2378_s13, %s1856_s24 }
  0x21   : > { %s2413_s9 = sld [smem:[#allocation15_spill]] }
  0x22   : > { %s831_s21 = scalar_lea.vmem %s2407_s20, %s1774_s18  ;;  %s2419_s26 = sld [smem:[#allocation19_spill]] }
  0x23   : > { %s2138_s25 = scalar_lea.vmem %s2409_s3, %s1856_s24  ;;  %s2417_s3 = sld [smem:[#allocation18_spill]] }
  0x25   : > { %s2147_s22 = scalar_lea.vmem %s2411_s5, %s1856_s24  ;;  %s2418_s5 = sld [smem:[#allocation20_spill]] }
  0x26   : > { %s2156_s29 = scalar_lea.vmem %s2412_s7, %s1856_s24  ;;  %s2420_s7 = sld [smem:[#allocation21_spill]] }
  0x27   : > { %s2165_s1 = scalar_lea.vmem %s2413_s9, %s1856_s24  ;;  %s2421_s24 = sld [smem:[#allocation2_spill]] }
  0x28   : > { %2414 = sst [smem:[#allocation8_spill]] %s2165_s1  ;;  %s1861_s1 = sshll.u32 %s2451_s30, 5 }
  0x29   : > { %s910_s9 = scalar_lea.vmem %s2417_s3, %s2451_s30  ;;  %s2196_s11 = scalar_lea.vmem %s2419_s26, %s1861_s1 }
  0x2b   : > { %s922_s10 = scalar_lea.vmem %s2418_s5, %s2451_s30 }
  0x2c   : > { %s2201_s4 = scalar_lea.vmem %s2420_s7, %s1774_s18 }
  0x2d   : > { %p1788_p7 = scmp.ne.s32.totalorder %s2421_s24, 0 }
  0x2f   : > { %932 = sbr.rel (%p1788_p7) target bundleno = 54 (0x36), region = 92 }
  0x34   : > { %v933_v0 = vld [vmem:[%s831_s21] sm:$0x7]  ;;  %vm934_vm0 = vcmask 256000  }
  0x35   : > { %935 = vst.msk [vmem:[%s2201_s4] sm:$0x7] %vm934_vm0, %v933_v0 }
  0x36 PF: > { %vm939_vm1 = vcmask 256000   ;;  %v1993_v3 = vmov 32.0   ;;  %v1863_v15 = vld [vmem:[%s2138_s25 + $0x8] sm:$0xff]  ;;  %v1862_v18 = vld [vmem:[%s2138_s25] sm:$0xff]  ;;  %s2422_s7 = sld [smem:[#allocation10_spill]]  ;;  %s2424_s25 = scalar_lea.vmem %s2367_s2, %s2451_s30  ;;  %vm998_vm6 = vcmask 261120  }
  0x37   : > { %1929 = vrcp.f32 %v1993_v3  ;;  %v1865_v16 = vld [vmem:[%s2147_s22 + $0x8] sm:$0xff]  ;;  %1008 = vmatpush.bf16.msra.mxu0 %v1863_v15  ;;  %v1864_v19 = vld [vmem:[%s2147_s22] sm:$0xff]  ;;  %s2425_s26 = scalar_lea.vmem %s2371_s6, %s2451_s30  ;;  %vm1087_vm7 = vcmask 64512   ;;  %s2426_s19 = sld [smem:[#allocation12_spill]]  ;;  %vm1126_vm8 = vcmask 1040384   ;;  %vm1127_vm9 = vcmask 1041408  }
  0x38   : > { %v1867_v17 = vld [vmem:[%s2156_s29 + $0x8] sm:$0xff]  ;;  %1041 = vmatpush.bf16.msra.mxu1 %v1865_v16  ;;  %v1866_v20 = vld [vmem:[%s2156_s29] sm:$0xff]  ;;  %s2428_s23 = scalar_lea.vmem %s2373_s8, %s2451_s30  ;;  %s1994_s28 = smov 112   ;;  %v1996_v45 = vmov 65535   ;;  %vm1108_vm10 = vcmask 18432   ;;  %vm1211_vm11 = vcmask 1043456  }
  0x39   : > { %1074 = vmatpush.bf16.msra.mxu2 %v1867_v17  ;;  %v1920_v33 = vld [vmem:[%s2424_s25] ss:$0 sm:$0xff]  ;;  %s1995_s27 = smov 120   ;;  %v1128_v46 = vsel %vm1126_vm8, 4294967295, %v1996_v45  ;;  %s1997_s24 = smov 104   ;;  %vm1122_vm12 = vcmask 23552  }
  0x3a   : > { %v1922_v37 = vld [vmem:[%s2425_s26] ss:$0 sm:$0xff]  ;;  %v2253_v52 = vsel %vm1127_vm9, %v1128_v46, 0  ;;  %s2429_s3 = sld [smem:[#allocation8_spill]]  ;;  %s2434_s15 = scalar_lea.vmem %s2377_s12, %s2451_s30  ;;  %vm1524_vm0 = vcmask 523264  }
  0x3b   : > { %1009 = vmatpush.bf16.msra.mxu0 %v1862_v18  ;;  %v1923_v43 = vld [vmem:[%s2428_s23] ss:$0 sm:$0xff]  ;;  %s2432_s25 = sld [smem:[#allocation17_spill]] }
  0x3c   : > { %v2206_v1 = vld [vmem:[%s2201_s4] sm:$0x7]  ;;  %1042 = vmatpush.bf16.msra.mxu1 %v1864_v19  ;;  %s2423_s29 = scalar_lea.vmem %s2422_s7, %s2451_s30 }
  0x3d   : > { %v940_v2 = vsel %vm939_vm1, %v2206_v1, 0.0  ;;  %v1930_v4 = vpop.eup %1929  ;;  %1075 = vmatpush.bf16.msra.mxu2 %v1866_v20  ;;  %v1919_v30 = vld [vmem:[%s2423_s29] ss:$0 sm:$0xff]  ;;  %s2427_s14 = scalar_lea.vmem %s2426_s19, %s2451_s30  ;;  %s2430_s29 = sld [smem:[#allocation16_spill]] }
  0x3e   : > { %941 = vadd.xlane.f32.xlu0 %v940_v2  ;;  %v944_v5 = vmul.f32 32.0, %v1930_v4  ;;  %vm948_vm2 = vweird.f32 %v1930_v4  ;;  %v1921_v41 = vld [vmem:[%s2427_s14] ss:$0 sm:$0xff] }
  0x40   : > { %v945_v6 = vsub.f32 1.0, %v944_v5  ;;  %v1081_v20 = vld [vmem:[%s2429_s3] sm:$0xf] }
  0x41   : > { %s2433_s1 = scalar_lea.vmem %s2432_s25, %s2451_s30 }
  0x42   : > { %v946_v7 = vmul.f32 %v1930_v4, %v945_v6 }
  0x43   : > { %s2431_s18 = scalar_lea.vmem %s2430_s29, %s2451_s30 }
  0x44   : > { %v947_v8 = vadd.f32 %v1930_v4, %v946_v7 }
  0x46   : > { %v2210_v9 = vsel %vm948_vm2, %v1930_v4, %v947_v8 }
  0xb1   : > { %v942_v10 = vpop.xlane.xlu0 %941 }
  0xb2   : > { %v950_v11 = vmul.f32 %v2210_v9, %v942_v10 }
  0xb4   : > { %v951_v12 = vsub.f32 %v2206_v1, %v950_v11 }
  0xb6   : > { %v952_v13 = vmul.f32 %v951_v12, %v951_v12 }
  0xb8   : > { %v953_v14 = vsel %vm939_vm1, %v952_v13, 0.0 }
  0xb9   : > { %954 = vadd.xlane.f32.xlu0 %v953_v14 }
 0x12c   : > { %v955_v21 = vpop.xlane.xlu0 %954 }
 0x12d   : > { %v956_v22 = vmul.f32 %v955_v21, %v2210_v9  ;;  %v1232_v21 = vsel %vm1211_vm11, %v1081_v20, 0  ;;  %v1084_v20 = vld [vmem:[%s2429_s3 + $0xc] sm:$0xf] }
 0x12f   : > { %v957_v23 = vadd.f32 1e-12, %v956_v22 }
 0x131   : > { %1931 = vrsqrt.f32 %v957_v23  ;;  %vm964_vm4 = vweird.f32 %v957_v23 }
 0x137   : > { %v1932_v24 = vpop.eup %1931 }
 0x138   : > { %v959_v25 = vmul.f32 %v1932_v24, %v957_v23  ;;  %vm965_vm3 = vweird.f32 %v1932_v24 }
 0x139   : > { %vm966_vm5 = vmor %vm964_vm4, %vm965_vm3 }
 0x13a   : > { %v960_v26 = vmul.f32 %v1932_v24, %v959_v25 }
 0x13c   : > { %v961_v27 = vmul.f32 0.5, %v960_v26 }
 0x13e   : > { %v962_v28 = vsub.f32 1.5, %v961_v27 }
 0x140   : > { %v963_v29 = vmul.f32 %v1932_v24, %v962_v28 }
 0x142   : > { %v967_v31 = vsel %vm966_vm5, %v1932_v24, %v963_v29 }
 0x143   : > { %v968_v32 = vmul.f32 %v967_v31, %v951_v12 }
 0x145   : > { %v972_v34 = vmul.f32 %v1919_v30, %v968_v32 }
 0x147   : > { %v976_v35 = vadd.f32 %v1920_v33, %v972_v34 }
 0x149   : > { %v982_v36 = vpack.c.bf16 %v976_v35, %v976_v35 }
 0x14b   : > { %1797 = vmatmul.msk.bf16.vlgmr.msra.gmra.mxu0 %vm998_vm6, %v982_v36  ;;  %1806 = vmatmul.msk.bf16.vlgmr.msra.gmra.mxu1 %vm998_vm6, %v982_v36 }
 0x14c   : > { %1815 = vmatmul.msk.bf16.vlgmr.msra.gmra.mxu2 %vm998_vm6, %v982_v36 }
 0x1c8   : > { %v1011_v38 = vpop.f32.mrf.mxu0  ;;  %v1044_v39 = vpop.f32.mrf.mxu1 }
 0x1c9   : > { %v1045_v40 = vadd.f32 %v1922_v37, %v1044_v39  ;;  %v1012_v47 = vadd.f32 %v1921_v41, %v1011_v38 }
 0x1cb   : > { %v1086_v42 = vpack.c.bf16 %v1045_v40, %v1045_v40  ;;  %v1085_v54 = vpack.c.bf16 %v1012_v47, %v1012_v47 }
 0x1cd   : > { %1249 = vrot.lane.b32.xlu0 %v1086_v42, %s1994_s28  ;;  %1151 = vrot.lane.b32.xlu2 %v1086_v42, %s1995_s27  ;;  %v1092_v44 = vsel %vm1087_vm7, %v1086_v42, 0 }
 0x1ce   : > { %1101 = vmatpush.bf16.xpose.msra.mxu3 %v1092_v44 }
 0x1cf   : > { %v1077_v48 = vpop.f32.mrf.mxu2 }
 0x1d0   : > { %v1078_v49 = vadd.f32 %v1923_v43, %v1077_v48  ;;  %v1013_v50 = vpop.f32.mrf.mxu0  ;;  %v1046_v51 = vpop.f32.mrf.mxu1 }
 0x1d2   : > { %v2255_v53 = vpack.c.bf16 %v1078_v49, %v1078_v49 }
 0x1d4   : > { %v1131_v55 = vand.u32 %v2253_v52, %v2255_v53 }
 0x1d5   : > { %1148 = vrot.lane.b32.xlu2 %v1085_v54, %s1995_s27  ;;  %1816 = vmatmul.msk.bf16.vlgmr.msra.gmra.mxu3 %vm1087_vm7, %v1085_v54 }
 0x1d6   : > { %1140 = vmatpush.bf16.msrb.mxu0 %v1131_v55 }
 0x1d7   : > { %v1079_v56 = vpop.f32.mrf.mxu2 }
 0x1da   : > { %1241 = vmatpush.bf16.msra.mxu0 %v1232_v21  ;;  %v1387_v21 = vsel %vm1211_vm11, %v1084_v20, 0 }
 0x1dd   : > { %1327 = vrot.lane.b32.xlu2 %v1086_v42, %s1997_s24 }
 0x1e5   : > { %1325 = vrot.lane.b32.xlu2 %v1085_v54, %s1997_s24 }
 0x227   : > { %v1152_v57 = vpop.permute.xlu2 %1151 }
 0x228   : > { %v1157_v58 = vsel %vm1087_vm7, %v1152_v57, 0 }
 0x229   : > { %1166 = vmatpush.bf16.xpose.msrb.mxu1 %v1157_v58 }
 0x22f   : > { %v1149_v59 = vpop.permute.xlu2 %1148 }
 0x230   : > { %1818 = vmatmul.msk.bf16.vlgmr.msrb.gmra.mxu1 %vm1087_vm7, %v1149_v59 }
 0x237   : > { %v1328_v13 = vpop.permute.xlu2 %1327 }
 0x238   : > { %v1333_v26 = vsel %vm1087_vm7, %v1328_v13, 0 }
 0x23f   : > { %v1250_v60 = vpop.permute.xlu0 %1249  ;;  %v1326_v14 = vpop.permute.xlu2 %1325 }
 0x240   : > { %v1255_v61 = vsel %vm1087_vm7, %v1250_v60, 0 }
 0x241   : > { %1264 = vmatpush.bf16.xpose.msra.mxu1 %v1255_v61 }
 0x258   : > { %v1103_v62 = vpop.f32.mrf.mxu3 }
 0x259   : > { %v1107_v63 = vmul.f32 0.35355338, %v1103_v62 }
 0x25b   : > { %v1109_v0 = vsel %vm1108_vm10, %v1107_v63, -inf }
 0x25c   : > { %1110 = vmax.xlane.f32.xlu1 %v1109_v0 }
 0x260   : > { %v1105_v2 = vpop.f32.mrf.mxu3 }
 0x2ad   : > { %v1168_v3 = vpop.f32.mrf.mxu1 }
 0x2ae   : > { %v1172_v4 = vmul.f32 0.35355338, %v1168_v3 }
 0x2b0   : > { %v1173_v5 = vsel %vm1108_vm10, %v1172_v4, -inf }
 0x2b1   : > { %1174 = vmax.xlane.f32.xlu2 %v1173_v5 }
 0x2b5   : > { %v1170_v6 = vpop.f32.mrf.mxu1 }
 0x2cf   : > { %v1111_v7 = vpop.xlane.xlu1 %1110 }
 0x2d0   : > { %v1112_v8 = vsub.f32 %v1107_v63, %v1111_v7 }
 0x2d2   : > { %v1113_v10 = vmul.f32 1.442695, %v1112_v8  ;;  %v1083_v8 = vld [vmem:[%s2429_s3 + $0x8] sm:$0xf] }
 0x2d4   : > { %1933 = vpow2.f32 %v1113_v10  ;;  %v1309_v10 = vsel %vm1211_vm11, %v1083_v8, 0 }
 0x2da   : > { %v1934_v11 = vpop.eup %1933 }
 0x2db   : > { %v1115_v12 = vsel %vm1108_vm10, %v1934_v11, 0.0 }
 0x2dc   : > { %1116 = vadd.xlane.f32.xlu1 %v1115_v12 }
 0x2f5   : > { %1247 = vrot.lane.b32.xlu1 %v1085_v54, %s1994_s28  ;;  %v1082_v54 = vld [vmem:[%s2429_s3 + $0x4] sm:$0xf] }
 0x2f6   : > { %v1213_v55 = vsel %vm1211_vm11, %v1082_v54, 0  ;;  %v1926_v54 = vld [vmem:[%s2434_s15] ss:$0 sm:$0xff] }
 0x2f7   : > { %1222 = vmatpush.bf16.msrb.mxu3 %v1213_v55 }
 0x2fb   : > { %1318 = vmatpush.bf16.msra.mxu3 %v1309_v10 }
 0x324   : > { %v1175_v15 = vpop.xlane.xlu2 %1174 }
 0x325   : > { %v1176_v16 = vsub.f32 %v1172_v4, %v1175_v15 }
 0x327   : > { %v1177_v17 = vmul.f32 1.442695, %v1176_v16 }
 0x329   : > { %1935 = vpow2.f32 %v1177_v17 }
 0x32f   : > { %v1936_v18 = vpop.eup %1935 }
 0x330   : > { %v1179_v19 = vsel %vm1108_vm10, %v1936_v18, 0.0 }
 0x331   : > { %1180 = vadd.xlane.f32.xlu2 %v1179_v19 }
 0x34f   : > { %v1117_v22 = vpop.xlane.xlu1 %1116 }
 0x350   : > { %1937 = vrcp.f32 %v1117_v22 }
 0x356   : > { %v1938_v23 = vpop.eup %1937 }
 0x357   : > { %v1119_v24 = vmul.f32 %v1938_v23, %v1934_v11 }
 0x359   : > { %v1120_v25 = vpack.c.bf16 %v1119_v24, %v1119_v24 }
 0x35b   : > { %1817 = vmatmul.msk.bf16.vlgmr.msrb.gmra.mxu0 %vm1122_vm12, %v1120_v25 }
 0x35c   : > { %1342 = vmatpush.bf16.xpose.msrb.mxu0 %v1333_v26 }
 0x367   : > { %v1248_v27 = vpop.permute.xlu1 %1247 }
 0x368   : > { %1822 = vmatmul.msk.bf16.vlgmr.msra.gmra.mxu1 %vm1087_vm7, %v1248_v27 }
 0x3a4   : > { %v1181_v40 = vpop.xlane.xlu2 %1180 }
 0x3d8   : > { %v1142_v28 = vpop.f32.mrf.mxu0 }
 0x3d9   : > { %v1146_v29 = vpack.c.bf16 %v1142_v28, %v1142_v28 }
 0x3db   : > { %1821 = vmatmul.msk.bf16.vlgmr.msra.gmra.mxu0 %vm1087_vm7, %v1146_v29 }
 0x3e0   : > { %v1144_v30 = vpop.f32.mrf.mxu0 }
 0x3e1   : > { %v1924_v30 = vld [vmem:[%s2431_s18] ss:$0 sm:$0xff] }
 0x3e5   : > { %v1266_v31 = vpop.f32.mrf.mxu1 }
 0x3e6   : > { %v1270_v32 = vmul.f32 0.35355338, %v1266_v31 }
 0x3e8   : > { %v1271_v33 = vsel %vm1108_vm10, %v1270_v32, -inf }
 0x3e9   : > { %1272 = vmax.xlane.f32.xlu0 %v1271_v33 }
 0x3eb   : > { %1825 = vmatmul.msk.bf16.vlgmr.msrb.gmra.mxu0 %vm1087_vm7, %v1326_v14 }
 0x3ed   : > { %v1268_v34 = vpop.f32.mrf.mxu1 }
 0x3fd   : > { %1186 = vrot.lane.b32.xlu0 %v2255_v53, %s1995_s27 }
 0x458   : > { %v2281_v35 = vpop.f32.mrf.mxu0 }
 0x45c   : > { %v1273_v36 = vpop.xlane.xlu0 %1272 }
 0x45d   : > { %v1274_v37 = vsub.f32 %v1270_v32, %v1273_v36 }
 0x45f   : > { %v1275_v38 = vmul.f32 1.442695, %v1274_v37 }
 0x460   : > { %v1245_v39 = vpop.f32.mrf.mxu0 }
 0x461   : > { %1939 = vpow2.f32 %v1275_v38 }
 0x462   : > { %1941 = vrcp.f32 %v1181_v40  ;;  %v1869_v40 = vld [vmem:[%s2182_s17 + $0x8] sm:$0xff] }
 0x467   : > { %v1940_v41 = vpop.eup %1939 }
 0x468   : > { %v1344_v42 = vpop.f32.mrf.mxu0  ;;  %v1277_v43 = vsel %vm1108_vm10, %v1940_v41, 0.0  ;;  %v1942_v46 = vpop.eup %1941 }
 0x469   : > { %v1348_v44 = vmul.f32 0.35355338, %v1344_v42  ;;  %1278 = vadd.xlane.f32.xlu2 %v1277_v43  ;;  %v1183_v47 = vmul.f32 %v1942_v46, %v1936_v18 }
 0x46b   : > { %v1349_v45 = vsel %vm1108_vm10, %v1348_v44, -inf  ;;  %v1184_v51 = vpack.c.bf16 %v1183_v47, %v1183_v47 }
 0x46c   : > { %1350 = vmax.xlane.f32.xlu1 %v1349_v45 }
 0x46f   : > { %v1187_v48 = vpop.permute.xlu0 %1186 }
 0x470   : > { %v1192_v49 = vand.u32 %v1187_v48, %v2253_v52  ;;  %v1346_v50 = vpop.f32.mrf.mxu0 }
 0x471   : > { %v1925_v50 = vld [vmem:[%s2433_s1] ss:$0 sm:$0xff] }
 0x472   : > { %1201 = vmatpush.bf16.msrb.mxu2 %v1192_v49 }
 0x475   : > { %1819 = vmatmul.msk.bf16.vlgmr.msrb.gmra.mxu2 %vm1122_vm12, %v1184_v51 }
 0x485   : > { %1283 = vrot.lane.b32.xlu1 %v2255_v53, %s1994_s28 }
 0x4dc   : > { %v1279_v60 = vpop.xlane.xlu2 %1278 }
 0x4df   : > { %v1351_v56 = vpop.xlane.xlu1 %1350 }
 0x4e0   : > { %v1352_v57 = vsub.f32 %v1348_v44, %v1351_v56 }
 0x4e2   : > { %v1353_v58 = vmul.f32 1.442695, %v1352_v57 }
 0x4e4   : > { %1943 = vpow2.f32 %v1353_v58  ;;  %v1873_v58 = vld [vmem:[%s2196_s11 + $0x18] sm:$0xff] }
 0x4e5   : > { %1945 = vrcp.f32 %v1279_v60  ;;  %1532 = vmatpush.bf16.msra.mxu0 %v1873_v58  ;;  %v1871_v60 = vld [vmem:[%s2196_s11 + $0x8] sm:$0xff] }
 0x4ea   : > { %v1944_v59 = vpop.eup %1943 }
 0x4eb   : > { %v1355_v61 = vsel %vm1108_vm10, %v1944_v59, 0.0  ;;  %v1946_v62 = vpop.eup %1945 }
 0x4ec   : > { %1356 = vadd.xlane.f32.xlu2 %v1355_v61  ;;  %v1281_v63 = vmul.f32 %v1946_v62, %v1940_v41  ;;  %v1870_v61 = vld [vmem:[%s2196_s11] sm:$0xff] }
 0x4ed   : > { %v1927_v62 = vld [vmem:[%s910_s9] ss:$0 sm:$0xff] }
 0x4ee   : > { %v1282_v5 = vpack.c.bf16 %v1281_v63, %v1281_v63 }
 0x4f7   : > { %v1284_v0 = vpop.permute.xlu1 %1283 }
 0x4f8   : > { %v1289_v2 = vand.u32 %v1284_v0, %v2253_v52  ;;  %v1203_v3 = vpop.f32.mrf.mxu2 }
 0x4f9   : > { %v1207_v4 = vpack.c.bf16 %v1203_v3, %v1203_v3 }
 0x4fa   : > { %1298 = vmatpush.bf16.msra.mxu2 %v1289_v2 }
 0x4fb   : > { %1820 = vmatmul.msk.bf16.vlgmr.msrb.gmra.mxu3 %vm1087_vm7, %v1207_v4 }
 0x4fc   : > { %1471 = vmatpush.bf16.msrb.mxu3 %v1869_v40 }
 0x4fd   : > { %1823 = vmatmul.msk.bf16.vlgmr.msra.gmra.mxu2 %vm1122_vm12, %v1282_v5 }
 0x4fe   : > { %1396 = vmatpush.bf16.msrb.mxu2 %v1387_v21 }
 0x500   : > { %v1205_v6 = vpop.f32.mrf.mxu2 }
 0x504   : > { %1361 = vrot.lane.b32.xlu2 %v2255_v53, %s1997_s24 }
 0x55f   : > { %v1357_v7 = vpop.xlane.xlu2 %1356 }
 0x560   : > { %1947 = vrcp.f32 %v1357_v7 }
 0x566   : > { %v1948_v11 = vpop.eup %1947 }
 0x567   : > { %v1359_v12 = vmul.f32 %v1948_v11, %v1944_v59  ;;  %v1362_v13 = vpop.permute.xlu2 %1361  ;;  %v1872_v59 = vld [vmem:[%s2196_s11 + $0x10] sm:$0xff] }
 0x568   : > { %v1367_v14 = vand.u32 %v1362_v13, %v2253_v52  ;;  %1533 = vmatpush.bf16.msra.mxu0 %v1872_v59 }
 0x569   : > { %v1360_v15 = vpack.c.bf16 %v1359_v12, %v1359_v12 }
 0x56a   : > { %1376 = vmatpush.bf16.msrb.mxu1 %v1367_v14  ;;  %v1928_v14 = vld [vmem:[%s922_s10] ss:$0 sm:$0xff] }
 0x56c   : > { %1534 = vmatpush.bf16.msra.mxu0 %v1871_v60 }
 0x56d   : > { %1826 = vmatmul.msk.bf16.vlgmr.msrb.gmra.mxu1 %vm1122_vm12, %v1360_v15 }
 0x570   : > { %1535 = vmatpush.bf16.msra.mxu0 %v1870_v61 }
 0x57e   : > { %v1224_v16 = vpop.f32.mrf.mxu3 }
 0x57f   : > { %v1244_v24 = vadd.f32 %v2281_v35, %v1224_v16 }
 0x580   : > { %v1300_v17 = vpop.f32.mrf.mxu2 }
 0x581   : > { %v1304_v18 = vpack.c.bf16 %v1300_v17, %v1300_v17 }
 0x583   : > { %1824 = vmatmul.msk.bf16.vlgmr.msra.gmra.mxu3 %vm1087_vm7, %v1304_v18 }
 0x586   : > { %v1226_v53 = vpop.f32.mrf.mxu3 }
 0x588   : > { %v1302_v19 = vpop.f32.mrf.mxu2 }
 0x5ea   : > { %v1378_v22 = vpop.f32.mrf.mxu1 }
 0x5eb   : > { %v1382_v23 = vpack.c.bf16 %v1378_v22, %v1378_v22 }
 0x5ed   : > { %1827 = vmatmul.msk.bf16.vlgmr.msrb.gmra.mxu2 %vm1087_vm7, %v1382_v23 }
 0x5f2   : > { %v1380_v52 = vpop.f32.mrf.mxu1 }
 0x606   : > { %v1320_v25 = vpop.f32.mrf.mxu3 }
 0x607   : > { %v1324_v26 = vadd.f32 %v1320_v25, %v1244_v24 }
 0x60e   : > { %v1322_v27 = vpop.f32.mrf.mxu3 }
 0x670   : > { %v1398_v28 = vpop.f32.mrf.mxu2 }
 0x671   : > { %v1402_v29 = vadd.f32 %v1398_v28, %v1324_v26 }
 0x673   : > { %v1403_v31 = vadd.f32 %v1402_v29, %v2206_v1  ;;  %v1868_v1 = vld [vmem:[%s2182_s17] sm:$0xff] }
 0x674   : > { %1472 = vmatpush.bf16.msrb.mxu3 %v1868_v1 }
 0x675   : > { %v2312_v32 = vadd.f32 %v1924_v30, %v1403_v31 }
 0x677   : > { %v1411_v33 = vsel %vm939_vm1, %v2312_v32, 0.0 }
 0x678   : > { %v1400_v34 = vpop.f32.mrf.mxu2  ;;  %1412 = vadd.xlane.f32.xlu0 %v1411_v33 }
 0x6eb   : > { %v1413_v35 = vpop.xlane.xlu0 %1412 }
 0x6ec   : > { %v1414_v36 = vmul.f32 %v1413_v35, %v2210_v9 }
 0x6ee   : > { %v1415_v37 = vsub.f32 %v2312_v32, %v1414_v36 }
 0x6f0   : > { %v1416_v38 = vmul.f32 %v1415_v37, %v1415_v37 }
 0x6f2   : > { %v1417_v39 = vsel %vm939_vm1, %v1416_v38, 0.0 }
 0x6f3   : > { %1418 = vadd.xlane.f32.xlu1 %v1417_v39 }
 0x766   : > { %v1419_v41 = vpop.xlane.xlu1 %1418 }
 0x767   : > { %v1420_v42 = vmul.f32 %v1419_v41, %v2210_v9 }
 0x769   : > { %v1421_v43 = vadd.f32 1e-12, %v1420_v42 }
 0x76b   : > { %1949 = vrsqrt.f32 %v1421_v43  ;;  %vm1428_vm14 = vweird.f32 %v1421_v43 }
 0x771   : > { %v1950_v44 = vpop.eup %1949 }
 0x772   : > { %v1423_v45 = vmul.f32 %v1950_v44, %v1421_v43  ;;  %vm1429_vm13 = vweird.f32 %v1950_v44 }
 0x773   : > { %vm1430_vm15 = vmor %vm1428_vm14, %vm1429_vm13 }
 0x774   : > { %v1424_v46 = vmul.f32 %v1950_v44, %v1423_v45 }
 0x776   : > { %v1425_v47 = vmul.f32 0.5, %v1424_v46 }
 0x778   : > { %v1426_v48 = vsub.f32 1.5, %v1425_v47 }
 0x77a   : > { %v1427_v49 = vmul.f32 %v1950_v44, %v1426_v48 }
 0x77c   : > { %v1431_v9 = vsel %vm1430_vm15, %v1950_v44, %v1427_v49 }
 0x77d   : > { %v1432_v51 = vmul.f32 %v1431_v9, %v1415_v37 }
 0x77f   : > { %v1436_v55 = vmul.f32 %v1925_v50, %v1432_v51 }
 0x781   : > { %v1440_v56 = vadd.f32 %v1926_v54, %v1436_v55 }
 0x783   : > { %v1446_v57 = vpack.c.bf16 %v1440_v56, %v1440_v56 }
 0x785   : > { %1836 = vmatmul.msk.bf16.vlgmr.msrb.gmra.mxu3 %vm998_vm6, %v1446_v57 }
 0x808   : > { %v1474_v63 = vpop.f32.mrf.mxu3 }
 0x809   : > { %v1475_v0 = vadd.f32 %v1927_v62, %v1474_v63 }
 0x80b   : > { %v1478_v2 = vmul.f32 %v1475_v0, %v1475_v0 }
 0x80d   : > { %v1479_v3 = vmul.f32 %v1478_v2, %v1475_v0 }
 0x80f   : > { %v1480_v4 = vmul.f32 0.044715, %v1479_v3 }
 0x810   : > { %v1476_v5 = vpop.f32.mrf.mxu3 }
 0x811   : > { %v1481_v6 = vadd.f32 %v1480_v4, %v1475_v0 }
 0x813   : > { %v1482_v7 = vmul.f32 0.7978846, %v1481_v6 }
 0x815   : > { %1951 = vtanh.f32 %v1482_v7 }
 0x81b   : > { %v1952_v8 = vpop.eup %1951 }
 0x81c   : > { %v1484_v10 = vadd.f32 1.0, %v1952_v8 }
 0x81e   : > { %v1485_v11 = vmul.f32 0.5, %v1484_v10 }
 0x820   : > { %v1486_v12 = vmul.f32 %v1485_v11, %v1475_v0 }
 0x822   : > { %v1496_v13 = vpack.c.bf16 %v1486_v12, %v1486_v12 }
 0x824   : > { %1853 = vmatmul.msk.bf16.vlgmr.msra.gmra.mxu0 %vm1524_vm0, %v1496_v13 }
 0x8a1   : > { %v1537_v15 = vpop.f32.mrf.mxu0 }
 0x8a2   : > { %v1538_v16 = vadd.f32 %v1928_v14, %v1537_v15 }
 0x8a4   : > { %v1541_v17 = vadd.f32 %v1538_v16, %v2312_v32 }
 0x8a6   : > { %1542 = vst.msk [vmem:[%s2201_s4] sm:$0x7] %vm939_vm1, %v1541_v17 }
 0x8a9   : > { %v1539_v18 = vpop.f32.mrf.mxu0 }
 0x8aa PF: > { %s2437_s0 = sld [smem:[#allocation5_spill]] }
 0x8ab   : > { %s2438_s24 = sld [smem:[#allocation3_spill]] }
 0x8ac   : > { %s2439_s25 = sld [smem:[#allocation4_spill]] }
 0x8ad   : > { %s2440_s26 = sld [smem:[#allocation6_spill]] }
 0x8ae   : > { %s2441_s27 = sld [smem:[#allocation7_spill]] }
 0x8b0   : > { %s27_s28 = sadd.s32 1, %s2437_s0  }
 0x8b1   : > { %p24_p8 = scmp.ge.s32.totalorder %s27_s28, 6  }
 0x8b3   :  { %26 = sbr.rel (!%p24_p8) target bundleno = 14 (0xe), region = 170 }

</bundles_post_ra>
